<compile_context>
chip_gen: v5e
topology: v5e:2x2
jax: 0.10.0
libtpu: 0.0.40
codegen_flags: <defaults>
</compile_context>

<pallas_src>
import functools

import jax
import jax.numpy as jnp
from jax.experimental import pallas as pl
from jax.experimental.pallas import tpu as pltpu

EPS = 1e-5
_LANE = 128


# ---------------------------------------------------------------------------
# small helpers
# ---------------------------------------------------------------------------
def _vmem_capacity_bytes():
    try:
        return int(pltpu.get_tpu_info().vmem_capacity_bytes)
    except Exception:
        return 128 << 20


def _vmem_limit_bytes():
    """Per-generation VMEM budget: ~48 MiB on v7x (64 MiB), ~96 MiB on v5e/v6e."""
    cap = _vmem_capacity_bytes()
    return max(32 << 20, min((cap * 3) // 4, 96 << 20))


def _pick_tile(n, target):
    """Largest multiple-of-8 divisor of n that is <= target (n itself if n <= target)."""
    if n <= target:
        return n
    for cand in range(min(target, n), 7, -1):
        if n % cand == 0 and cand % 8 == 0:
            return cand
    # No usable tile: a full-extent block would have to live in VMEM.  Refuse
    # for large n instead of silently OOM-ing (pad the point count upstream).
    if n > 4096:
        raise ValueError(f"no multiple-of-8 tile divisor of {n} <= {target}")
    return n


def _pick_lane_tile(p, target=2048):
    """Lane tile for Stage C: a multiple of 128 dividing p, or the full extent."""
    if p <= target:
        return p
    for cand in range((target // _LANE) * _LANE, _LANE - 1, -_LANE):
        if p % cand == 0:
            return cand
    return p


def _full_spec(shape):
    nd = len(shape)
    return pl.BlockSpec(shape, lambda i, _nd=nd: (0,) * _nd)


def _cost(flops, nbytes):
    return pl.CostEstimate(flops=int(flops), transcendentals=0,
                           bytes_accessed=int(nbytes))


def _bn_affine(s_sum, s_sq, n_rows, gamma, beta):
    """Fold biased batch statistics into a per-channel affine (scale, shift)."""
    mean = s_sum / float(n_rows)
    var = jnp.maximum(s_sq / float(n_rows) - mean * mean, 0.0)
    scale = gamma * jax.lax.rsqrt(var + EPS)
    shift = beta - mean * scale
    return scale, shift


def _pad_lanes(a, cols, fill=0.0):
    pad = cols - a.shape[-1]
    if pad <= 0:
        return a
    return jnp.pad(a, [(0, 0)] * (a.ndim - 1) + [(0, pad)], constant_values=fill)


def _row_sums_mxu(h):
    """sum(h, axis=0) and sum(h*h, axis=0) via the (otherwise idle) MXU.

    Uses an (8, rows) ones operand (all result rows identical; take row 0) so
    the VALU only keeps the single h*h pass instead of the axis-0 reductions.
    Stats stay in f32 regardless of the bf16 compute path.
    """
    ones8 = jnp.ones((8, h.shape[0]), jnp.float32)
    s = jnp.dot(ones8, h, preferred_element_type=jnp.float32)[0:1, :]
    q = jnp.dot(ones8, h * h, preferred_element_type=jnp.float32)[0:1, :]
    return s, q


# ---------------------------------------------------------------------------
# Stage A kernels: row-tiled Linear -> ReLU (+ partial BN stats, + pooling)
# BN of the previous layer is already folded into w/b by the caller.
# ---------------------------------------------------------------------------
def _linear_relu_stats_kernel(x_ref, w_ref, b_ref, h_ref, ssum_ref, ssq_ref, *,
                              small_k):
    if small_k:
        # Tiny contraction (K = input_dim): pure VPU FMAs, don't touch the MXU.
        x = x_ref[...].astype(jnp.float32)
        w = w_ref[...].astype(jnp.float32)
        h = x[:, 0:1] * w[0:1, :]
        for j in range(1, x.shape[1]):
            h = h + x[:, j:j + 1] * w[j:j + 1, :]
    else:
        h = jnp.dot(x_ref[...], w_ref[...], preferred_element_type=jnp.float32)
    h = jnp.maximum(h + b_ref[...], 0.0)
    h_ref[...] = h.astype(h_ref.dtype)
    s, q = _row_sums_mxu(h)
    cout = h.shape[1]
    ssum_ref[...] = s.reshape(1, 1, cout)
    ssq_ref[...] = q.reshape(1, 1, cout)


def _linear_relu_pool_kernel(x_ref, w_ref, b_ref,
                             mx_ref, mn_ref, ssum_ref, ssq_ref):
    t = pl.program_id(2)
    h = jnp.dot(x_ref[...], w_ref[...], preferred_element_type=jnp.float32)
    h = jnp.maximum(h + b_ref[...], 0.0)
    cout = h.shape[1]
    s, q = _row_sums_mxu(h)
    s = s.reshape(1, 1, 1, cout)
    q = q.reshape(1, 1, 1, cout)
    mx_t = jnp.max(h, axis=0, keepdims=True).reshape(1, 1, 1, cout)
    mn_t = jnp.min(h, axis=0, keepdims=True).reshape(1, 1, 1, cout)

    @pl.when(t == 0)
    def _():
        mx_ref[...] = mx_t
        mn_ref[...] = mn_t
        ssum_ref[...] = s
        ssq_ref[...] = q

    @pl.when(t > 0)
    def _():
        mx_ref[...] = jnp.maximum(mx_ref[...], mx_t)
        mn_ref[...] = jnp.minimum(mn_ref[...], mn_t)
        ssum_ref[...] = ssum_ref[...] + s
        ssq_ref[...] = ssq_ref[...] + q


def _linear_relu_layer(x, w, b, *, tile_m, out_dtype, small_k, vmem_limit):
    n, cin = x.shape
    cout = w.shape[1]
    nt = n // tile_m
    kernel = functools.partial(_linear_relu_stats_kernel, small_k=small_k)
    h, ssum, ssq = pl.pallas_call(
        kernel,
        grid=(nt,),
        in_specs=[
            pl.BlockSpec((tile_m, cin), lambda i: (i, 0)),   # row tile of x
            pl.BlockSpec((cin, cout), lambda i: (0, 0)),     # weights (resident)
            pl.BlockSpec((1, cout), lambda i: (0, 0)),       # bias (resident)
        ],
        out_specs=[
            pl.BlockSpec((tile_m, cout), lambda i: (i, 0)),
            pl.BlockSpec((1, 1, cout), lambda i: (i, 0, 0)),
            pl.BlockSpec((1, 1, cout), lambda i: (i, 0, 0)),
        ],
        out_shape=[
            jax.ShapeDtypeStruct((n, cout), out_dtype),
            jax.ShapeDtypeStruct((nt, 1, cout), jnp.float32),
            jax.ShapeDtypeStruct((nt, 1, cout), jnp.float32),
        ],
        compiler_params=pltpu.CompilerParams(
            dimension_semantics=("parallel",),
            vmem_limit_bytes=vmem_limit),
        cost_estimate=_cost(
            2 * n * cin * cout + 4 * 8 * n * cout,
            x.size * x.dtype.itemsize + w.size * w.dtype.itemsize
            + n * cout * jnp.dtype(out_dtype).itemsize),
    )(x, w, b)
    # Tiny (nt,1,cout) partials reduced in XLA: keeps the single grid axis
    # "parallel" (v7x megacore) instead of an in-kernel "arbitrary" accumulator.
    return h, jnp.sum(ssum, axis=0), jnp.sum(ssq, axis=0)


def _linear_relu_pool_layer(x, w, b, *, batch, num_points, tile_p, vmem_limit):
    n, cin = x.shape
    cout = w.shape[1]
    ptiles = num_points // tile_p
    # Leading size-2 "parallel" axis keeps both v7x TensorCores busy even when
    # batch is small; the point-tile axis stays "arbitrary" (resident max/min
    # and BN-stat accumulators).
    halves = 2 if (ptiles % 2 == 0 and ptiles >= 2) else 1
    pthalf = ptiles // halves
    mx, mn, ssum, ssq = pl.pallas_call(
        _linear_relu_pool_kernel,
        grid=(halves, batch, pthalf),
        in_specs=[
            pl.BlockSpec((tile_p, cin),
                         lambda c, bb, t: (bb * ptiles + c * pthalf + t, 0)),
            pl.BlockSpec((cin, cout), lambda c, bb, t: (0, 0)),
            pl.BlockSpec((1, cout), lambda c, bb, t: (0, 0)),
        ],
        out_specs=[
            pl.BlockSpec((1, 1, 1, cout), lambda c, bb, t: (c, bb, 0, 0)),
            pl.BlockSpec((1, 1, 1, cout), lambda c, bb, t: (c, bb, 0, 0)),
            pl.BlockSpec((1, 1, 1, cout), lambda c, bb, t: (c, bb, 0, 0)),
            pl.BlockSpec((1, 1, 1, cout), lambda c, bb, t: (c, bb, 0, 0)),
        ],
        out_shape=[
            jax.ShapeDtypeStruct((halves, batch, 1, cout), jnp.float32),
            jax.ShapeDtypeStruct((halves, batch, 1, cout), jnp.float32),
            jax.ShapeDtypeStruct((halves, batch, 1, cout), jnp.float32),
            jax.ShapeDtypeStruct((halves, batch, 1, cout), jnp.float32),
        ],
        compiler_params=pltpu.CompilerParams(
            dimension_semantics=("parallel", "parallel", "arbitrary"),
            vmem_limit_bytes=vmem_limit),
        cost_estimate=_cost(
            2 * n * cin * cout + 4 * 8 * n * cout,
            x.size * x.dtype.itemsize + w.size * w.dtype.itemsize
            + 4 * halves * batch * cout * 4),
    )(x, w, b)
    mx = jnp.max(mx, axis=0).reshape(batch, cout)
    mn = jnp.min(mn, axis=0).reshape(batch, cout)
    s = jnp.sum(ssum, axis=(0, 1)).reshape(1, cout)
    q = jnp.sum(ssq, axis=(0, 1)).reshape(1, cout)
    return mx, mn, s, q


# ---------------------------------------------------------------------------
# Stage B kernel: layers 4..6 on the pooled (B, 1024) tensor (bf16 weights)
# ---------------------------------------------------------------------------
def _head_kernel(p_ref, w4_ref, b4_ref, g4_ref, be4_ref,
                 w5_ref, b5_ref, g5_ref, be5_ref, w6_ref, b6_ref,
                 mat_ref, *, compute_dtype):
    def bn(h, g, be):
        mean = jnp.mean(h, axis=0, keepdims=True)
        var = jnp.mean((h - mean) ** 2, axis=0, keepdims=True)
        return (h - mean) * jax.lax.rsqrt(var + EPS) * g + be

    h = p_ref[...].astype(jnp.float32)
    h = jnp.maximum(jnp.dot(h.astype(compute_dtype), w4_ref[...],
                            preferred_element_type=jnp.float32) + b4_ref[...], 0.0)
    h = bn(h, g4_ref[...], be4_ref[...])
    h = jnp.maximum(jnp.dot(h.astype(compute_dtype), w5_ref[...],
                            preferred_element_type=jnp.float32) + b5_ref[...], 0.0)
    h = bn(h, g5_ref[...], be5_ref[...])
    mat_ref[...] = jnp.dot(h.astype(compute_dtype), w6_ref[...],
                           preferred_element_type=jnp.float32) + b6_ref[...]


def _head(pooled, p4, p5, p6, *, input_dim, compute_dtype, vmem_limit):
    w4, b4, g4, be4 = p4
    w5, b5, g5, be5 = p5
    w6, b6 = p6
    batch = pooled.shape[0]
    d2 = input_dim * input_dim
    args = [pooled, w4, b4, g4, be4, w5, b5, g5, be5, w6, b6]
    kernel = functools.partial(_head_kernel, compute_dtype=compute_dtype)
    return pl.pallas_call(
        kernel,
        grid=(1,),
        in_specs=[_full_spec(a.shape) for a in args],
        out_specs=_full_spec((batch, d2)),
        out_shape=jax.ShapeDtypeStruct((batch, d2), jnp.float32),
        compiler_params=pltpu.CompilerParams(
            dimension_semantics=("arbitrary",),
            vmem_limit_bytes=vmem_limit),
        cost_estimate=_cost(
            2 * batch * (w4.size + w5.size + w6.size),
            sum(a.size * a.dtype.itemsize for a in args) + batch * d2 * 4),
    )(*args)


# ---------------------------------------------------------------------------
# Stage C kernel: per-cloud transform, lane-dense layout (points on lanes)
# ---------------------------------------------------------------------------
def _transform_kernel(xt_ref, m_ref, o_ref):
    x = xt_ref[0]                       # (D, L)  — points on the 128-lane axis
    m = m_ref[0]                        # (D, D)  — m[k, j] = mat[k, j]
    acc = m[:, 0:1] * x[0:1, :]
    for j in range(1, m.shape[0]):
        acc = acc + m[:, j:j + 1] * x[j:j + 1, :]
    o_ref[...] = acc[None].astype(o_ref.dtype)


def _apply_transform(xt, mat3, *, batch, num_points, input_dim, lane_tile,
                     vmem_limit):
    ltiles = num_points // lane_tile
    return pl.pallas_call(
        _transform_kernel,
        grid=(batch, ltiles),
        in_specs=[
            pl.BlockSpec((1, input_dim, lane_tile), lambda bb, t: (bb, 0, t)),
            pl.BlockSpec((1, input_dim, input_dim), lambda bb, t: (bb, 0, 0)),
        ],
        out_specs=pl.BlockSpec((1, input_dim, lane_tile),
                               lambda bb, t: (bb, 0, t)),
        out_shape=jax.ShapeDtypeStruct((batch, input_dim, num_points),
                                       jnp.float32),
        compiler_params=pltpu.CompilerParams(
            dimension_semantics=("parallel", "parallel"),
            vmem_limit_bytes=vmem_limit),
        cost_estimate=_cost(
            2 * batch * num_points * input_dim * input_dim,
            2 * batch * num_points * input_dim * 4
            + batch * input_dim * input_dim * 4),
    )(xt, mat3)


# ---------------------------------------------------------------------------
# Full forward
# ---------------------------------------------------------------------------
def input_tnet(x, params, *, batch, num_points, input_dim,
               compute_dtype=jnp.bfloat16, row_tile=2048, pool_tile=None):
    """InputTNet forward.  x: (batch*num_points, input_dim) float32."""
    n = batch * num_points
    assert x.shape == (n, input_dim)
    assert num_points % 8 == 0 or batch == 1, \
        "num_points must be a multiple of 8 when batch > 1"

    vmem_limit = _vmem_limit_bytes()
    if pool_tile is None:
        # Keep the VALU-heavy layer-3 tile modest on v7x (64 MiB VMEM).
        pool_tile = 512 if _vmem_capacity_bytes() <= (64 << 20) else 1024
    tile_m = _pick_tile(n, row_tile)            # layers 1-2 (HBM-bound: big tile)
    tile_p = _pick_tile(num_points, pool_tile)  # layer 3 + pooling
    lane_tile = _pick_lane_tile(num_points)
    cd = jnp.dtype(compute_dtype)

    (w1, b1, g1, be1), (w2, b2, g2, be2), (w3, b3, g3, be3) = params[0:3]
    (w4, b4, g4, be4), (w5, b5, g5, be5), (w6, b6) = params[3], params[4], params[5]

    # Lane-dense padding of the 64-channel layer to 128 lanes.  Zero columns of
    # w1/b1 and zero rows of w2 keep the math identical (padded channels stay 0).
    c1 = max(_LANE, w1.shape[1])
    w1p = _pad_lanes(w1, c1)                 # layer 1 runs on the VPU: keep f32
    b1p = _pad_lanes(b1, c1)
    g1p = _pad_lanes(g1, c1, fill=1.0)
    be1p = _pad_lanes(be1, c1)
    pad_rows = c1 - w2.shape[0]
    w2p = jnp.pad(w2, ((0, pad_rows), (0, 0))) if pad_rows > 0 else w2

    # -------- Stage A: per-point MLP (layers 1..3) + per-cloud max pooling ----
    h1, s1, q1 = _linear_relu_layer(x, w1p, b1p, tile_m=tile_m, out_dtype=cd,
                                    small_k=True, vmem_limit=vmem_limit)
    sc1, sh1 = _bn_affine(s1, q1, n, g1p, be1p)
    # Fold BN1 into the layer-2 weights/bias (tiny XLA ops): no per-element
    # affine inside the kernel, bf16 h1 feeds the MXU directly.
    w2f = (sc1.reshape(-1, 1) * w2p).astype(cd)
    b2f = b2 + jnp.dot(sh1, w2p)

    h2, s2, q2 = _linear_relu_layer(h1, w2f, b2f, tile_m=tile_m, out_dtype=cd,
                                    small_k=False, vmem_limit=vmem_limit)
    sc2, sh2 = _bn_affine(s2, q2, n, g2, be2)
    w3f = (sc2.reshape(-1, 1) * w3).astype(cd)
    b3f = b3 + jnp.dot(sh2, w3)

    mx, mn, s3, q3 = _linear_relu_pool_layer(h2, w3f, b3f, batch=batch,
                                             num_points=num_points,
                                             tile_p=tile_p,
                                             vmem_limit=vmem_limit)
    sc3, sh3 = _bn_affine(s3, q3, n, g3, be3)
    # MaxPool commutes with the per-channel BN affine: running max where the
    # scale is >= 0, running min where it is negative.
    pooled = jnp.where(sc3 >= 0.0, sc3 * mx, sc3 * mn) + sh3           # (B, 1024)

    # -------- Stage B: layers 4..6 on the pooled tensor -----------------------
    mat = _head(pooled,
                (w4.astype(cd), b4, g4, be4),
                (w5.astype(cd), b5, g5, be5),
                (w6.astype(cd), b6),
                input_dim=input_dim, compute_dtype=compute_dtype,
                vmem_limit=vmem_limit)                                 # (B, D*D)

    # -------- Stage C: apply the per-cloud transform (lane-dense layout) ------
    xt = jnp.swapaxes(x.reshape(batch, num_points, input_dim), 1, 2)   # (B, D, P)
    mat3 = mat.reshape(batch, input_dim, input_dim)
    out_t = _apply_transform(xt, mat3, batch=batch, num_points=num_points,
                             input_dim=input_dim, lane_tile=lane_tile,
                             vmem_limit=vmem_limit)                    # (B, D, P)
    return jnp.swapaxes(out_t, 1, 2).reshape(n, input_dim)


# ---------------------------------------------------------------------------
# Parameters and pure-JAX reference
# ---------------------------------------------------------------------------
def init_params(key, input_dim):
    """Deterministic synthetic parameters (PyTorch-like shapes/init)."""
    dims = [(input_dim, 64), (64, 128), (128, 1024),
            (1024, 512), (512, 256), (256, input_dim * input_dim)]
    params = []
    for i, (fin, fout) in enumerate(dims):
        key, kw, kb = jax.random.split(key, 3)
        bound = 1.0 / float(fin) ** 0.5
        w = jax.random.uniform(kw, (fin, fout), jnp.float32, -bound, bound)
        b = jax.random.uniform(kb, (1, fout), jnp.float32, -bound, bound)
        if i < 5:   # NonLinear layers carry a BatchNorm1d
            params.append((w, b, jnp.ones((1, fout), jnp.float32),
                           jnp.zeros((1, fout), jnp.float32)))
        else:       # final plain nn.Linear(256, input_dim**2)
            params.append((w, b))
    return params


def _bn_ref(h, gamma, beta):
    mean = jnp.mean(h, axis=0, keepdims=True)
    var = jnp.mean((h - mean) ** 2, axis=0, keepdims=True)
    return (h - mean) * jax.lax.rsqrt(var + EPS) * gamma + beta


def _nonlinear_ref(h, w, b, gamma, beta):
    return _bn_ref(jnp.maximum(jnp.dot(h, w) + b, 0.0), gamma, beta)


def reference(x, params, batch, num_points, input_dim):
    """Pure-JAX mirror of the PyTorch forward, for correctness checking."""
    h = x
    for i in range(3):
        w, b, g, be = params[i]
        h = _nonlinear_ref(h, w, b, g, be)
    h = jnp.max(h.reshape(batch, num_points, -1), axis=1)
    for i in range(3, 5):
        w, b, g, be = params[i]
        h = _nonlinear_ref(h, w, b, g, be)
    w6, b6 = params[5]
    mat = (jnp.dot(h, w6) + b6).reshape(batch, input_dim, input_dim)
    x_r = x.reshape(batch, num_points, input_dim)
    out = jnp.einsum('bpj,bkj->bpk', x_r, mat)
    return out.reshape(batch * num_points, input_dim)


if __name__ == "__main__":
    B, P, D = 2, 16, 4          # clouds, points per cloud, input_dim
    key = jax.random.PRNGKey(0)
    kx, kp = jax.random.split(key)
    x = jax.random.normal(kx, (B * P, D), jnp.float32)
    params = init_params(kp, D)

    # f32 MXU path: checked against the pure-JAX reference.
    fwd_f32 = jax.jit(functools.partial(input_tnet, batch=B, num_points=P,
                                        input_dim=D, compute_dtype=jnp.float32))
    out_f32 = jax.block_until_ready(fwd_f32(x, params))
    ref = reference(x, params, B, P, D)
    assert out_f32.shape == (B * P, D)
    assert jnp.allclose(out_f32, ref, rtol=2e-2, atol=2e-2), \
        "mismatch vs JAX reference"

    # Default bf16 MXU path (the fast path on v5e/v6e/v7x).  BN over tiny demo
    # batches amplifies bf16 rounding, so only a sanity check is asserted here.
    fwd = jax.jit(functools.partial(input_tnet, batch=B, num_points=P,
                                    input_dim=D))
    out = jax.block_until_ready(fwd(x, params))
    assert out.shape == (B * P, D)
    assert bool(jnp.all(jnp.isfinite(out)))

    print("KERNEL_OK")
</pallas_src>

<mosaic_0001>
module attributes {stable_mosaic.version = 11 : i64} {
  func.func @_linear_relu_stats_kernel(%arg0: i32, %arg1: memref<32x128xf32, #tpu.memory_space<vmem>>, %arg2: memref<128x128xf32, #tpu.memory_space<vmem>>, %arg3: memref<1x128xf32, #tpu.memory_space<vmem>>, %arg4: memref<32x128xf32, #tpu.memory_space<vmem>>, %arg5: memref<1x1x128xf32, #tpu.memory_space<vmem>>, %arg6: memref<1x1x128xf32, #tpu.memory_space<vmem>>) attributes {dimension_semantics = [#tpu.dimension_semantics<parallel>], iteration_bounds = array<i64: 1>, scalar_prefetch = 0 : i64, scratch_operands = 0 : i64, tpu.core_type = #tpu.core_type<tc>, window_params = [{transform_indices = @transform_0, window_bounds = array<i64: 32, 128>}, {pipeline_mode = #tpu.pipeline_mode<synchronous>, transform_indices = @transform_1, window_bounds = array<i64: 128, 128>}, {pipeline_mode = #tpu.pipeline_mode<synchronous>, transform_indices = @transform_2, window_bounds = array<i64: 1, 128>}, {transform_indices = @transform_3, window_bounds = array<i64: 32, 128>}, {transform_indices = @transform_4, window_bounds = array<i64: 1, 1, 128>}, {transform_indices = @transform_5, window_bounds = array<i64: 1, 1, 128>}]} {
    %c0 = arith.constant 0 : index
    %c0_0 = arith.constant 0 : index
    %0 = vector.load %arg1[%c0, %c0_0] : memref<32x128xf32, #tpu.memory_space<vmem>>, vector<32x128xf32>
    %c0_1 = arith.constant 0 : index
    %c0_2 = arith.constant 0 : index
    %1 = vector.load %arg2[%c0_1, %c0_2] : memref<128x128xf32, #tpu.memory_space<vmem>>, vector<128x128xf32>
    %cst = arith.constant dense<0.000000e+00> : vector<32x128xf32>
    %2 = tpu.matmul %0, %1, %cst {dimension_numbers = #tpu.dot_dimension_numbers<[1], [0], [0], [1], [0, 0, 1, 1], [], []>} : vector<32x128xf32>, vector<128x128xf32>, vector<32x128xf32> -> vector<32x128xf32>
    %c0_3 = arith.constant 0 : index
    %c0_4 = arith.constant 0 : index
    %3 = vector.load %arg3[%c0_3, %c0_4] : memref<1x128xf32, #tpu.memory_space<vmem>>, vector<1x128xf32>
    %4 = vector.broadcast %3 : vector<1x128xf32> to vector<32x128xf32>
    %5 = arith.addf %2, %4 : vector<32x128xf32>
    %cst_5 = arith.constant 0.000000e+00 : f32
    %6 = vector.broadcast %cst_5 : f32 to vector<32x128xf32>
    %7 = arith.maximumf %5, %6 : vector<32x128xf32>
    %c0_6 = arith.constant 0 : index
    %c0_7 = arith.constant 0 : index
    %8 = vector.load %arg4[%c0_6, %c0_7] : memref<32x128xf32, #tpu.memory_space<vmem>>, vector<32x128xf32>
    tpu.vector_store %arg4[%c0_6, %c0_7], %7 {strides = array<i32>} : memref<32x128xf32, #tpu.memory_space<vmem>>, vector<32x128xf32>,
    %cst_8 = arith.constant 1.000000e+00 : f32
    %9 = vector.broadcast %cst_8 : f32 to vector<8x32xf32>
    %cst_9 = arith.constant dense<0.000000e+00> : vector<8x128xf32>
    %10 = tpu.matmul %9, %7, %cst_9 {dimension_numbers = #tpu.dot_dimension_numbers<[1], [0], [0], [1], [0, 0, 1, 1], [], []>} : vector<8x32xf32>, vector<32x128xf32>, vector<8x128xf32> -> vector<8x128xf32>
    %11 = vector.extract_strided_slice %10 {offsets = [0, 0], sizes = [1, 128], strides = [1, 1]} : vector<8x128xf32> to vector<1x128xf32>
    %12 = arith.mulf %7, %7 : vector<32x128xf32>
    %cst_10 = arith.constant dense<0.000000e+00> : vector<8x128xf32>
    %13 = tpu.matmul %9, %12, %cst_10 {dimension_numbers = #tpu.dot_dimension_numbers<[1], [0], [0], [1], [0, 0, 1, 1], [], []>} : vector<8x32xf32>, vector<32x128xf32>, vector<8x128xf32> -> vector<8x128xf32>
    %14 = vector.extract_strided_slice %13 {offsets = [0, 0], sizes = [1, 128], strides = [1, 1]} : vector<8x128xf32> to vector<1x128xf32>
    %15 = vector.shape_cast %11 : vector<1x128xf32> to vector<1x1x128xf32>
    %c0_11 = arith.constant 0 : index
    %c0_12 = arith.constant 0 : index
    %c0_13 = arith.constant 0 : index
    %16 = vector.load %arg5[%c0_11, %c0_12, %c0_13] : memref<1x1x128xf32, #tpu.memory_space<vmem>>, vector<1x1x128xf32>
    tpu.vector_store %arg5[%c0_11, %c0_12, %c0_13], %15 {strides = array<i32>} : memref<1x1x128xf32, #tpu.memory_space<vmem>>, vector<1x1x128xf32>,
    %17 = vector.shape_cast %14 : vector<1x128xf32> to vector<1x1x128xf32>
    %c0_14 = arith.constant 0 : index
    %c0_15 = arith.constant 0 : index
    %c0_16 = arith.constant 0 : index
    %18 = vector.load %arg6[%c0_14, %c0_15, %c0_16] : memref<1x1x128xf32, #tpu.memory_space<vmem>>, vector<1x1x128xf32>
    tpu.vector_store %arg6[%c0_14, %c0_15, %c0_16], %17 {strides = array<i32>} : memref<1x1x128xf32, #tpu.memory_space<vmem>>, vector<1x1x128xf32>,
    return
  }
  func.func @transform_0(%arg0: i32) -> (i32, i32) {
    %c0_i32 = arith.constant 0 : i32
    %c0_i32_0 = arith.constant 0 : i32
    return %arg0, %c0_i32 : i32, i32
  }
  func.func @transform_1(%arg0: i32) -> (i32, i32) {
    %c0_i32 = arith.constant 0 : i32
    %c0_i32_0 = arith.constant 0 : i32
    %c0_i32_1 = arith.constant 0 : i32
    return %c0_i32, %c0_i32_0 : i32, i32
  }
  func.func @transform_2(%arg0: i32) -> (i32, i32) {
    %c0_i32 = arith.constant 0 : i32
    %c0_i32_0 = arith.constant 0 : i32
    %c0_i32_1 = arith.constant 0 : i32
    return %c0_i32, %c0_i32_0 : i32, i32
  }
  func.func @transform_3(%arg0: i32) -> (i32, i32) {
    %c0_i32 = arith.constant 0 : i32
    %c0_i32_0 = arith.constant 0 : i32
    return %arg0, %c0_i32 : i32, i32
  }
  func.func @transform_4(%arg0: i32) -> (i32, i32, i32) {
    %c0_i32 = arith.constant 0 : i32
    %c0_i32_0 = arith.constant 0 : i32
    %c0_i32_1 = arith.constant 0 : i32
    return %arg0, %c0_i32, %c0_i32_0 : i32, i32, i32
  }
  func.func @transform_5(%arg0: i32) -> (i32, i32, i32) {
    %c0_i32 = arith.constant 0 : i32
    %c0_i32_0 = arith.constant 0 : i32
    %c0_i32_1 = arith.constant 0 : i32
    return %arg0, %c0_i32, %c0_i32_0 : i32, i32, i32
  }
}

module attributes {stable_mosaic.version = 11 : i64} {
  func.func @_linear_relu_stats_kernel(%arg0: i32, %arg1: memref<32x4xf32, #tpu.memory_space<vmem>>, %arg2: memref<4x128xf32, #tpu.memory_space<vmem>>, %arg3: memref<1x128xf32, #tpu.memory_space<vmem>>, %arg4: memref<32x128xf32, #tpu.memory_space<vmem>>, %arg5: memref<1x1x128xf32, #tpu.memory_space<vmem>>, %arg6: memref<1x1x128xf32, #tpu.memory_space<vmem>>) attributes {dimension_semantics = [#tpu.dimension_semantics<parallel>], iteration_bounds = array<i64: 1>, scalar_prefetch = 0 : i64, scratch_operands = 0 : i64, tpu.core_type = #tpu.core_type<tc>, window_params = [{transform_indices = @transform_0, window_bounds = array<i64: 32, 4>}, {pipeline_mode = #tpu.pipeline_mode<synchronous>, transform_indices = @transform_1, window_bounds = array<i64: 4, 128>}, {pipeline_mode = #tpu.pipeline_mode<synchronous>, transform_indices = @transform_2, window_bounds = array<i64: 1, 128>}, {transform_indices = @transform_3, window_bounds = array<i64: 32, 128>}, {transform_indices = @transform_4, window_bounds = array<i64: 1, 1, 128>}, {transform_indices = @transform_5, window_bounds = array<i64: 1, 1, 128>}]} {
    %c0 = arith.constant 0 : index
    %c0_0 = arith.constant 0 : index
    %0 = vector.load %arg1[%c0, %c0_0] : memref<32x4xf32, #tpu.memory_space<vmem>>, vector<32x4xf32>
    %c0_1 = arith.constant 0 : index
    %c0_2 = arith.constant 0 : index
    %1 = vector.load %arg2[%c0_1, %c0_2] : memref<4x128xf32, #tpu.memory_space<vmem>>, vector<4x128xf32>
    %2 = vector.extract_strided_slice %0 {offsets = [0, 0], sizes = [32, 1], strides = [1, 1]} : vector<32x4xf32> to vector<32x1xf32>
    %3 = vector.extract_strided_slice %1 {offsets = [0, 0], sizes = [1, 128], strides = [1, 1]} : vector<4x128xf32> to vector<1x128xf32>
    %4 = vector.broadcast %2 : vector<32x1xf32> to vector<32x128xf32>
    %5 = vector.broadcast %3 : vector<1x128xf32> to vector<32x128xf32>
    %6 = arith.mulf %4, %5 : vector<32x128xf32>
    %7 = vector.extract_strided_slice %0 {offsets = [0, 1], sizes = [32, 1], strides = [1, 1]} : vector<32x4xf32> to vector<32x1xf32>
    %8 = vector.extract_strided_slice %1 {offsets = [1, 0], sizes = [1, 128], strides = [1, 1]} : vector<4x128xf32> to vector<1x128xf32>
    %9 = vector.broadcast %7 : vector<32x1xf32> to vector<32x128xf32>
    %10 = vector.broadcast %8 : vector<1x128xf32> to vector<32x128xf32>
    %11 = arith.mulf %9, %10 : vector<32x128xf32>
    %12 = arith.addf %6, %11 : vector<32x128xf32>
    %13 = vector.extract_strided_slice %0 {offsets = [0, 2], sizes = [32, 1], strides = [1, 1]} : vector<32x4xf32> to vector<32x1xf32>
    %14 = vector.extract_strided_slice %1 {offsets = [2, 0], sizes = [1, 128], strides = [1, 1]} : vector<4x128xf32> to vector<1x128xf32>
    %15 = vector.broadcast %13 : vector<32x1xf32> to vector<32x128xf32>
    %16 = vector.broadcast %14 : vector<1x128xf32> to vector<32x128xf32>
    %17 = arith.mulf %15, %16 : vector<32x128xf32>
    %18 = arith.addf %12, %17 : vector<32x128xf32>
    %19 = vector.extract_strided_slice %0 {offsets = [0, 3], sizes = [32, 1], strides = [1, 1]} : vector<32x4xf32> to vector<32x1xf32>
    %20 = vector.extract_strided_slice %1 {offsets = [3, 0], sizes = [1, 128], strides = [1, 1]} : vector<4x128xf32> to vector<1x128xf32>
    %21 = vector.broadcast %19 : vector<32x1xf32> to vector<32x128xf32>
    %22 = vector.broadcast %20 : vector<1x128xf32> to vector<32x128xf32>
    %23 = arith.mulf %21, %22 : vector<32x128xf32>
    %24 = arith.addf %18, %23 : vector<32x128xf32>
    %c0_3 = arith.constant 0 : index
    %c0_4 = arith.constant 0 : index
    %25 = vector.load %arg3[%c0_3, %c0_4] : memref<1x128xf32, #tpu.memory_space<vmem>>, vector<1x128xf32>
    %26 = vector.broadcast %25 : vector<1x128xf32> to vector<32x128xf32>
    %27 = arith.addf %24, %26 : vector<32x128xf32>
    %cst = arith.constant 0.000000e+00 : f32
    %28 = vector.broadcast %cst : f32 to vector<32x128xf32>
    %29 = arith.maximumf %27, %28 : vector<32x128xf32>
    %c0_5 = arith.constant 0 : index
    %c0_6 = arith.constant 0 : index
    %30 = vector.load %arg4[%c0_5, %c0_6] : memref<32x128xf32, #tpu.memory_space<vmem>>, vector<32x128xf32>
    tpu.vector_store %arg4[%c0_5, %c0_6], %29 {strides = array<i32>} : memref<32x128xf32, #tpu.memory_space<vmem>>, vector<32x128xf32>,
    %cst_7 = arith.constant 1.000000e+00 : f32
    %31 = vector.broadcast %cst_7 : f32 to vector<8x32xf32>
    %cst_8 = arith.constant dense<0.000000e+00> : vector<8x128xf32>
    %32 = tpu.matmul %31, %29, %cst_8 {dimension_numbers = #tpu.dot_dimension_numbers<[1], [0], [0], [1], [0, 0, 1, 1], [], []>} : vector<8x32xf32>, vector<32x128xf32>, vector<8x128xf32> -> vector<8x128xf32>
    %33 = vector.extract_strided_slice %32 {offsets = [0, 0], sizes = [1, 128], strides = [1, 1]} : vector<8x128xf32> to vector<1x128xf32>
    %34 = arith.mulf %29, %29 : vector<32x128xf32>
    %cst_9 = arith.constant dense<0.000000e+00> : vector<8x128xf32>
    %35 = tpu.matmul %31, %34, %cst_9 {dimension_numbers = #tpu.dot_dimension_numbers<[1], [0], [0], [1], [0, 0, 1, 1], [], []>} : vector<8x32xf32>, vector<32x128xf32>, vector<8x128xf32> -> vector<8x128xf32>
    %36 = vector.extract_strided_slice %35 {offsets = [0, 0], sizes = [1, 128], strides = [1, 1]} : vector<8x128xf32> to vector<1x128xf32>
    %37 = vector.shape_cast %33 : vector<1x128xf32> to vector<1x1x128xf32>
    %c0_10 = arith.constant 0 : index
    %c0_11 = arith.constant 0 : index
    %c0_12 = arith.constant 0 : index
    %38 = vector.load %arg5[%c0_10, %c0_11, %c0_12] : memref<1x1x128xf32, #tpu.memory_space<vmem>>, vector<1x1x128xf32>
    tpu.vector_store %arg5[%c0_10, %c0_11, %c0_12], %37 {strides = array<i32>} : memref<1x1x128xf32, #tpu.memory_space<vmem>>, vector<1x1x128xf32>,
    %39 = vector.shape_cast %36 : vector<1x128xf32> to vector<1x1x128xf32>
    %c0_13 = arith.constant 0 : index
    %c0_14 = arith.constant 0 : index
    %c0_15 = arith.constant 0 : index
    %40 = vector.load %arg6[%c0_13, %c0_14, %c0_15] : memref<1x1x128xf32, #tpu.memory_space<vmem>>, vector<1x1x128xf32>
    tpu.vector_store %arg6[%c0_13, %c0_14, %c0_15], %39 {strides = array<i32>} : memref<1x1x128xf32, #tpu.memory_space<vmem>>, vector<1x1x128xf32>,
    return
  }
  func.func @transform_0(%arg0: i32) -> (i32, i32) {
    %c0_i32 = arith.constant 0 : i32
    %c0_i32_0 = arith.constant 0 : i32
    return %arg0, %c0_i32 : i32, i32
  }
  func.func @transform_1(%arg0: i32) -> (i32, i32) {
    %c0_i32 = arith.constant 0 : i32
    %c0_i32_0 = arith.constant 0 : i32
    %c0_i32_1 = arith.constant 0 : i32
    return %c0_i32, %c0_i32_0 : i32, i32
  }
  func.func @transform_2(%arg0: i32) -> (i32, i32) {
    %c0_i32 = arith.constant 0 : i32
    %c0_i32_0 = arith.constant 0 : i32
    %c0_i32_1 = arith.constant 0 : i32
    return %c0_i32, %c0_i32_0 : i32, i32
  }
  func.func @transform_3(%arg0: i32) -> (i32, i32) {
    %c0_i32 = arith.constant 0 : i32
    %c0_i32_0 = arith.constant 0 : i32
    return %arg0, %c0_i32 : i32, i32
  }
  func.func @transform_4(%arg0: i32) -> (i32, i32, i32) {
    %c0_i32 = arith.constant 0 : i32
    %c0_i32_0 = arith.constant 0 : i32
    %c0_i32_1 = arith.constant 0 : i32
    return %arg0, %c0_i32, %c0_i32_0 : i32, i32, i32
  }
  func.func @transform_5(%arg0: i32) -> (i32, i32, i32) {
    %c0_i32 = arith.constant 0 : i32
    %c0_i32_0 = arith.constant 0 : i32
    %c0_i32_1 = arith.constant 0 : i32
    return %arg0, %c0_i32, %c0_i32_0 : i32, i32, i32
  }
}

module attributes {stable_mosaic.version = 11 : i64} {
  func.func @_linear_relu_pool_kernel(%arg0: i32, %arg1: i32, %arg2: i32, %arg3: memref<16x128xf32, #tpu.memory_space<vmem>>, %arg4: memref<128x1024xf32, #tpu.memory_space<vmem>>, %arg5: memref<1x1024xf32, #tpu.memory_space<vmem>>, %arg6: memref<1x1x1x1024xf32, #tpu.memory_space<vmem>>, %arg7: memref<1x1x1x1024xf32, #tpu.memory_space<vmem>>, %arg8: memref<1x1x1x1024xf32, #tpu.memory_space<vmem>>, %arg9: memref<1x1x1x1024xf32, #tpu.memory_space<vmem>>) attributes {dimension_semantics = [#tpu.dimension_semantics<parallel>, #tpu.dimension_semantics<parallel>, #tpu.dimension_semantics<arbitrary>], iteration_bounds = array<i64: 1, 2, 1>, scalar_prefetch = 0 : i64, scratch_operands = 0 : i64, tpu.core_type = #tpu.core_type<tc>, window_params = [{transform_indices = @transform_0, window_bounds = array<i64: 16, 128>}, {pipeline_mode = #tpu.pipeline_mode<synchronous>, transform_indices = @transform_1, window_bounds = array<i64: 128, 1024>}, {pipeline_mode = #tpu.pipeline_mode<synchronous>, transform_indices = @transform_2, window_bounds = array<i64: 1, 1024>}, {transform_indices = @transform_3, window_bounds = array<i64: 1, 1, 1, 1024>}, {transform_indices = @transform_4, window_bounds = array<i64: 1, 1, 1, 1024>}, {transform_indices = @transform_5, window_bounds = array<i64: 1, 1, 1, 1024>}, {transform_indices = @transform_6, window_bounds = array<i64: 1, 1, 1, 1024>}]} {
    %c0 = arith.constant 0 : index
    %c0_0 = arith.constant 0 : index
    %0 = vector.load %arg3[%c0, %c0_0] : memref<16x128xf32, #tpu.memory_space<vmem>>, vector<16x128xf32>
    %c0_1 = arith.constant 0 : index
    %c0_2 = arith.constant 0 : index
    %1 = vector.load %arg4[%c0_1, %c0_2] : memref<128x1024xf32, #tpu.memory_space<vmem>>, vector<128x1024xf32>
    %cst = arith.constant dense<0.000000e+00> : vector<16x1024xf32>
    %2 = tpu.matmul %0, %1, %cst {dimension_numbers = #tpu.dot_dimension_numbers<[1], [0], [0], [1], [0, 0, 1, 1], [], []>} : vector<16x128xf32>, vector<128x1024xf32>, vector<16x1024xf32> -> vector<16x1024xf32>
    %c0_3 = arith.constant 0 : index
    %c0_4 = arith.constant 0 : index
    %3 = vector.load %arg5[%c0_3, %c0_4] : memref<1x1024xf32, #tpu.memory_space<vmem>>, vector<1x1024xf32>
    %4 = vector.broadcast %3 : vector<1x1024xf32> to vector<16x1024xf32>
    %5 = arith.addf %2, %4 : vector<16x1024xf32>
    %cst_5 = arith.constant 0.000000e+00 : f32
    %6 = vector.broadcast %cst_5 : f32 to vector<16x1024xf32>
    %7 = arith.maximumf %5, %6 : vector<16x1024xf32>
    %cst_6 = arith.constant 1.000000e+00 : f32
    %8 = vector.broadcast %cst_6 : f32 to vector<8x16xf32>
    %cst_7 = arith.constant dense<0.000000e+00> : vector<8x1024xf32>
    %9 = tpu.matmul %8, %7, %cst_7 {dimension_numbers = #tpu.dot_dimension_numbers<[1], [0], [0], [1], [0, 0, 1, 1], [], []>} : vector<8x16xf32>, vector<16x1024xf32>, vector<8x1024xf32> -> vector<8x1024xf32>
    %10 = vector.extract_strided_slice %9 {offsets = [0, 0], sizes = [1, 1024], strides = [1, 1]} : vector<8x1024xf32> to vector<1x1024xf32>
    %11 = arith.mulf %7, %7 : vector<16x1024xf32>
    %cst_8 = arith.constant dense<0.000000e+00> : vector<8x1024xf32>
    %12 = tpu.matmul %8, %11, %cst_8 {dimension_numbers = #tpu.dot_dimension_numbers<[1], [0], [0], [1], [0, 0, 1, 1], [], []>} : vector<8x16xf32>, vector<16x1024xf32>, vector<8x1024xf32> -> vector<8x1024xf32>
    %13 = vector.extract_strided_slice %12 {offsets = [0, 0], sizes = [1, 1024], strides = [1, 1]} : vector<8x1024xf32> to vector<1x1024xf32>
    %14 = vector.shape_cast %10 : vector<1x1024xf32> to vector<1x1x1x1024xf32>
    %15 = vector.shape_cast %13 : vector<1x1024xf32> to vector<1x1x1x1024xf32>
    %cst_9 = arith.constant dense<0xFF800000> : vector<1024xf32>
    %16 = vector.multi_reduction <maximumf>, %7, %cst_9 [0] : vector<16x1024xf32> to vector<1024xf32>
    %17 = vector.shape_cast %16 : vector<1024xf32> to vector<1x1024xf32>
    %18 = vector.shape_cast %17 : vector<1x1024xf32> to vector<1x1x1x1024xf32>
    %cst_10 = arith.constant dense<0x7F800000> : vector<1024xf32>
    %19 = vector.multi_reduction <minimumf>, %7, %cst_10 [0] : vector<16x1024xf32> to vector<1024xf32>
    %20 = vector.shape_cast %19 : vector<1024xf32> to vector<1x1024xf32>
    %21 = vector.shape_cast %20 : vector<1x1024xf32> to vector<1x1x1x1024xf32>
    %c0_i32 = arith.constant 0 : i32
    %22 = arith.cmpi eq, %arg2, %c0_i32 : i32
    %23 = arith.extui %22 : i1 to i32
    %c0_i32_11 = arith.constant 0 : i32
    %24 = arith.cmpi ne, %23, %c0_i32_11 : i32
    scf.if %24 {
      %c0_14 = arith.constant 0 : index
      %c0_15 = arith.constant 0 : index
      %c0_16 = arith.constant 0 : index
      %c0_17 = arith.constant 0 : index
      %28 = vector.load %arg6[%c0_14, %c0_15, %c0_16, %c0_17] : memref<1x1x1x1024xf32, #tpu.memory_space<vmem>>, vector<1x1x1x1024xf32>
      tpu.vector_store %arg6[%c0_14, %c0_15, %c0_16, %c0_17], %18 {strides = array<i32>} : memref<1x1x1x1024xf32, #tpu.memory_space<vmem>>, vector<1x1x1x1024xf32>,
      %c0_18 = arith.constant 0 : index
      %c0_19 = arith.constant 0 : index
      %c0_20 = arith.constant 0 : index
      %c0_21 = arith.constant 0 : index
      %29 = vector.load %arg7[%c0_18, %c0_19, %c0_20, %c0_21] : memref<1x1x1x1024xf32, #tpu.memory_space<vmem>>, vector<1x1x1x1024xf32>
      tpu.vector_store %arg7[%c0_18, %c0_19, %c0_20, %c0_21], %21 {strides = array<i32>} : memref<1x1x1x1024xf32, #tpu.memory_space<vmem>>, vector<1x1x1x1024xf32>,
      %c0_22 = arith.constant 0 : index
      %c0_23 = arith.constant 0 : index
      %c0_24 = arith.constant 0 : index
      %c0_25 = arith.constant 0 : index
      %30 = vector.load %arg8[%c0_22, %c0_23, %c0_24, %c0_25] : memref<1x1x1x1024xf32, #tpu.memory_space<vmem>>, vector<1x1x1x1024xf32>
      tpu.vector_store %arg8[%c0_22, %c0_23, %c0_24, %c0_25], %14 {strides = array<i32>} : memref<1x1x1x1024xf32, #tpu.memory_space<vmem>>, vector<1x1x1x1024xf32>,
      %c0_26 = arith.constant 0 : index
      %c0_27 = arith.constant 0 : index
      %c0_28 = arith.constant 0 : index
      %c0_29 = arith.constant 0 : index
      %31 = vector.load %arg9[%c0_26, %c0_27, %c0_28, %c0_29] : memref<1x1x1x1024xf32, #tpu.memory_space<vmem>>, vector<1x1x1x1024xf32>
      tpu.vector_store %arg9[%c0_26, %c0_27, %c0_28, %c0_29], %15 {strides = array<i32>} : memref<1x1x1x1024xf32, #tpu.memory_space<vmem>>, vector<1x1x1x1024xf32>,
    } else {
    }
    %c0_i32_12 = arith.constant 0 : i32
    %25 = arith.cmpi sgt, %arg2, %c0_i32_12 : i32
    %26 = arith.extui %25 : i1 to i32
    %c0_i32_13 = arith.constant 0 : i32
    %27 = arith.cmpi ne, %26, %c0_i32_13 : i32
    scf.if %27 {
      %c0_14 = arith.constant 0 : index
      %c0_15 = arith.constant 0 : index
      %c0_16 = arith.constant 0 : index
      %c0_17 = arith.constant 0 : index
      %28 = vector.load %arg6[%c0_14, %c0_15, %c0_16, %c0_17] : memref<1x1x1x1024xf32, #tpu.memory_space<vmem>>, vector<1x1x1x1024xf32>
      %29 = arith.maximumf %28, %18 : vector<1x1x1x1024xf32>
      %c0_18 = arith.constant 0 : index
      %c0_19 = arith.constant 0 : index
      %c0_20 = arith.constant 0 : index
      %c0_21 = arith.constant 0 : index
      %30 = vector.load %arg6[%c0_18, %c0_19, %c0_20, %c0_21] : memref<1x1x1x1024xf32, #tpu.memory_space<vmem>>, vector<1x1x1x1024xf32>
      tpu.vector_store %arg6[%c0_18, %c0_19, %c0_20, %c0_21], %29 {strides = array<i32>} : memref<1x1x1x1024xf32, #tpu.memory_space<vmem>>, vector<1x1x1x1024xf32>,
      %c0_22 = arith.constant 0 : index
      %c0_23 = arith.constant 0 : index
      %c0_24 = arith.constant 0 : index
      %c0_25 = arith.constant 0 : index
      %31 = vector.load %arg7[%c0_22, %c0_23, %c0_24, %c0_25] : memref<1x1x1x1024xf32, #tpu.memory_space<vmem>>, vector<1x1x1x1024xf32>
      %32 = arith.minimumf %31, %21 : vector<1x1x1x1024xf32>
      %c0_26 = arith.constant 0 : index
      %c0_27 = arith.constant 0 : index
      %c0_28 = arith.constant 0 : index
      %c0_29 = arith.constant 0 : index
      %33 = vector.load %arg7[%c0_26, %c0_27, %c0_28, %c0_29] : memref<1x1x1x1024xf32, #tpu.memory_space<vmem>>, vector<1x1x1x1024xf32>
      tpu.vector_store %arg7[%c0_26, %c0_27, %c0_28, %c0_29], %32 {strides = array<i32>} : memref<1x1x1x1024xf32, #tpu.memory_space<vmem>>, vector<1x1x1x1024xf32>,
      %c0_30 = arith.constant 0 : index
      %c0_31 = arith.constant 0 : index
      %c0_32 = arith.constant 0 : index
      %c0_33 = arith.constant 0 : index
      %34 = vector.load %arg8[%c0_30, %c0_31, %c0_32, %c0_33] : memref<1x1x1x1024xf32, #tpu.memory_space<vmem>>, vector<1x1x1x1024xf32>
      %35 = arith.addf %34, %14 : vector<1x1x1x1024xf32>
      %c0_34 = arith.constant 0 : index
      %c0_35 = arith.constant 0 : index
      %c0_36 = arith.constant 0 : index
      %c0_37 = arith.constant 0 : index
      %36 = vector.load %arg8[%c0_34, %c0_35, %c0_36, %c0_37] : memref<1x1x1x1024xf32, #tpu.memory_space<vmem>>, vector<1x1x1x1024xf32>
      tpu.vector_store %arg8[%c0_34, %c0_35, %c0_36, %c0_37], %35 {strides = array<i32>} : memref<1x1x1x1024xf32, #tpu.memory_space<vmem>>, vector<1x1x1x1024xf32>,
      %c0_38 = arith.constant 0 : index
      %c0_39 = arith.constant 0 : index
      %c0_40 = arith.constant 0 : index
      %c0_41 = arith.constant 0 : index
      %37 = vector.load %arg9[%c0_38, %c0_39, %c0_40, %c0_41] : memref<1x1x1x1024xf32, #tpu.memory_space<vmem>>, vector<1x1x1x1024xf32>
      %38 = arith.addf %37, %15 : vector<1x1x1x1024xf32>
      %c0_42 = arith.constant 0 : index
      %c0_43 = arith.constant 0 : index
      %c0_44 = arith.constant 0 : index
      %c0_45 = arith.constant 0 : index
      %39 = vector.load %arg9[%c0_42, %c0_43, %c0_44, %c0_45] : memref<1x1x1x1024xf32, #tpu.memory_space<vmem>>, vector<1x1x1x1024xf32>
      tpu.vector_store %arg9[%c0_42, %c0_43, %c0_44, %c0_45], %38 {strides = array<i32>} : memref<1x1x1x1024xf32, #tpu.memory_space<vmem>>, vector<1x1x1x1024xf32>,
    } else {
    }
    return
  }
  func.func @transform_0(%arg0: i32, %arg1: i32, %arg2: i32) -> (i32, i32) {
    %c1_i32 = arith.constant 1 : i32
    %0 = arith.muli %arg1, %c1_i32 : i32
    %c1_i32_0 = arith.constant 1 : i32
    %1 = arith.muli %arg0, %c1_i32_0 : i32
    %2 = arith.addi %0, %1 : i32
    %3 = arith.addi %2, %arg2 : i32
    %c0_i32 = arith.constant 0 : i32
    %c0_i32_1 = arith.constant 0 : i32
    return %3, %c0_i32 : i32, i32
  }
  func.func @transform_1(%arg0: i32, %arg1: i32, %arg2: i32) -> (i32, i32) {
    %c0_i32 = arith.constant 0 : i32
    %c0_i32_0 = arith.constant 0 : i32
    %c0_i32_1 = arith.constant 0 : i32
    return %c0_i32, %c0_i32_0 : i32, i32
  }
  func.func @transform_2(%arg0: i32, %arg1: i32, %arg2: i32) -> (i32, i32) {
    %c0_i32 = arith.constant 0 : i32
    %c0_i32_0 = arith.constant 0 : i32
    %c0_i32_1 = arith.constant 0 : i32
    return %c0_i32, %c0_i32_0 : i32, i32
  }
  func.func @transform_3(%arg0: i32, %arg1: i32, %arg2: i32) -> (i32, i32, i32, i32) {
    %c0_i32 = arith.constant 0 : i32
    %c0_i32_0 = arith.constant 0 : i32
    %c0_i32_1 = arith.constant 0 : i32
    return %arg0, %arg1, %c0_i32, %c0_i32_0 : i32, i32, i32, i32
  }
  func.func @transform_4(%arg0: i32, %arg1: i32, %arg2: i32) -> (i32, i32, i32, i32) {
    %c0_i32 = arith.constant 0 : i32
    %c0_i32_0 = arith.constant 0 : i32
    %c0_i32_1 = arith.constant 0 : i32
    return %arg0, %arg1, %c0_i32, %c0_i32_0 : i32, i32, i32, i32
  }
  func.func @transform_5(%arg0: i32, %arg1: i32, %arg2: i32) -> (i32, i32, i32, i32) {
    %c0_i32 = arith.constant 0 : i32
    %c0_i32_0 = arith.constant 0 : i32
    %c0_i32_1 = arith.constant 0 : i32
    return %arg0, %arg1, %c0_i32, %c0_i32_0 : i32, i32, i32, i32
  }
  func.func @transform_6(%arg0: i32, %arg1: i32, %arg2: i32) -> (i32, i32, i32, i32) {
    %c0_i32 = arith.constant 0 : i32
    %c0_i32_0 = arith.constant 0 : i32
    %c0_i32_1 = arith.constant 0 : i32
    return %arg0, %arg1, %c0_i32, %c0_i32_0 : i32, i32, i32, i32
  }
}

module attributes {stable_mosaic.version = 11 : i64} {
  func.func @_head_kernel(%arg0: i32, %arg1: memref<2x1024xf32, #tpu.memory_space<vmem>>, %arg2: memref<1024x512xf32, #tpu.memory_space<vmem>>, %arg3: memref<1x512xf32, #tpu.memory_space<vmem>>, %arg4: memref<1x512xf32, #tpu.memory_space<vmem>>, %arg5: memref<1x512xf32, #tpu.memory_space<vmem>>, %arg6: memref<512x256xf32, #tpu.memory_space<vmem>>, %arg7: memref<1x256xf32, #tpu.memory_space<vmem>>, %arg8: memref<1x256xf32, #tpu.memory_space<vmem>>, %arg9: memref<1x256xf32, #tpu.memory_space<vmem>>, %arg10: memref<256x16xf32, #tpu.memory_space<vmem>>, %arg11: memref<1x16xf32, #tpu.memory_space<vmem>>, %arg12: memref<2x16xf32, #tpu.memory_space<vmem>>) attributes {dimension_semantics = [#tpu.dimension_semantics<arbitrary>], iteration_bounds = array<i64: 1>, scalar_prefetch = 0 : i64, scratch_operands = 0 : i64, tpu.core_type = #tpu.core_type<tc>, window_params = [{pipeline_mode = #tpu.pipeline_mode<synchronous>, transform_indices = @transform_0, window_bounds = array<i64: 2, 1024>}, {pipeline_mode = #tpu.pipeline_mode<synchronous>, transform_indices = @transform_1, window_bounds = array<i64: 1024, 512>}, {pipeline_mode = #tpu.pipeline_mode<synchronous>, transform_indices = @transform_2, window_bounds = array<i64: 1, 512>}, {pipeline_mode = #tpu.pipeline_mode<synchronous>, transform_indices = @transform_3, window_bounds = array<i64: 1, 512>}, {pipeline_mode = #tpu.pipeline_mode<synchronous>, transform_indices = @transform_4, window_bounds = array<i64: 1, 512>}, {pipeline_mode = #tpu.pipeline_mode<synchronous>, transform_indices = @transform_5, window_bounds = array<i64: 512, 256>}, {pipeline_mode = #tpu.pipeline_mode<synchronous>, transform_indices = @transform_6, window_bounds = array<i64: 1, 256>}, {pipeline_mode = #tpu.pipeline_mode<synchronous>, transform_indices = @transform_7, window_bounds = array<i64: 1, 256>}, {pipeline_mode = #tpu.pipeline_mode<synchronous>, transform_indices = @transform_8, window_bounds = array<i64: 1, 256>}, {pipeline_mode = #tpu.pipeline_mode<synchronous>, transform_indices = @transform_9, window_bounds = array<i64: 256, 16>}, {pipeline_mode = #tpu.pipeline_mode<synchronous>, transform_indices = @transform_10, window_bounds = array<i64: 1, 16>}, {pipeline_mode = #tpu.pipeline_mode<synchronous>, transform_indices = @transform_11, window_bounds = array<i64: 2, 16>}]} {
    %c0 = arith.constant 0 : index
    %c0_0 = arith.constant 0 : index
    %0 = vector.load %arg1[%c0, %c0_0] : memref<2x1024xf32, #tpu.memory_space<vmem>>, vector<2x1024xf32>
    %c0_1 = arith.constant 0 : index
    %c0_2 = arith.constant 0 : index
    %1 = vector.load %arg2[%c0_1, %c0_2] : memref<1024x512xf32, #tpu.memory_space<vmem>>, vector<1024x512xf32>
    %cst = arith.constant dense<0.000000e+00> : vector<2x512xf32>
    %2 = tpu.matmul %0, %1, %cst {dimension_numbers = #tpu.dot_dimension_numbers<[1], [0], [0], [1], [0, 0, 1, 1], [], []>} : vector<2x1024xf32>, vector<1024x512xf32>, vector<2x512xf32> -> vector<2x512xf32>
    %c0_3 = arith.constant 0 : index
    %c0_4 = arith.constant 0 : index
    %3 = vector.load %arg3[%c0_3, %c0_4] : memref<1x512xf32, #tpu.memory_space<vmem>>, vector<1x512xf32>
    %4 = vector.broadcast %3 : vector<1x512xf32> to vector<2x512xf32>
    %5 = arith.addf %2, %4 : vector<2x512xf32>
    %cst_5 = arith.constant 0.000000e+00 : f32
    %6 = vector.broadcast %cst_5 : f32 to vector<2x512xf32>
    %7 = arith.maximumf %5, %6 : vector<2x512xf32>
    %c0_6 = arith.constant 0 : index
    %c0_7 = arith.constant 0 : index
    %8 = vector.load %arg4[%c0_6, %c0_7] : memref<1x512xf32, #tpu.memory_space<vmem>>, vector<1x512xf32>
    %c0_8 = arith.constant 0 : index
    %c0_9 = arith.constant 0 : index
    %9 = vector.load %arg5[%c0_8, %c0_9] : memref<1x512xf32, #tpu.memory_space<vmem>>, vector<1x512xf32>
    %cst_10 = arith.constant dense<0.000000e+00> : vector<512xf32>
    %10 = vector.multi_reduction <add>, %7, %cst_10 [0] : vector<2x512xf32> to vector<512xf32>
    %11 = vector.shape_cast %10 : vector<512xf32> to vector<1x512xf32>
    %cst_11 = arith.constant 2.000000e+00 : f32
    %12 = vector.broadcast %cst_11 : f32 to vector<1x512xf32>
    %13 = arith.divf %11, %12 : vector<1x512xf32>
    %14 = vector.broadcast %13 : vector<1x512xf32> to vector<2x512xf32>
    %15 = arith.subf %7, %14 : vector<2x512xf32>
    %16 = arith.mulf %15, %15 : vector<2x512xf32>
    %cst_12 = arith.constant dense<0.000000e+00> : vector<512xf32>
    %17 = vector.multi_reduction <add>, %16, %cst_12 [0] : vector<2x512xf32> to vector<512xf32>
    %18 = vector.shape_cast %17 : vector<512xf32> to vector<1x512xf32>
    %cst_13 = arith.constant 2.000000e+00 : f32
    %19 = vector.broadcast %cst_13 : f32 to vector<1x512xf32>
    %20 = arith.divf %18, %19 : vector<1x512xf32>
    %21 = vector.broadcast %13 : vector<1x512xf32> to vector<2x512xf32>
    %22 = arith.subf %7, %21 : vector<2x512xf32>
    %cst_14 = arith.constant 9.99999974E-6 : f32
    %23 = vector.broadcast %cst_14 : f32 to vector<1x512xf32>
    %24 = arith.addf %20, %23 : vector<1x512xf32>
    %25 = math.rsqrt %24 : vector<1x512xf32>
    %26 = vector.broadcast %25 : vector<1x512xf32> to vector<2x512xf32>
    %27 = arith.mulf %22, %26 : vector<2x512xf32>
    %28 = vector.broadcast %8 : vector<1x512xf32> to vector<2x512xf32>
    %29 = arith.mulf %27, %28 : vector<2x512xf32>
    %30 = vector.broadcast %9 : vector<1x512xf32> to vector<2x512xf32>
    %31 = arith.addf %29, %30 : vector<2x512xf32>
    %c0_15 = arith.constant 0 : index
    %c0_16 = arith.constant 0 : index
    %32 = vector.load %arg6[%c0_15, %c0_16] : memref<512x256xf32, #tpu.memory_space<vmem>>, vector<512x256xf32>
    %cst_17 = arith.constant dense<0.000000e+00> : vector<2x256xf32>
    %33 = tpu.matmul %31, %32, %cst_17 {dimension_numbers = #tpu.dot_dimension_numbers<[1], [0], [0], [1], [0, 0, 1, 1], [], []>} : vector<2x512xf32>, vector<512x256xf32>, vector<2x256xf32> -> vector<2x256xf32>
    %c0_18 = arith.constant 0 : index
    %c0_19 = arith.constant 0 : index
    %34 = vector.load %arg7[%c0_18, %c0_19] : memref<1x256xf32, #tpu.memory_space<vmem>>, vector<1x256xf32>
    %35 = vector.broadcast %34 : vector<1x256xf32> to vector<2x256xf32>
    %36 = arith.addf %33, %35 : vector<2x256xf32>
    %cst_20 = arith.constant 0.000000e+00 : f32
    %37 = vector.broadcast %cst_20 : f32 to vector<2x256xf32>
    %38 = arith.maximumf %36, %37 : vector<2x256xf32>
    %c0_21 = arith.constant 0 : index
    %c0_22 = arith.constant 0 : index
    %39 = vector.load %arg8[%c0_21, %c0_22] : memref<1x256xf32, #tpu.memory_space<vmem>>, vector<1x256xf32>
    %c0_23 = arith.constant 0 : index
    %c0_24 = arith.constant 0 : index
    %40 = vector.load %arg9[%c0_23, %c0_24] : memref<1x256xf32, #tpu.memory_space<vmem>>, vector<1x256xf32>
    %cst_25 = arith.constant dense<0.000000e+00> : vector<256xf32>
    %41 = vector.multi_reduction <add>, %38, %cst_25 [0] : vector<2x256xf32> to vector<256xf32>
    %42 = vector.shape_cast %41 : vector<256xf32> to vector<1x256xf32>
    %cst_26 = arith.constant 2.000000e+00 : f32
    %43 = vector.broadcast %cst_26 : f32 to vector<1x256xf32>
    %44 = arith.divf %42, %43 : vector<1x256xf32>
    %45 = vector.broadcast %44 : vector<1x256xf32> to vector<2x256xf32>
    %46 = arith.subf %38, %45 : vector<2x256xf32>
    %47 = arith.mulf %46, %46 : vector<2x256xf32>
    %cst_27 = arith.constant dense<0.000000e+00> : vector<256xf32>
    %48 = vector.multi_reduction <add>, %47, %cst_27 [0] : vector<2x256xf32> to vector<256xf32>
    %49 = vector.shape_cast %48 : vector<256xf32> to vector<1x256xf32>
    %cst_28 = arith.constant 2.000000e+00 : f32
    %50 = vector.broadcast %cst_28 : f32 to vector<1x256xf32>
    %51 = arith.divf %49, %50 : vector<1x256xf32>
    %52 = vector.broadcast %44 : vector<1x256xf32> to vector<2x256xf32>
    %53 = arith.subf %38, %52 : vector<2x256xf32>
    %cst_29 = arith.constant 9.99999974E-6 : f32
    %54 = vector.broadcast %cst_29 : f32 to vector<1x256xf32>
    %55 = arith.addf %51, %54 : vector<1x256xf32>
    %56 = math.rsqrt %55 : vector<1x256xf32>
    %57 = vector.broadcast %56 : vector<1x256xf32> to vector<2x256xf32>
    %58 = arith.mulf %53, %57 : vector<2x256xf32>
    %59 = vector.broadcast %39 : vector<1x256xf32> to vector<2x256xf32>
    %60 = arith.mulf %58, %59 : vector<2x256xf32>
    %61 = vector.broadcast %40 : vector<1x256xf32> to vector<2x256xf32>
    %62 = arith.addf %60, %61 : vector<2x256xf32>
    %c0_30 = arith.constant 0 : index
    %c0_31 = arith.constant 0 : index
    %63 = vector.load %arg10[%c0_30, %c0_31] : memref<256x16xf32, #tpu.memory_space<vmem>>, vector<256x16xf32>
    %cst_32 = arith.constant dense<0.000000e+00> : vector<2x16xf32>
    %64 = tpu.matmul %62, %63, %cst_32 {dimension_numbers = #tpu.dot_dimension_numbers<[1], [0], [0], [1], [0, 0, 1, 1], [], []>} : vector<2x256xf32>, vector<256x16xf32>, vector<2x16xf32> -> vector<2x16xf32>
    %c0_33 = arith.constant 0 : index
    %c0_34 = arith.constant 0 : index
    %65 = vector.load %arg11[%c0_33, %c0_34] : memref<1x16xf32, #tpu.memory_space<vmem>>, vector<1x16xf32>
    %66 = vector.broadcast %65 : vector<1x16xf32> to vector<2x16xf32>
    %67 = arith.addf %64, %66 : vector<2x16xf32>
    %c0_35 = arith.constant 0 : index
    %c0_36 = arith.constant 0 : index
    %68 = vector.load %arg12[%c0_35, %c0_36] : memref<2x16xf32, #tpu.memory_space<vmem>>, vector<2x16xf32>
    tpu.vector_store %arg12[%c0_35, %c0_36], %67 {strides = array<i32>} : memref<2x16xf32, #tpu.memory_space<vmem>>, vector<2x16xf32>,
    return
  }
  func.func @transform_0(%arg0: i32) -> (i32, i32) {
    %c0_i32 = arith.constant 0 : i32
    %c0_i32_0 = arith.constant 0 : i32
    %c0_i32_1 = arith.constant 0 : i32
    return %c0_i32, %c0_i32_0 : i32, i32
  }
  func.func @transform_1(%arg0: i32) -> (i32, i32) {
    %c0_i32 = arith.constant 0 : i32
    %c0_i32_0 = arith.constant 0 : i32
    %c0_i32_1 = arith.constant 0 : i32
    return %c0_i32, %c0_i32_0 : i32, i32
  }
  func.func @transform_2(%arg0: i32) -> (i32, i32) {
    %c0_i32 = arith.constant 0 : i32
    %c0_i32_0 = arith.constant 0 : i32
    %c0_i32_1 = arith.constant 0 : i32
    return %c0_i32, %c0_i32_0 : i32, i32
  }
  func.func @transform_3(%arg0: i32) -> (i32, i32) {
    %c0_i32 = arith.constant 0 : i32
    %c0_i32_0 = arith.constant 0 : i32
    %c0_i32_1 = arith.constant 0 : i32
    return %c0_i32, %c0_i32_0 : i32, i32
  }
  func.func @transform_4(%arg0: i32) -> (i32, i32) {
    %c0_i32 = arith.constant 0 : i32
    %c0_i32_0 = arith.constant 0 : i32
    %c0_i32_1 = arith.constant 0 : i32
    return %c0_i32, %c0_i32_0 : i32, i32
  }
  func.func @transform_5(%arg0: i32) -> (i32, i32) {
    %c0_i32 = arith.constant 0 : i32
    %c0_i32_0 = arith.constant 0 : i32
    %c0_i32_1 = arith.constant 0 : i32
    return %c0_i32, %c0_i32_0 : i32, i32
  }
  func.func @transform_6(%arg0: i32) -> (i32, i32) {
    %c0_i32 = arith.constant 0 : i32
    %c0_i32_0 = arith.constant 0 : i32
    %c0_i32_1 = arith.constant 0 : i32
    return %c0_i32, %c0_i32_0 : i32, i32
  }
  func.func @transform_7(%arg0: i32) -> (i32, i32) {
    %c0_i32 = arith.constant 0 : i32
    %c0_i32_0 = arith.constant 0 : i32
    %c0_i32_1 = arith.constant 0 : i32
    return %c0_i32, %c0_i32_0 : i32, i32
  }
  func.func @transform_8(%arg0: i32) -> (i32, i32) {
    %c0_i32 = arith.constant 0 : i32
    %c0_i32_0 = arith.constant 0 : i32
    %c0_i32_1 = arith.constant 0 : i32
    return %c0_i32, %c0_i32_0 : i32, i32
  }
  func.func @transform_9(%arg0: i32) -> (i32, i32) {
    %c0_i32 = arith.constant 0 : i32
    %c0_i32_0 = arith.constant 0 : i32
    %c0_i32_1 = arith.constant 0 : i32
    return %c0_i32, %c0_i32_0 : i32, i32
  }
  func.func @transform_10(%arg0: i32) -> (i32, i32) {
    %c0_i32 = arith.constant 0 : i32
    %c0_i32_0 = arith.constant 0 : i32
    %c0_i32_1 = arith.constant 0 : i32
    return %c0_i32, %c0_i32_0 : i32, i32
  }
  func.func @transform_11(%arg0: i32) -> (i32, i32) {
    %c0_i32 = arith.constant 0 : i32
    %c0_i32_0 = arith.constant 0 : i32
    %c0_i32_1 = arith.constant 0 : i32
    return %c0_i32, %c0_i32_0 : i32, i32
  }
}

module attributes {stable_mosaic.version = 11 : i64} {
  func.func @_transform_kernel(%arg0: i32, %arg1: i32, %arg2: memref<1x4x16xf32, #tpu.memory_space<vmem>>, %arg3: memref<1x4x4xf32, #tpu.memory_space<vmem>>, %arg4: memref<1x4x16xf32, #tpu.memory_space<vmem>>) attributes {dimension_semantics = [#tpu.dimension_semantics<parallel>, #tpu.dimension_semantics<parallel>], iteration_bounds = array<i64: 2, 1>, scalar_prefetch = 0 : i64, scratch_operands = 0 : i64, tpu.core_type = #tpu.core_type<tc>, window_params = [{transform_indices = @transform_0, window_bounds = array<i64: 1, 4, 16>}, {transform_indices = @transform_1, window_bounds = array<i64: 1, 4, 4>}, {transform_indices = @transform_2, window_bounds = array<i64: 1, 4, 16>}]} {
    %c0 = arith.constant 0 : index
    %c0_0 = arith.constant 0 : index
    %c0_1 = arith.constant 0 : index
    %0 = vector.load %arg2[%c0, %c0_0, %c0_1] : memref<1x4x16xf32, #tpu.memory_space<vmem>>, vector<1x4x16xf32>
    %1 = vector.shape_cast %0 : vector<1x4x16xf32> to vector<4x16xf32>
    %c0_2 = arith.constant 0 : index
    %c0_3 = arith.constant 0 : index
    %c0_4 = arith.constant 0 : index
    %2 = vector.load %arg3[%c0_2, %c0_3, %c0_4] : memref<1x4x4xf32, #tpu.memory_space<vmem>>, vector<1x4x4xf32>
    %3 = vector.shape_cast %2 : vector<1x4x4xf32> to vector<4x4xf32>
    %4 = vector.extract_strided_slice %3 {offsets = [0, 0], sizes = [4, 1], strides = [1, 1]} : vector<4x4xf32> to vector<4x1xf32>
    %5 = vector.extract_strided_slice %1 {offsets = [0, 0], sizes = [1, 16], strides = [1, 1]} : vector<4x16xf32> to vector<1x16xf32>
    %6 = vector.broadcast %4 : vector<4x1xf32> to vector<4x16xf32>
    %7 = vector.broadcast %5 : vector<1x16xf32> to vector<4x16xf32>
    %8 = arith.mulf %6, %7 : vector<4x16xf32>
    %9 = vector.extract_strided_slice %3 {offsets = [0, 1], sizes = [4, 1], strides = [1, 1]} : vector<4x4xf32> to vector<4x1xf32>
    %10 = vector.extract_strided_slice %1 {offsets = [1, 0], sizes = [1, 16], strides = [1, 1]} : vector<4x16xf32> to vector<1x16xf32>
    %11 = vector.broadcast %9 : vector<4x1xf32> to vector<4x16xf32>
    %12 = vector.broadcast %10 : vector<1x16xf32> to vector<4x16xf32>
    %13 = arith.mulf %11, %12 : vector<4x16xf32>
    %14 = arith.addf %8, %13 : vector<4x16xf32>
    %15 = vector.extract_strided_slice %3 {offsets = [0, 2], sizes = [4, 1], strides = [1, 1]} : vector<4x4xf32> to vector<4x1xf32>
    %16 = vector.extract_strided_slice %1 {offsets = [2, 0], sizes = [1, 16], strides = [1, 1]} : vector<4x16xf32> to vector<1x16xf32>
    %17 = vector.broadcast %15 : vector<4x1xf32> to vector<4x16xf32>
    %18 = vector.broadcast %16 : vector<1x16xf32> to vector<4x16xf32>
    %19 = arith.mulf %17, %18 : vector<4x16xf32>
    %20 = arith.addf %14, %19 : vector<4x16xf32>
    %21 = vector.extract_strided_slice %3 {offsets = [0, 3], sizes = [4, 1], strides = [1, 1]} : vector<4x4xf32> to vector<4x1xf32>
    %22 = vector.extract_strided_slice %1 {offsets = [3, 0], sizes = [1, 16], strides = [1, 1]} : vector<4x16xf32> to vector<1x16xf32>
    %23 = vector.broadcast %21 : vector<4x1xf32> to vector<4x16xf32>
    %24 = vector.broadcast %22 : vector<1x16xf32> to vector<4x16xf32>
    %25 = arith.mulf %23, %24 : vector<4x16xf32>
    %26 = arith.addf %20, %25 : vector<4x16xf32>
    %27 = vector.shape_cast %26 : vector<4x16xf32> to vector<1x4x16xf32>
    %c0_5 = arith.constant 0 : index
    %c0_6 = arith.constant 0 : index
    %c0_7 = arith.constant 0 : index
    %28 = vector.load %arg4[%c0_5, %c0_6, %c0_7] : memref<1x4x16xf32, #tpu.memory_space<vmem>>, vector<1x4x16xf32>
    tpu.vector_store %arg4[%c0_5, %c0_6, %c0_7], %27 {strides = array<i32>} : memref<1x4x16xf32, #tpu.memory_space<vmem>>, vector<1x4x16xf32>,
    return
  }
  func.func @transform_0(%arg0: i32, %arg1: i32) -> (i32, i32, i32) {
    %c0_i32 = arith.constant 0 : i32
    %c0_i32_0 = arith.constant 0 : i32
    return %arg0, %c0_i32, %arg1 : i32, i32, i32
  }
  func.func @transform_1(%arg0: i32, %arg1: i32) -> (i32, i32, i32) {
    %c0_i32 = arith.constant 0 : i32
    %c0_i32_0 = arith.constant 0 : i32
    %c0_i32_1 = arith.constant 0 : i32
    return %arg0, %c0_i32, %c0_i32_0 : i32, i32, i32
  }
  func.func @transform_2(%arg0: i32, %arg1: i32) -> (i32, i32, i32) {
    %c0_i32 = arith.constant 0 : i32
    %c0_i32_0 = arith.constant 0 : i32
    return %arg0, %c0_i32, %arg1 : i32, i32, i32
  }
}

</mosaic_0001>

<bundles_post_ra>
// kernel: input_tnet.6
= control target key start
LH: loop header
LB: loop body
LE: loop exit
PB: predicated region body
PF: predicated region fallthrough
CT: control target
= control target key end

     0   :  { %vm78_vm0 = vcmask 261120   ;;  %v160_v37 = vmov 1.0   ;;  %s272_s1 = inlined_call_operand.vmem [shape: f32[128,128], index: 1, kind: input, shape index: {}]   ;;  %s273_s2 = inlined_call_operand.vmem [shape: f32[1,128], index: 2, kind: input, shape index: {}]   ;;  %s274_s0 = inlined_call_operand.vmem [shape: f32[32,128], index: 0, kind: input, shape index: {}]   ;;  %s275_s3 = inlined_call_operand.vmem [shape: f32[32,128], index: 3, kind: output, shape index: {0}]   ;;  %s276_s4 = inlined_call_operand.vmem [shape: f32[1,1,128], index: 4, kind: output, shape index: {1}]   ;;  %s277_s5 = inlined_call_operand.vmem [shape: f32[1,1,128], index: 5, kind: output, shape index: {2}]  }
   0x1   :  { %v36_v0 = vld [vmem:[%s272_s1 + $0x78] sm:$0xff]  ;;  %v35_v1 = vld [vmem:[%s272_s1 + $0x70] sm:$0xff]  ;;  %v34_v2 = vld [vmem:[%s272_s1 + $0x68] sm:$0xff] }
   0x2   :  { %142 = vmatpush.msra.mxu3 %v36_v0  ;;  %41 = vmatpush.msra.mxu0 %v36_v0  ;;  %v33_v3 = vld [vmem:[%s272_s1 + $0x60] sm:$0xff]  ;;  %v32_v4 = vld [vmem:[%s272_s1 + $0x58] sm:$0xff]  ;;  %v31_v5 = vld [vmem:[%s272_s1 + $0x50] sm:$0xff] }
   0x3   :  { %v30_v6 = vld [vmem:[%s272_s1 + $0x48] sm:$0xff]  ;;  %v29_v7 = vld [vmem:[%s272_s1 + $0x40] sm:$0xff]  ;;  %v28_v8 = vld [vmem:[%s272_s1 + $0x38] sm:$0xff] }
   0x4   :  { %143 = vmatpush.msra.mxu3 %v35_v1  ;;  %42 = vmatpush.msra.mxu0 %v35_v1  ;;  %v27_v9 = vld [vmem:[%s272_s1 + $0x30] sm:$0xff]  ;;  %v26_v10 = vld [vmem:[%s272_s1 + $0x28] sm:$0xff]  ;;  %v25_v11 = vld [vmem:[%s272_s1 + $0x20] sm:$0xff] }
   0x5   :  { %v24_v12 = vld [vmem:[%s272_s1 + $0x18] sm:$0xff]  ;;  %v23_v13 = vld [vmem:[%s272_s1 + $0x10] sm:$0xff]  ;;  %v22_v14 = vld [vmem:[%s272_s1 + $0x8] sm:$0xff] }
   0x6   :  { %144 = vmatpush.msra.mxu3 %v34_v2  ;;  %43 = vmatpush.msra.mxu0 %v34_v2  ;;  %v21_v15 = vld [vmem:[%s272_s1] sm:$0xff]  ;;  %v18_v16 = vld [vmem:[%s274_s0 + $0x8] sm:$0xff]  ;;  %v19_v18 = vld [vmem:[%s274_s0 + $0x10] sm:$0xff] }
   0x7   :  { %v17_v17 = vld [vmem:[%s274_s0] sm:$0xff]  ;;  %v20_v19 = vld [vmem:[%s274_s0 + $0x18] sm:$0xff] }
   0x8   :  { %145 = vmatpush.msra.mxu3 %v33_v3  ;;  %44 = vmatpush.msra.mxu0 %v33_v3  ;;  %v159_v20 = vld [vmem:[%s273_s2] ss:$0 sm:$0xff] }
   0xa   :  { %146 = vmatpush.msra.mxu3 %v32_v4  ;;  %45 = vmatpush.msra.mxu0 %v32_v4 }
   0xc   :  { %147 = vmatpush.msra.mxu3 %v31_v5  ;;  %46 = vmatpush.msra.mxu0 %v31_v5 }
   0xe   :  { %148 = vmatpush.msra.mxu3 %v30_v6  ;;  %47 = vmatpush.msra.mxu0 %v30_v6 }
  0x10   :  { %149 = vmatpush.msra.mxu3 %v29_v7  ;;  %48 = vmatpush.msra.mxu0 %v29_v7 }
  0x12   :  { %150 = vmatpush.msra.mxu3 %v28_v8  ;;  %49 = vmatpush.msra.mxu0 %v28_v8 }
  0x14   :  { %151 = vmatpush.msra.mxu3 %v27_v9  ;;  %50 = vmatpush.msra.mxu0 %v27_v9 }
  0x16   :  { %152 = vmatpush.msra.mxu3 %v26_v10  ;;  %51 = vmatpush.msra.mxu0 %v26_v10 }
  0x18   :  { %153 = vmatpush.msra.mxu3 %v25_v11  ;;  %52 = vmatpush.msra.mxu0 %v25_v11 }
  0x1a   :  { %154 = vmatpush.msra.mxu3 %v24_v12  ;;  %53 = vmatpush.msra.mxu0 %v24_v12 }
  0x1c   :  { %155 = vmatpush.msra.mxu3 %v23_v13  ;;  %54 = vmatpush.msra.mxu0 %v23_v13 }
  0x1e   :  { %156 = vmatpush.msra.mxu3 %v22_v14  ;;  %55 = vmatpush.msra.mxu0 %v22_v14 }
  0x20   :  { %157 = vmatpush.msra.mxu3 %v21_v15  ;;  %56 = vmatpush.msra.mxu0 %v21_v15 }
  0x21   :  { %60 = vmatmul.f32.vlgmr.msra.gmra.mxu3 %v18_v16  ;;  %57 = vmatmul.f32.vlgmr.msra.gmra.mxu0 %v17_v17 }
  0x29   :  { %63 = vmatmul.f32.gmra.mxu3 %v19_v18 }
  0x31   :  { %66 = vmatmul.f32.gmra.mxu3 %v20_v19 }
  0x9e   :  { %v58_v21 = vpop.f32.mrf.mxu0 }
  0x9f   :  { %v59_v22 = vadd.f32 %v159_v20, %v58_v21 }
  0xa1   :  { %v70_v23 = vmax.f32 %v59_v22, 0.0 }
  0xa3   :  { %74 = vst [vmem:[%s275_s3] sm:$0xff] %v70_v23  ;;  %v102_v36 = vmul.f32 %v70_v23, %v70_v23 }
  0xa4   :  { %v61_v24 = vpop.f32.mrf.mxu3 }
  0xa5   :  { %v62_v25 = vadd.f32 %v159_v20, %v61_v24 }
  0xa7   :  { %v71_v26 = vmax.f32 %v62_v25, 0.0 }
  0xa9   :  { %75 = vst [vmem:[%s275_s3 + $0x8] sm:$0xff] %v71_v26  ;;  %v103_v35 = vmul.f32 %v71_v26, %v71_v26 }
  0xac   :  { %v64_v27 = vpop.f32.mrf.mxu3 }
  0xad   :  { %v65_v28 = vadd.f32 %v159_v20, %v64_v27 }
  0xaf   :  { %v72_v29 = vmax.f32 %v65_v28, 0.0 }
  0xb1   :  { %76 = vst [vmem:[%s275_s3 + $0x10] sm:$0xff] %v72_v29  ;;  %v104_v34 = vmul.f32 %v72_v29, %v72_v29 }
  0xb4   :  { %v67_v30 = vpop.f32.mrf.mxu3 }
  0xb5   :  { %v68_v31 = vadd.f32 %v159_v20, %v67_v30 }
  0xb7   :  { %v73_v32 = vmax.f32 %v68_v31, 0.0 }
  0xb9   :  { %77 = vst [vmem:[%s275_s3 + $0x18] sm:$0xff] %v73_v32  ;;  %94 = vmatpush.msra.mxu1 %v73_v32  ;;  %v105_v33 = vmul.f32 %v73_v32, %v73_v32 }
  0xbb   :  { %95 = vmatpush.msra.mxu1 %v72_v29  ;;  %118 = vmatpush.msra.mxu2 %v105_v33 }
  0xbd   :  { %96 = vmatpush.msra.mxu1 %v71_v26  ;;  %119 = vmatpush.msra.mxu2 %v104_v34 }
  0xbf   :  { %97 = vmatpush.msra.mxu1 %v70_v23  ;;  %120 = vmatpush.msra.mxu2 %v103_v35 }
  0xc0   :  { %140 = vmatmul.msk.f32.vlgmr.msra.gmra.mxu1 %vm78_vm0, %v160_v37 }
  0xc1   :  { %121 = vmatpush.msra.mxu2 %v102_v36 }
  0xc2   :  { %141 = vmatmul.msk.f32.vlgmr.msra.gmra.mxu2 %vm78_vm0, %v160_v37 }
 0x13d   :  { %v99_v38 = vpop.f32.mrf.mxu1 }
 0x13e   :  { %126 = vst [vmem:[%s276_s4] sm:$0x1] %v99_v38 }
 0x145   :  { %v123_v39 = vpop.f32.mrf.mxu2 }
 0x146   :  { %127 = vst [vmem:[%s277_s5] sm:$0x1] %v123_v39 }

// kernel: input_tnet.5
= control target key start
LH: loop header
LB: loop body
LE: loop exit
PB: predicated region body
PF: predicated region fallthrough
CT: control target
= control target key end

     0   :  { %v223_v0 = vmov 0   ;;  %v224_v3 = vmov 2   ;;  %v225_v4 = vmov 1   ;;  %v226_v6 = vmov 3   ;;  %s294_s0 = inlined_call_operand.vmem [shape: f32[32,4], index: 0, kind: input, shape index: {}]   ;;  %s295_s2 = inlined_call_operand.vmem [shape: f32[1,128], index: 2, kind: input, shape index: {}]   ;;  %s296_s1 = inlined_call_operand.vmem [shape: f32[4,128], index: 1, kind: input, shape index: {}]   ;;  %s297_s3 = inlined_call_operand.vmem [shape: f32[32,128], index: 3, kind: output, shape index: {0}]   ;;  %s298_s4 = inlined_call_operand.vmem [shape: f32[1,1,128], index: 4, kind: output, shape index: {1}]   ;;  %s299_s5 = inlined_call_operand.vmem [shape: f32[1,1,128], index: 5, kind: output, shape index: {2}]  }
   0x1   :  { %209 = vset.pattern.permute.xlu1 %v223_v0  ;;  %207 = vset.pattern.permute.xlu0 %v223_v0  ;;  %v20_v1 = vld [vmem:[%s294_s0 + $0x18] sm:$0xff]  ;;  %v19_v2 = vld [vmem:[%s294_s0 + $0x10] sm:$0xff]  ;;  %v18_v5 = vld [vmem:[%s294_s0 + $0x8] sm:$0xff]  ;;  %vm138_vm0 = vcmask 261120  }
   0x2   :  { %211 = vset.pattern.permute.xlu2 %v224_v3  ;;  %39 = vperm.xlu0 %207, %v20_v1   ;;  %v17_v7 = vld [vmem:[%s294_s0] sm:$0xff] }
   0x3   :  { %34 = vperm.xlu1 %209, %v19_v2   ;;  %85 = vperm.xlu2 %211, %v20_v1   ;;  %v21_v13 = vld [vmem:[%s296_s1] sm:$0xf] }
   0x4   :  { %v42_v15 = vperm.slane %v21_v13, 0  ;;  %v63_v16 = vperm.slane %v21_v13, 1  ;;  %v88_v17 = vperm.slane %v21_v13, 2  ;;  %v113_v23 = vperm.slane %v21_v13, 3  ;;  %v222_v30 = vld [vmem:[%s295_s2] ss:$0 sm:$0xff] }
   0xa   :  { %208 = vset.pattern.permute.xlu0 %v225_v4 }
   0xb   :  { %210 = vset.pattern.permute.xlu1 %v225_v4  ;;  %212 = vset.pattern.permute.xlu2 %v223_v0 }
   0xc   :  { %60 = vperm.xlu0 %208, %v20_v1   ;;  %56 = vperm.xlu1 %210, %v19_v2  }
   0xd   :  { %29 = vperm.xlu2 %212, %v18_v5  }
  0x14   :  { %214 = vset.pattern.permute.xlu0 %v226_v6  ;;  %52 = vperm.xlu1 %210, %v18_v5  }
  0x15   :  { %110 = vperm.xlu0 %214, %v20_v1   ;;  %213 = vset.pattern.permute.xlu2 %v224_v3 }
  0x16   :  { %81 = vperm.xlu2 %213, %v19_v2  }
  0x1c   :  { %215 = vset.pattern.permute.xlu1 %v223_v0 }
  0x1d   :  { %24 = vperm.xlu1 %215, %v17_v7   ;;  %219 = vset.pattern.permute.xlu0 %v224_v3 }
  0x1e   :  { %216 = vset.pattern.permute.xlu2 %v225_v4  ;;  %73 = vperm.xlu0 %219, %v17_v7  }
  0x1f   :  { %48 = vperm.xlu2 %216, %v17_v7  }
  0x25   :  { %217 = vset.pattern.permute.xlu1 %v224_v3 }
  0x26   :  { %77 = vperm.xlu1 %217, %v18_v5   ;;  %221 = vset.pattern.permute.xlu0 %v226_v6 }
  0x27   :  { %218 = vset.pattern.permute.xlu2 %v226_v6 }
  0x28   :  { %106 = vperm.xlu2 %218, %v19_v2  }
  0x2e   :  { %220 = vset.pattern.permute.xlu1 %v226_v6  ;;  %v227_v6 = vmov 1.0  }
  0x2f   :  { %102 = vperm.xlu1 %220, %v18_v5  }
  0x30   :  { %98 = vperm.xlu2 %218, %v17_v7  }
  0x5d   :  { %v86_v8 = vpop.permute.xlu2 %85 }
  0x5e   :  { %v92_v33 = vmul.f32 %v88_v17, %v86_v8 }
  0x67   :  { %v30_v9 = vpop.permute.xlu2 %29 }
  0x68   :  { %v44_v59 = vmul.f32 %v42_v15, %v30_v9 }
  0x70   :  { %v82_v10 = vpop.permute.xlu2 %81 }
  0x71   :  { %v91_v20 = vmul.f32 %v88_v17, %v82_v10 }
  0x74   :  { %v40_v11 = vpop.permute.xlu0 %39 }
  0x75   :  { %v35_v12 = vpop.permute.xlu1 %34  ;;  %v46_v24 = vmul.f32 %v42_v15, %v40_v11 }
  0x76   :  { %v45_v21 = vmul.f32 %v42_v15, %v35_v12 }
  0x79   :  { %v49_v14 = vpop.permute.xlu2 %48 }
  0x7a   :  { %v64_v42 = vmul.f32 %v63_v16, %v49_v14 }
  0x7e   :  { %v61_v18 = vpop.permute.xlu0 %60  ;;  %v57_v19 = vpop.permute.xlu1 %56 }
  0x7f   :  { %v66_v22 = vmul.f32 %v63_v16, %v57_v19  ;;  %v67_v25 = vmul.f32 %v63_v16, %v61_v18 }
  0x81   :  { %v70_v26 = vadd.f32 %v66_v22, %v45_v21  ;;  %v71_v31 = vadd.f32 %v67_v25, %v46_v24 }
  0x82   :  { %v107_v27 = vpop.permute.xlu2 %106 }
  0x83   :  { %v95_v28 = vadd.f32 %v91_v20, %v70_v26  ;;  %v116_v29 = vmul.f32 %v113_v23, %v107_v27  ;;  %v96_v37 = vadd.f32 %v92_v33, %v71_v31 }
  0x85   :  { %v120_v32 = vadd.f32 %v116_v29, %v95_v28 }
  0x86   :  { %v53_v34 = vpop.permute.xlu1 %52 }
  0x87   :  { %v111_v35 = vpop.permute.xlu0 %110  ;;  %v128_v36 = vadd.f32 %v222_v30, %v120_v32  ;;  %v65_v58 = vmul.f32 %v63_v16, %v53_v34 }
  0x88   :  { %v117_v38 = vmul.f32 %v113_v23, %v111_v35 }
  0x89   :  { %v132_v39 = vmax.f32 %v128_v36, 0.0  ;;  %v69_v61 = vadd.f32 %v65_v58, %v44_v59 }
  0x8a   :  { %v121_v40 = vadd.f32 %v117_v38, %v96_v37  ;;  %v99_v45 = vpop.permute.xlu2 %98 }
  0x8b   :  { %136 = vst [vmem:[%s297_s3 + $0x10] sm:$0xff] %v132_v39  ;;  %v114_v51 = vmul.f32 %v113_v23, %v99_v45  ;;  %v164_v52 = vmul.f32 %v132_v39, %v132_v39 }
  0x8c   :  { %v129_v41 = vadd.f32 %v222_v30, %v121_v40 }
  0x8e   :  { %v133_v43 = vmax.f32 %v129_v41, 0.0 }
  0x8f   :  { %v25_v44 = vpop.permute.xlu1 %24 }
  0x90   :  { %v43_v46 = vmul.f32 %v42_v15, %v25_v44  ;;  %137 = vst [vmem:[%s297_s3 + $0x18] sm:$0xff] %v133_v43  ;;  %154 = vmatpush.msra.mxu0 %v133_v43  ;;  %v74_v47 = vpop.permute.xlu0 %73  ;;  %v165_v48 = vmul.f32 %v133_v43, %v133_v43 }
  0x91   :  { %v89_v49 = vmul.f32 %v88_v17, %v74_v47 }
  0x92   :  { %v68_v50 = vadd.f32 %v64_v42, %v43_v46  ;;  %155 = vmatpush.msra.mxu0 %v132_v39  ;;  %178 = vmatpush.msra.mxu1 %v165_v48 }
  0x94   :  { %v93_v53 = vadd.f32 %v89_v49, %v68_v50  ;;  %179 = vmatpush.msra.mxu1 %v164_v52 }
  0x96   :  { %v118_v54 = vadd.f32 %v114_v51, %v93_v53 }
  0x98   :  { %v78_v55 = vpop.permute.xlu1 %77  ;;  %v126_v56 = vadd.f32 %v222_v30, %v118_v54 }
  0x99   :  { %v90_v60 = vmul.f32 %v88_v17, %v78_v55 }
  0x9a   :  { %v130_v57 = vmax.f32 %v126_v56, 0.0 }
  0x9b   :  { %v94_v63 = vadd.f32 %v90_v60, %v69_v61 }
  0x9c   :  { %134 = vst [vmem:[%s297_s3] sm:$0xff] %v130_v57  ;;  %v162_v5 = vmul.f32 %v130_v57, %v130_v57 }
  0xa1   :  { %v103_v62 = vpop.permute.xlu1 %102 }
  0xa2   :  { %v115_v0 = vmul.f32 %v113_v23, %v103_v62 }
  0xa4   :  { %v119_v1 = vadd.f32 %v115_v0, %v94_v63 }
  0xa6   :  { %v127_v2 = vadd.f32 %v222_v30, %v119_v1 }
  0xa8   :  { %v131_v3 = vmax.f32 %v127_v2, 0.0 }
  0xaa   :  { %135 = vst [vmem:[%s297_s3 + $0x8] sm:$0xff] %v131_v3  ;;  %156 = vmatpush.msra.mxu0 %v131_v3  ;;  %v163_v4 = vmul.f32 %v131_v3, %v131_v3 }
  0xac   :  { %157 = vmatpush.msra.mxu0 %v130_v57  ;;  %180 = vmatpush.msra.mxu1 %v163_v4 }
  0xad   :  { %200 = vmatmul.msk.f32.vlgmr.msra.gmra.mxu0 %vm138_vm0, %v227_v6 }
  0xae   :  { %181 = vmatpush.msra.mxu1 %v162_v5 }
  0xaf   :  { %201 = vmatmul.msk.f32.vlgmr.msra.gmra.mxu1 %vm138_vm0, %v227_v6 }
 0x12a   :  { %v159_v7 = vpop.f32.mrf.mxu0 }
 0x12b   :  { %186 = vst [vmem:[%s298_s4] sm:$0x1] %v159_v7 }
 0x12c   :  { %v183_v8 = vpop.f32.mrf.mxu1 }
 0x12d   :  { %187 = vst [vmem:[%s299_s5] sm:$0x1] %v183_v8 }

// kernel: input_tnet.7
= control target key start
LH: loop header
LB: loop body
LE: loop exit
PB: predicated region body
PF: predicated region fallthrough
CT: control target
= control target key end

     0   :  { %s1713_s21 = smov 0   ;;  %s1715_s22 = smov 0   ;;  %s2387_s0 = inlined_call_operand.vmem [shape: f32[32,128], index: 0, kind: input, shape index: {}]   ;;  %s2388_s1 = inlined_call_operand.vmem [shape: f32[128,1024], index: 1, kind: input, shape index: {}]   ;;  %s2389_s2 = inlined_call_operand.vmem [shape: f32[1,1024], index: 2, kind: input, shape index: {}]   ;;  %s2390_s3 = inlined_call_operand.vmem [shape: f32[1,2,1,1024], index: 3, kind: output, shape index: {0}]   ;;  %s2391_s4 = inlined_call_operand.vmem [shape: f32[1,2,1,1024], index: 4, kind: output, shape index: {1}]   ;;  %s2392_s5 = inlined_call_operand.vmem [shape: f32[1,2,1,1024], index: 5, kind: output, shape index: {2}]   ;;  %s2393_s6 = inlined_call_operand.vmem [shape: f32[1,2,1,1024], index: 6, kind: output, shape index: {3}]  }
   0x1   :  { %s1717_s23 = smov 0  }
   0x2 LB: > { %s32_s24 = sadd.s32 1, %s1671_s22  ;;  %p1603_p0 = scmp.ge.s32.totalorder %s1675_s23, 1  ;;  %s1675_s23 = sphi %s1717_s23, %s17_s23   ;;  %s1671_s22 = sphi %s1715_s22, %s2396_s22   ;;  %s1667_s21 = sphi %s1713_s21, %s2395_s21  }
   0x3   : > { %p34_p1 = scmp.ge.s32.totalorder %s32_s24, 2  ;;  %p255_p2 = scmp.lt.s32.totalorder %s1675_s23, 3 }
   0x5   : > { %s2398_s24 = smov (%p34_p1, %s32_s24), 0  ;;  %p256_p3 = pnand %p1603_p0, %p255_p2 }
   0x6   : > { %s1604_s13 = sshll.u32 (!%p256_p3), %s1667_s21, 1  ;;  %p326_p5 = scmp.lt.s32.totalorder (!%p256_p3), %s1667_s21, 1 }
   0x7   : > { %259 = sbr.rel (%p256_p3) target bundleno = 386 (0x182), region = 32  ;;  %p1862_p4 = scmp.lt.s32.totalorder (!%p256_p3), %s1604_s13, 3 }
   0xc   : > { %v478_v0 = vld [vmem:[%s2388_s1 + $0x3c0] sm:$0xff]  ;;  %v479_v1 = vld [vmem:[%s2388_s1 + $0x3c8] sm:$0xff]  ;;  %v480_v2 = vld [vmem:[%s2388_s1 + $0x3d0] sm:$0xff]  ;;  %s2400_s13 = smov (!%p1862_p4, %s1604_s13), 3  ;;  %vm704_vm0 = vcmask 130048   ;;  %vm1175_vm1 = vcmask 1040384  }
   0xd   : > { %504 = vmatpush.msra.mxu0 %v478_v0  ;;  %527 = vmatpush.msra.mxu1 %v479_v1  ;;  %v481_v3 = vld [vmem:[%s2388_s1 + $0x3d8] sm:$0xff]  ;;  %v470_v4 = vld [vmem:[%s2388_s1 + $0x380] sm:$0xff]  ;;  %v471_v5 = vld [vmem:[%s2388_s1 + $0x388] sm:$0xff]  ;;  %s1605_s25 = sshll.u32 %s2400_s13, 3  ;;  %vm1177_vm2 = vcmask 1042434   ;;  %vm1179_vm3 = vcmask 1041408  }
   0xe   : > { %550 = vmatpush.msra.mxu2 %v480_v2  ;;  %573 = vmatpush.msra.mxu3 %v481_v3  ;;  %v472_v6 = vld [vmem:[%s2388_s1 + $0x390] sm:$0xff]  ;;  %v473_v7 = vld [vmem:[%s2388_s1 + $0x398] sm:$0xff]  ;;  %v462_v8 = vld [vmem:[%s2388_s1 + $0x340] sm:$0xff]  ;;  %s1942_s16 = scalar_lea.vmem %s2387_s0, %s1605_s25  ;;  %s2402_s21 = smov (!%p326_p5, %s1667_s21), 1  ;;  %vm1181_vm4 = vcmask 1044484   ;;  %vm1183_vm5 = vcmask 1046534  }
   0xf   : > { %505 = vmatpush.msra.mxu0 %v470_v4  ;;  %528 = vmatpush.msra.mxu1 %v471_v5  ;;  %v463_v9 = vld [vmem:[%s2388_s1 + $0x348] sm:$0xff]  ;;  %v464_v10 = vld [vmem:[%s2388_s1 + $0x350] sm:$0xff]  ;;  %v465_v11 = vld [vmem:[%s2388_s1 + $0x358] sm:$0xff]  ;;  %s2321_s9 = sshll.u32 %s2402_s21, 3  ;;  %vm1185_vm6 = vcmask 1045508   ;;  %vm1187_vm7 = vcmask 1043456  }
  0x10   : > { %551 = vmatpush.msra.mxu2 %v472_v6  ;;  %574 = vmatpush.msra.mxu3 %v473_v7  ;;  %v454_v12 = vld [vmem:[%s2388_s1 + $0x300] sm:$0xff]  ;;  %v455_v13 = vld [vmem:[%s2388_s1 + $0x308] sm:$0xff]  ;;  %v456_v14 = vld [vmem:[%s2388_s1 + $0x310] sm:$0xff]  ;;  %s331_s13 = scalar_lea.vmem %s2390_s3, %s2321_s9  ;;  %s339_s12 = scalar_lea.vmem %s2391_s4, %s2321_s9 }
  0x11   : > { %506 = vmatpush.msra.mxu0 %v462_v8  ;;  %529 = vmatpush.msra.mxu1 %v463_v9  ;;  %v457_v15 = vld [vmem:[%s2388_s1 + $0x318] sm:$0xff]  ;;  %v446_v16 = vld [vmem:[%s2388_s1 + $0x2c0] sm:$0xff]  ;;  %v447_v17 = vld [vmem:[%s2388_s1 + $0x2c8] sm:$0xff]  ;;  %s347_s17 = scalar_lea.vmem %s2392_s5, %s2321_s9  ;;  %s355_s20 = scalar_lea.vmem %s2393_s6, %s2321_s9 }
  0x12   : > { %552 = vmatpush.msra.mxu2 %v464_v10  ;;  %575 = vmatpush.msra.mxu3 %v465_v11  ;;  %v448_v18 = vld [vmem:[%s2388_s1 + $0x2d0] sm:$0xff]  ;;  %v449_v19 = vld [vmem:[%s2388_s1 + $0x2d8] sm:$0xff]  ;;  %v438_v20 = vld [vmem:[%s2388_s1 + $0x280] sm:$0xff] }
  0x13   : > { %507 = vmatpush.msra.mxu0 %v454_v12  ;;  %530 = vmatpush.msra.mxu1 %v455_v13  ;;  %v439_v21 = vld [vmem:[%s2388_s1 + $0x288] sm:$0xff]  ;;  %v440_v22 = vld [vmem:[%s2388_s1 + $0x290] sm:$0xff]  ;;  %v441_v23 = vld [vmem:[%s2388_s1 + $0x298] sm:$0xff] }
  0x14   : > { %553 = vmatpush.msra.mxu2 %v456_v14  ;;  %576 = vmatpush.msra.mxu3 %v457_v15  ;;  %v430_v24 = vld [vmem:[%s2388_s1 + $0x240] sm:$0xff]  ;;  %v431_v25 = vld [vmem:[%s2388_s1 + $0x248] sm:$0xff]  ;;  %v432_v26 = vld [vmem:[%s2388_s1 + $0x250] sm:$0xff] }
  0x15   : > { %508 = vmatpush.msra.mxu0 %v446_v16  ;;  %531 = vmatpush.msra.mxu1 %v447_v17  ;;  %v433_v27 = vld [vmem:[%s2388_s1 + $0x258] sm:$0xff]  ;;  %v422_v28 = vld [vmem:[%s2388_s1 + $0x200] sm:$0xff]  ;;  %v423_v29 = vld [vmem:[%s2388_s1 + $0x208] sm:$0xff] }
  0x16   : > { %554 = vmatpush.msra.mxu2 %v448_v18  ;;  %577 = vmatpush.msra.mxu3 %v449_v19  ;;  %v424_v30 = vld [vmem:[%s2388_s1 + $0x210] sm:$0xff]  ;;  %v425_v31 = vld [vmem:[%s2388_s1 + $0x218] sm:$0xff]  ;;  %v414_v32 = vld [vmem:[%s2388_s1 + $0x1c0] sm:$0xff] }
  0x17   : > { %509 = vmatpush.msra.mxu0 %v438_v20  ;;  %532 = vmatpush.msra.mxu1 %v439_v21  ;;  %v415_v33 = vld [vmem:[%s2388_s1 + $0x1c8] sm:$0xff]  ;;  %v416_v34 = vld [vmem:[%s2388_s1 + $0x1d0] sm:$0xff]  ;;  %v417_v35 = vld [vmem:[%s2388_s1 + $0x1d8] sm:$0xff] }
  0x18   : > { %555 = vmatpush.msra.mxu2 %v440_v22  ;;  %578 = vmatpush.msra.mxu3 %v441_v23  ;;  %v406_v36 = vld [vmem:[%s2388_s1 + $0x180] sm:$0xff]  ;;  %v407_v37 = vld [vmem:[%s2388_s1 + $0x188] sm:$0xff]  ;;  %v408_v38 = vld [vmem:[%s2388_s1 + $0x190] sm:$0xff] }
  0x19   : > { %510 = vmatpush.msra.mxu0 %v430_v24  ;;  %533 = vmatpush.msra.mxu1 %v431_v25  ;;  %v409_v39 = vld [vmem:[%s2388_s1 + $0x198] sm:$0xff]  ;;  %v398_v40 = vld [vmem:[%s2388_s1 + $0x140] sm:$0xff]  ;;  %v399_v41 = vld [vmem:[%s2388_s1 + $0x148] sm:$0xff] }
  0x1a   : > { %556 = vmatpush.msra.mxu2 %v432_v26  ;;  %579 = vmatpush.msra.mxu3 %v433_v27  ;;  %v400_v42 = vld [vmem:[%s2388_s1 + $0x150] sm:$0xff]  ;;  %v401_v43 = vld [vmem:[%s2388_s1 + $0x158] sm:$0xff]  ;;  %v390_v44 = vld [vmem:[%s2388_s1 + $0x100] sm:$0xff] }
  0x1b   : > { %511 = vmatpush.msra.mxu0 %v422_v28  ;;  %534 = vmatpush.msra.mxu1 %v423_v29  ;;  %v391_v45 = vld [vmem:[%s2388_s1 + $0x108] sm:$0xff]  ;;  %v392_v46 = vld [vmem:[%s2388_s1 + $0x110] sm:$0xff]  ;;  %v393_v47 = vld [vmem:[%s2388_s1 + $0x118] sm:$0xff] }
  0x1c   : > { %557 = vmatpush.msra.mxu2 %v424_v30  ;;  %580 = vmatpush.msra.mxu3 %v425_v31  ;;  %v382_v48 = vld [vmem:[%s2388_s1 + $0xc0] sm:$0xff]  ;;  %v383_v49 = vld [vmem:[%s2388_s1 + $0xc8] sm:$0xff]  ;;  %v384_v50 = vld [vmem:[%s2388_s1 + $0xd0] sm:$0xff] }
  0x1d   : > { %512 = vmatpush.msra.mxu0 %v414_v32  ;;  %535 = vmatpush.msra.mxu1 %v415_v33  ;;  %v385_v51 = vld [vmem:[%s2388_s1 + $0xd8] sm:$0xff]  ;;  %v374_v52 = vld [vmem:[%s2388_s1 + $0x80] sm:$0xff]  ;;  %v375_v53 = vld [vmem:[%s2388_s1 + $0x88] sm:$0xff] }
  0x1e   : > { %558 = vmatpush.msra.mxu2 %v416_v34  ;;  %581 = vmatpush.msra.mxu3 %v417_v35  ;;  %v376_v54 = vld [vmem:[%s2388_s1 + $0x90] sm:$0xff]  ;;  %v377_v55 = vld [vmem:[%s2388_s1 + $0x98] sm:$0xff]  ;;  %v366_v56 = vld [vmem:[%s2388_s1 + $0x40] sm:$0xff] }
  0x1f   : > { %513 = vmatpush.msra.mxu0 %v406_v36  ;;  %536 = vmatpush.msra.mxu1 %v407_v37  ;;  %v367_v57 = vld [vmem:[%s2388_s1 + $0x48] sm:$0xff]  ;;  %v368_v58 = vld [vmem:[%s2388_s1 + $0x50] sm:$0xff]  ;;  %v369_v59 = vld [vmem:[%s2388_s1 + $0x58] sm:$0xff] }
  0x20   : > { %559 = vmatpush.msra.mxu2 %v408_v38  ;;  %582 = vmatpush.msra.mxu3 %v409_v39  ;;  %v358_v60 = vld [vmem:[%s2388_s1] sm:$0xff]  ;;  %v359_v61 = vld [vmem:[%s2388_s1 + $0x8] sm:$0xff]  ;;  %v360_v62 = vld [vmem:[%s2388_s1 + $0x10] sm:$0xff] }
  0x21   : > { %514 = vmatpush.msra.mxu0 %v398_v40  ;;  %537 = vmatpush.msra.mxu1 %v399_v41  ;;  %v361_v63 = vld [vmem:[%s2388_s1 + $0x18] sm:$0xff]  ;;  %v482_v0 = vld [vmem:[%s2388_s1 + $0x3e0] sm:$0xff]  ;;  %v483_v1 = vld [vmem:[%s2388_s1 + $0x3e8] sm:$0xff] }
  0x22   : > { %560 = vmatpush.msra.mxu2 %v400_v42  ;;  %583 = vmatpush.msra.mxu3 %v401_v43  ;;  %v484_v2 = vld [vmem:[%s2388_s1 + $0x3f0] sm:$0xff]  ;;  %v485_v3 = vld [vmem:[%s2388_s1 + $0x3f8] sm:$0xff]  ;;  %v1957_v4 = vld [vmem:[%s1942_s16] sm:$0xff] }
  0x23   : > { %515 = vmatpush.msra.mxu0 %v390_v44  ;;  %538 = vmatpush.msra.mxu1 %v391_v45  ;;  %v474_v5 = vld [vmem:[%s2388_s1 + $0x3a0] sm:$0xff]  ;;  %v475_v6 = vld [vmem:[%s2388_s1 + $0x3a8] sm:$0xff]  ;;  %v476_v7 = vld [vmem:[%s2388_s1 + $0x3b0] sm:$0xff] }
  0x24   : > { %561 = vmatpush.msra.mxu2 %v392_v46  ;;  %584 = vmatpush.msra.mxu3 %v393_v47  ;;  %v477_v8 = vld [vmem:[%s2388_s1 + $0x3b8] sm:$0xff]  ;;  %v466_v9 = vld [vmem:[%s2388_s1 + $0x360] sm:$0xff]  ;;  %v467_v10 = vld [vmem:[%s2388_s1 + $0x368] sm:$0xff] }
  0x25   : > { %516 = vmatpush.msra.mxu0 %v382_v48  ;;  %539 = vmatpush.msra.mxu1 %v383_v49  ;;  %v468_v11 = vld [vmem:[%s2388_s1 + $0x370] sm:$0xff]  ;;  %v469_v12 = vld [vmem:[%s2388_s1 + $0x378] sm:$0xff]  ;;  %v458_v13 = vld [vmem:[%s2388_s1 + $0x320] sm:$0xff] }
  0x26   : > { %562 = vmatpush.msra.mxu2 %v384_v50  ;;  %585 = vmatpush.msra.mxu3 %v385_v51  ;;  %v459_v14 = vld [vmem:[%s2388_s1 + $0x328] sm:$0xff]  ;;  %v460_v15 = vld [vmem:[%s2388_s1 + $0x330] sm:$0xff]  ;;  %v461_v16 = vld [vmem:[%s2388_s1 + $0x338] sm:$0xff] }
  0x27   : > { %517 = vmatpush.msra.mxu0 %v374_v52  ;;  %540 = vmatpush.msra.mxu1 %v375_v53  ;;  %v450_v17 = vld [vmem:[%s2388_s1 + $0x2e0] sm:$0xff]  ;;  %v451_v18 = vld [vmem:[%s2388_s1 + $0x2e8] sm:$0xff]  ;;  %v452_v19 = vld [vmem:[%s2388_s1 + $0x2f0] sm:$0xff] }
  0x28   : > { %563 = vmatpush.msra.mxu2 %v376_v54  ;;  %586 = vmatpush.msra.mxu3 %v377_v55  ;;  %v453_v20 = vld [vmem:[%s2388_s1 + $0x2f8] sm:$0xff]  ;;  %v2011_v21 = vld [vmem:[%s1942_s16 + $0x8] sm:$0xff]  ;;  %v442_v22 = vld [vmem:[%s2388_s1 + $0x2a0] sm:$0xff] }
  0x29   : > { %518 = vmatpush.msra.mxu0 %v366_v56  ;;  %541 = vmatpush.msra.mxu1 %v367_v57  ;;  %v443_v23 = vld [vmem:[%s2388_s1 + $0x2a8] sm:$0xff]  ;;  %v444_v24 = vld [vmem:[%s2388_s1 + $0x2b0] sm:$0xff]  ;;  %v445_v25 = vld [vmem:[%s2388_s1 + $0x2b8] sm:$0xff] }
  0x2a   : > { %564 = vmatpush.msra.mxu2 %v368_v58  ;;  %587 = vmatpush.msra.mxu3 %v369_v59  ;;  %v434_v26 = vld [vmem:[%s2388_s1 + $0x260] sm:$0xff]  ;;  %v435_v27 = vld [vmem:[%s2388_s1 + $0x268] sm:$0xff]  ;;  %v436_v28 = vld [vmem:[%s2388_s1 + $0x270] sm:$0xff] }
  0x2b   : > { %519 = vmatpush.msra.mxu0 %v358_v60  ;;  %542 = vmatpush.msra.mxu1 %v359_v61  ;;  %v437_v29 = vld [vmem:[%s2388_s1 + $0x278] sm:$0xff]  ;;  %v426_v30 = vld [vmem:[%s2388_s1 + $0x220] sm:$0xff]  ;;  %v427_v31 = vld [vmem:[%s2388_s1 + $0x228] sm:$0xff] }
  0x2c   : > { %565 = vmatpush.msra.mxu2 %v360_v62  ;;  %588 = vmatpush.msra.mxu3 %v361_v63  ;;  %v428_v32 = vld [vmem:[%s2388_s1 + $0x230] sm:$0xff]  ;;  %v429_v33 = vld [vmem:[%s2388_s1 + $0x238] sm:$0xff]  ;;  %v418_v34 = vld [vmem:[%s2388_s1 + $0x1e0] sm:$0xff] }
  0x2d   : > { %596 = vmatpush.msrb.mxu0 %v482_v0  ;;  %619 = vmatpush.msrb.mxu1 %v483_v1  ;;  %v419_v35 = vld [vmem:[%s2388_s1 + $0x1e8] sm:$0xff]  ;;  %v420_v36 = vld [vmem:[%s2388_s1 + $0x1f0] sm:$0xff]  ;;  %v421_v37 = vld [vmem:[%s2388_s1 + $0x1f8] sm:$0xff] }
  0x2e   : > { %642 = vmatpush.msrb.mxu2 %v484_v2  ;;  %665 = vmatpush.msrb.mxu3 %v485_v3  ;;  %v410_v38 = vld [vmem:[%s2388_s1 + $0x1a0] sm:$0xff]  ;;  %v411_v39 = vld [vmem:[%s2388_s1 + $0x1a8] sm:$0xff]  ;;  %v412_v40 = vld [vmem:[%s2388_s1 + $0x1b0] sm:$0xff] }
  0x2f   : > { %566 = vmatmul.f32.vlgmr.msra.gmra.mxu2 %v1957_v4  ;;  %589 = vmatmul.f32.vlgmr.msra.gmra.mxu3 %v1957_v4  ;;  %v413_v41 = vld [vmem:[%s2388_s1 + $0x1b8] sm:$0xff]  ;;  %v402_v42 = vld [vmem:[%s2388_s1 + $0x160] sm:$0xff]  ;;  %v403_v43 = vld [vmem:[%s2388_s1 + $0x168] sm:$0xff] }
  0x30   : > { %597 = vmatpush.msrb.mxu0 %v474_v5  ;;  %620 = vmatpush.msrb.mxu1 %v475_v6  ;;  %v404_v44 = vld [vmem:[%s2388_s1 + $0x170] sm:$0xff]  ;;  %v405_v45 = vld [vmem:[%s2388_s1 + $0x178] sm:$0xff]  ;;  %v394_v46 = vld [vmem:[%s2388_s1 + $0x120] sm:$0xff] }
  0x31   : > { %643 = vmatpush.msrb.mxu2 %v476_v7  ;;  %666 = vmatpush.msrb.mxu3 %v477_v8  ;;  %v395_v47 = vld [vmem:[%s2388_s1 + $0x128] sm:$0xff]  ;;  %v396_v48 = vld [vmem:[%s2388_s1 + $0x130] sm:$0xff]  ;;  %v397_v49 = vld [vmem:[%s2388_s1 + $0x138] sm:$0xff] }
  0x32   : > { %598 = vmatpush.msrb.mxu0 %v466_v9  ;;  %621 = vmatpush.msrb.mxu1 %v467_v10  ;;  %v386_v50 = vld [vmem:[%s2388_s1 + $0xe0] sm:$0xff]  ;;  %v387_v51 = vld [vmem:[%s2388_s1 + $0xe8] sm:$0xff]  ;;  %v388_v52 = vld [vmem:[%s2388_s1 + $0xf0] sm:$0xff] }
  0x33   : > { %644 = vmatpush.msrb.mxu2 %v468_v11  ;;  %667 = vmatpush.msrb.mxu3 %v469_v12  ;;  %v389_v53 = vld [vmem:[%s2388_s1 + $0xf8] sm:$0xff]  ;;  %v378_v54 = vld [vmem:[%s2388_s1 + $0xa0] sm:$0xff]  ;;  %v379_v55 = vld [vmem:[%s2388_s1 + $0xa8] sm:$0xff] }
  0x34   : > { %599 = vmatpush.msrb.mxu0 %v458_v13  ;;  %622 = vmatpush.msrb.mxu1 %v459_v14  ;;  %v380_v56 = vld [vmem:[%s2388_s1 + $0xb0] sm:$0xff]  ;;  %v381_v57 = vld [vmem:[%s2388_s1 + $0xb8] sm:$0xff]  ;;  %v370_v58 = vld [vmem:[%s2388_s1 + $0x60] sm:$0xff] }
  0x35   : > { %645 = vmatpush.msrb.mxu2 %v460_v15  ;;  %668 = vmatpush.msrb.mxu3 %v461_v16  ;;  %v371_v59 = vld [vmem:[%s2388_s1 + $0x68] sm:$0xff]  ;;  %v372_v60 = vld [vmem:[%s2388_s1 + $0x70] sm:$0xff]  ;;  %v373_v61 = vld [vmem:[%s2388_s1 + $0x78] sm:$0xff] }
  0x36   : > { %543 = vmatmul.f32.vlgmr.msra.gmra.mxu1 %v1957_v4  ;;  %600 = vmatpush.msrb.mxu0 %v450_v17  ;;  %v362_v62 = vld [vmem:[%s2388_s1 + $0x20] sm:$0xff]  ;;  %v363_v63 = vld [vmem:[%s2388_s1 + $0x28] sm:$0xff]  ;;  %v364_v0 = vld [vmem:[%s2388_s1 + $0x30] sm:$0xff] }
  0x37   : > { %623 = vmatpush.msrb.mxu1 %v451_v18  ;;  %646 = vmatpush.msrb.mxu2 %v452_v19  ;;  %v365_v1 = vld [vmem:[%s2388_s1 + $0x38] sm:$0xff]  ;;  %v2161_v2 = vld [vmem:[%s2389_s2] sm:$0xff] }
  0x38   : > { %669 = vmatpush.msrb.mxu3 %v453_v20  ;;  %520 = vmatmul.f32.vlgmr.msra.gmra.mxu0 %v1957_v4  ;;  %v490_v7 = vperm.slane %v2161_v2, 2  ;;  %v489_v9 = vperm.slane %v2161_v2, 1  ;;  %v488_v10 = vperm.slane %v2161_v2, 0 }
  0x39   : > { %569 = vmatmul.f32.gmra.mxu2 %v2011_v21  ;;  %592 = vmatmul.f32.gmra.mxu3 %v2011_v21 }
  0x3a   : > { %601 = vmatpush.msrb.mxu0 %v442_v22  ;;  %624 = vmatpush.msrb.mxu1 %v443_v23 }
  0x3b   : > { %647 = vmatpush.msrb.mxu2 %v444_v24  ;;  %670 = vmatpush.msrb.mxu3 %v445_v25 }
  0x3c   : > { %602 = vmatpush.msrb.mxu0 %v434_v26  ;;  %625 = vmatpush.msrb.mxu1 %v435_v27 }
  0x3d   : > { %648 = vmatpush.msrb.mxu2 %v436_v28  ;;  %671 = vmatpush.msrb.mxu3 %v437_v29 }
  0x3e   : > { %603 = vmatpush.msrb.mxu0 %v426_v30  ;;  %626 = vmatpush.msrb.mxu1 %v427_v31 }
  0x3f   : > { %649 = vmatpush.msrb.mxu2 %v428_v32  ;;  %672 = vmatpush.msrb.mxu3 %v429_v33 }
  0x40   : > { %546 = vmatmul.f32.gmra.mxu1 %v2011_v21  ;;  %604 = vmatpush.msrb.mxu0 %v418_v34 }
  0x41   : > { %627 = vmatpush.msrb.mxu1 %v419_v35  ;;  %650 = vmatpush.msrb.mxu2 %v420_v36 }
  0x42   : > { %673 = vmatpush.msrb.mxu3 %v421_v37  ;;  %523 = vmatmul.f32.gmra.mxu0 %v2011_v21 }
  0x43   : > { %605 = vmatpush.msrb.mxu0 %v410_v38  ;;  %628 = vmatpush.msrb.mxu1 %v411_v39 }
  0x44   : > { %651 = vmatpush.msrb.mxu2 %v412_v40  ;;  %674 = vmatpush.msrb.mxu3 %v413_v41 }
  0x45   : > { %606 = vmatpush.msrb.mxu0 %v402_v42  ;;  %629 = vmatpush.msrb.mxu1 %v403_v43 }
  0x46   : > { %652 = vmatpush.msrb.mxu2 %v404_v44  ;;  %675 = vmatpush.msrb.mxu3 %v405_v45 }
  0x47   : > { %607 = vmatpush.msrb.mxu0 %v394_v46  ;;  %630 = vmatpush.msrb.mxu1 %v395_v47 }
  0x48   : > { %653 = vmatpush.msrb.mxu2 %v396_v48  ;;  %676 = vmatpush.msrb.mxu3 %v397_v49 }
  0x49   : > { %608 = vmatpush.msrb.mxu0 %v386_v50  ;;  %631 = vmatpush.msrb.mxu1 %v387_v51 }
  0x4a   : > { %654 = vmatpush.msrb.mxu2 %v388_v52  ;;  %677 = vmatpush.msrb.mxu3 %v389_v53  ;;  %v1677_v53 = vmov 1.0  }
  0x4b   : > { %609 = vmatpush.msrb.mxu0 %v378_v54  ;;  %632 = vmatpush.msrb.mxu1 %v379_v55 }
  0x4c   : > { %655 = vmatpush.msrb.mxu2 %v380_v56  ;;  %678 = vmatpush.msrb.mxu3 %v381_v57 }
  0x4d   : > { %610 = vmatpush.msrb.mxu0 %v370_v58  ;;  %633 = vmatpush.msrb.mxu1 %v371_v59 }
  0x4e   : > { %656 = vmatpush.msrb.mxu2 %v372_v60  ;;  %679 = vmatpush.msrb.mxu3 %v373_v61 }
  0x4f   : > { %611 = vmatpush.msrb.mxu0 %v362_v62  ;;  %634 = vmatpush.msrb.mxu1 %v363_v63 }
  0x50   : > { %657 = vmatpush.msrb.mxu2 %v364_v0  ;;  %680 = vmatpush.msrb.mxu3 %v365_v1 }
  0x51   : > { %612 = vmatmul.f32.vlgmr.msrb.gmra.mxu0 %v1957_v4  ;;  %635 = vmatmul.f32.vlgmr.msrb.gmra.mxu1 %v1957_v4 }
  0x52   : > { %658 = vmatmul.f32.vlgmr.msrb.gmra.mxu2 %v1957_v4  ;;  %681 = vmatmul.f32.vlgmr.msrb.gmra.mxu3 %v1957_v4  ;;  %v491_v4 = vperm.slane %v2161_v2, 3 }
  0x59   : > { %615 = vmatmul.f32.gmra.mxu0 %v2011_v21  ;;  %638 = vmatmul.f32.gmra.mxu1 %v2011_v21 }
  0x5a   : > { %661 = vmatmul.f32.gmra.mxu2 %v2011_v21  ;;  %684 = vmatmul.f32.gmra.mxu3 %v2011_v21 }
  0xb2   : > { %v567_v3 = vpop.f32.mrf.mxu2  ;;  %v590_v5 = vpop.f32.mrf.mxu3 }
  0xb3   : > { %v544_v6 = vpop.f32.mrf.mxu1  ;;  %v568_v11 = vadd.f32 %v567_v3, %v490_v7  ;;  %v591_v12 = vadd.f32 %v590_v5, %v491_v4 }
  0xb4   : > { %v545_v13 = vadd.f32 %v544_v6, %v489_v9 }
  0xb5   : > { %v521_v8 = vpop.f32.mrf.mxu0  ;;  %v2167_v17 = vmax.f32 %v568_v11, 0.0  ;;  %v2169_v18 = vmax.f32 %v591_v12, 0.0 }
  0xb6   : > { %v522_v14 = vadd.f32 %v521_v8, %v488_v10  ;;  %v2171_v22 = vmax.f32 %v545_v13, 0.0 }
  0xb8   : > { %v2177_v27 = vmax.f32 %v522_v14, 0.0 }
  0xbc   : > { %v570_v15 = vpop.f32.mrf.mxu2  ;;  %v593_v16 = vpop.f32.mrf.mxu3 }
  0xbd   : > { %v547_v19 = vpop.f32.mrf.mxu1  ;;  %v571_v20 = vadd.f32 %v570_v15, %v490_v7  ;;  %v594_v21 = vadd.f32 %v593_v16, %v491_v4 }
  0xbe   : > { %v548_v23 = vadd.f32 %v547_v19, %v489_v9  ;;  %v492_v9 = vperm.slane %v2161_v2, 4 }
  0xbf   : > { %v2173_v24 = vmax.f32 %v571_v20, 0.0  ;;  %v2175_v25 = vmax.f32 %v594_v21, 0.0  ;;  %v524_v26 = vpop.f32.mrf.mxu0  ;;  %v494_v21 = vperm.slane %v2161_v2, 6 }
  0xc0   : > { %v2179_v28 = vmax.f32 %v548_v23, 0.0  ;;  %v525_v29 = vadd.f32 %v524_v26, %v488_v10  ;;  %v493_v10 = vperm.slane %v2161_v2, 5  ;;  %v495_v23 = vperm.slane %v2161_v2, 7 }
  0xc1   : > { %v1058_v30 = vmax.f32 %v2167_v17, %v2173_v24  ;;  %v1114_v31 = vmin.f32 %v2167_v17, %v2173_v24  ;;  %v1065_v32 = vmax.f32 %v2169_v18, %v2175_v25  ;;  %v1121_v33 = vmin.f32 %v2169_v18, %v2175_v25  ;;  %762 = vmatpush.msra.mxu2 %v2173_v24 }
  0xc2   : > { %v1051_v34 = vmax.f32 %v2171_v22, %v2179_v28  ;;  %v1107_v35 = vmin.f32 %v2171_v22, %v2179_v28  ;;  %v2194_v36 = vmax.f32 %v525_v29, 0.0  ;;  %782 = vmatpush.msra.mxu3 %v2175_v25  ;;  %742 = vmatpush.msra.mxu1 %v2179_v28 }
  0xc3   : > { %v1059_v37 = vrot.slane %v1058_v30, 4  ;;  %v1115_v38 = vrot.slane %v1114_v31, 4  ;;  %v1066_v39 = vrot.slane %v1065_v32, 4  ;;  %v1122_v40 = vrot.slane %v1121_v33, 4  ;;  %763 = vmatpush.msra.mxu2 %v2167_v17 }
  0xc4   : > { %v1052_v41 = vrot.slane %v1051_v34, 4  ;;  %v1108_v42 = vrot.slane %v1107_v35, 4  ;;  %v1044_v43 = vmax.f32 %v2177_v27, %v2194_v36  ;;  %v1100_v44 = vmin.f32 %v2177_v27, %v2194_v36  ;;  %783 = vmatpush.msra.mxu3 %v2169_v18  ;;  %722 = vmatpush.msra.mxu0 %v2194_v36 }
  0xc5   : > { %v1060_v45 = vmax.f32 %v1058_v30, %v1059_v37  ;;  %v1116_v46 = vmin.f32 %v1114_v31, %v1115_v38  ;;  %v1067_v47 = vmax.f32 %v1065_v32, %v1066_v39  ;;  %v1123_v48 = vmin.f32 %v1121_v33, %v1122_v40  ;;  %743 = vmatpush.msra.mxu1 %v2171_v22 }
  0xc6   : > { %v1053_v49 = vmax.f32 %v1051_v34, %v1052_v41  ;;  %v1109_v50 = vmin.f32 %v1107_v35, %v1108_v42  ;;  %v1045_v51 = vrot.slane %v1044_v43, 4  ;;  %v1101_v52 = vrot.slane %v1100_v44, 4  ;;  %723 = vmatpush.msra.mxu0 %v2177_v27  ;;  %1611 = vmatmul.msk.f32.vlgmr.msra.gmra.mxu1 %vm704_vm0, %v1677_v53 }
  0xc7   : > { %1610 = vmatmul.msk.f32.vlgmr.msra.gmra.mxu0 %vm704_vm0, %v1677_v53  ;;  %1612 = vmatmul.msk.f32.vlgmr.msra.gmra.mxu2 %vm704_vm0, %v1677_v53  ;;  %v1061_v55 = vrot.slane %v1060_v45, 2  ;;  %v1068_v56 = vrot.slane %v1067_v47, 2  ;;  %v1117_v60 = vrot.slane %v1116_v46, 2  ;;  %v1124_v61 = vrot.slane %v1123_v48, 2 }
  0xc8   : > { %v1054_v54 = vrot.slane %v1053_v49, 2  ;;  %v1046_v57 = vmax.f32 %v1044_v43, %v1045_v51  ;;  %1613 = vmatmul.msk.f32.vlgmr.msra.gmra.mxu3 %vm704_vm0, %v1677_v53  ;;  %v1110_v58 = vrot.slane %v1109_v50, 2  ;;  %v1102_v59 = vmin.f32 %v1100_v44, %v1101_v52 }
  0xc9   : > { %v1062_v63 = vmax.f32 %v1060_v45, %v1061_v55  ;;  %v1069_v0 = vmax.f32 %v1067_v47, %v1068_v56  ;;  %v1118_v6 = vmin.f32 %v1116_v46, %v1117_v60  ;;  %v1125_v7 = vmin.f32 %v1123_v48, %v1124_v61 }
  0xca   : > { %v1055_v62 = vmax.f32 %v1053_v49, %v1054_v54  ;;  %v1047_v1 = vrot.slane %v1046_v57, 2  ;;  %v1111_v3 = vmin.f32 %v1109_v50, %v1110_v58  ;;  %v1103_v5 = vrot.slane %v1102_v59, 2 }
  0xcb   : > { %v1063_v12 = vrot.slane %v1062_v63, 1  ;;  %v1070_v13 = vrot.slane %v1069_v0, 1  ;;  %v1119_v19 = vrot.slane %v1118_v6, 1  ;;  %v1126_v20 = vrot.slane %v1125_v7, 1 }
  0xcc   : > { %v1056_v11 = vrot.slane %v1055_v62, 1  ;;  %v1048_v14 = vmax.f32 %v1046_v57, %v1047_v1  ;;  %v1112_v15 = vrot.slane %v1111_v3, 1  ;;  %v1104_v16 = vmin.f32 %v1102_v59, %v1103_v5 }
  0xcd   : > { %v2221_v30 = vmul.f32 %v2167_v17, %v2167_v17  ;;  %v2225_v31 = vmul.f32 %v2169_v18, %v2169_v18  ;;  %v2227_v33 = vmax.f32 %v1062_v63, %v1063_v12  ;;  %v2229_v34 = vmax.f32 %v1069_v0, %v1070_v13 }
  0xce   : > { %v613_v4 = vpop.f32.mrf.mxu0  ;;  %v636_v8 = vpop.f32.mrf.mxu1  ;;  %v1057_v32 = vmax.f32 %v1055_v62, %v1056_v11  ;;  %v1049_v35 = vrot.slane %v1048_v14, 1  ;;  %v2231_v37 = vmin.f32 %v1111_v3, %v1112_v15  ;;  %v1105_v38 = vrot.slane %v1104_v16, 1 }
  0xcf   : > { %v614_v26 = vadd.f32 %v613_v4, %v492_v9  ;;  %v637_v29 = vadd.f32 %v636_v8, %v493_v10  ;;  %v868_v40 = vmul.f32 %v2177_v27, %v2177_v27  ;;  %v869_v17 = vmul.f32 %v2171_v22, %v2171_v22 }
  0xd0   : > { %v2237_v41 = vmin.f32 %v1118_v6, %v1119_v19  ;;  %v2239_v18 = vmin.f32 %v1125_v7, %v1126_v20  ;;  %v877_v44 = vmul.f32 %v2179_v28, %v2179_v28  ;;  %v1168_v49 = vrot.slane %v1057_v32, 7 }
  0xd1   : > { %v692_v45 = vmax.f32 %v614_v26, 0.0  ;;  %v693_v46 = vmax.f32 %v637_v29, 0.0  ;;  %v1169_v27 = vrot.slane %v2227_v33, 6  ;;  %v1170_v50 = vrot.slane %v2229_v34, 5 }
  0xd2   : > { %v1050_v22 = vmax.f32 %v1048_v14, %v1049_v35  ;;  %v1199_v51 = vrot.slane %v2231_v37, 7  ;;  %v2246_v52 = vmin.f32 %v1104_v16, %v1105_v38  ;;  %v876_v28 = vmul.f32 %v2194_v36, %v2194_v36 }
  0xd3   : > { %v2252_v58 = vmul.f32 %v2173_v24, %v2173_v24  ;;  %v872_v63 = vmul.f32 %v692_v45, %v692_v45  ;;  %v873_v0 = vmul.f32 %v693_v46, %v693_v46  ;;  %v2256_v1 = vmul.f32 %v2175_v25, %v2175_v25 }
  0xd4   : > { %v2259_v3 = vsel %vm1175_vm1, %v1050_v22, %v1168_v49  ;;  %v1200_v37 = vrot.slane %v2237_v41, 6 }
  0xd5   : > { %v659_v2 = vpop.f32.mrf.mxu2  ;;  %v682_v39 = vpop.f32.mrf.mxu3 }
  0xd6   : > { %v616_v42 = vpop.f32.mrf.mxu0  ;;  %v639_v43 = vpop.f32.mrf.mxu1  ;;  %v660_v56 = vadd.f32 %v659_v2, %v494_v21  ;;  %v683_v57 = vadd.f32 %v682_v39, %v495_v23 }
  0xd7   : > { %v617_v47 = vadd.f32 %v616_v42, %v492_v9  ;;  %v640_v48 = vadd.f32 %v639_v43, %v493_v10 }
  0xd8   : > { %v694_v8 = vmax.f32 %v660_v56, 0.0  ;;  %v2261_v9 = vmax.f32 %v683_v57, 0.0 }
  0xd9   : > { %v700_v54 = vmax.f32 %v617_v47, 0.0  ;;  %v701_v55 = vmax.f32 %v640_v48, 0.0 }
  0xdb   : > { %v1072_v59 = vmax.f32 %v692_v45, %v700_v54  ;;  %v1128_v60 = vmin.f32 %v692_v45, %v700_v54  ;;  %v1079_v61 = vmax.f32 %v693_v46, %v701_v55  ;;  %v1135_v62 = vmin.f32 %v693_v46, %v701_v55  ;;  %802 = vmatpush.msrb.mxu0 %v700_v54 }
  0xdc   : > { %822 = vmatpush.msrb.mxu1 %v701_v55  ;;  %v880_v19 = vmul.f32 %v700_v54, %v700_v54  ;;  %v881_v20 = vmul.f32 %v701_v55, %v701_v55 }
  0xdd   : > { %v1073_v36 = vrot.slane %v1072_v59, 4  ;;  %v1129_v5 = vrot.slane %v1128_v60, 4  ;;  %v1080_v24 = vrot.slane %v1079_v61, 4  ;;  %v1136_v6 = vrot.slane %v1135_v62, 4  ;;  %v662_v7 = vpop.f32.mrf.mxu2  ;;  %v685_v4 = vpop.f32.mrf.mxu3  ;;  %803 = vmatpush.msrb.mxu0 %v692_v45 }
  0xde   : > { %v663_v10 = vadd.f32 %v662_v7, %v494_v21  ;;  %v686_v11 = vadd.f32 %v685_v4, %v495_v23  ;;  %823 = vmatpush.msrb.mxu1 %v693_v46  ;;  %1614 = vmatmul.msk.f32.vlgmr.msrb.gmra.mxu0 %vm704_vm0, %v1677_v53 }
  0xdf   : > { %898 = vmatpush.msra.mxu0 %v876_v28  ;;  %v1074_v25 = vmax.f32 %v1072_v59, %v1073_v36  ;;  %v1130_v12 = vmin.f32 %v1128_v60, %v1129_v5  ;;  %v1081_v13 = vmax.f32 %v1079_v61, %v1080_v24  ;;  %v1137_v14 = vmin.f32 %v1135_v62, %v1136_v6 }
  0xe0   : > { %918 = vmatpush.msra.mxu1 %v877_v44  ;;  %v2263_v15 = vmax.f32 %v663_v10, 0.0  ;;  %v2265_v16 = vmax.f32 %v686_v11, 0.0  ;;  %v874_v59 = vmul.f32 %v694_v8, %v694_v8  ;;  %v2286_v60 = vsel %vm1175_vm1, %v2246_v52, %v1199_v51 }
  0xe1   : > { %899 = vmatpush.msra.mxu0 %v868_v40  ;;  %1615 = vmatmul.msk.f32.vlgmr.msrb.gmra.mxu1 %vm704_vm0, %v1677_v53  ;;  %v1075_v26 = vrot.slane %v1074_v25, 2  ;;  %v1131_v21 = vrot.slane %v1130_v12, 2  ;;  %v1082_v23 = vrot.slane %v1081_v13, 2  ;;  %v1138_v29 = vrot.slane %v1137_v14, 2 }
  0xe2   : > { %919 = vmatpush.msra.mxu1 %v869_v17  ;;  %v1086_v32 = vmax.f32 %v694_v8, %v2263_v15  ;;  %v1142_v35 = vmin.f32 %v694_v8, %v2263_v15  ;;  %v1093_v38 = vmax.f32 %v2261_v9, %v2265_v16  ;;  %v1149_v2 = vmin.f32 %v2261_v9, %v2265_v16 }
  0xe3   : > { %842 = vmatpush.msrb.mxu2 %v2263_v15  ;;  %v1076_v39 = vmax.f32 %v1074_v25, %v1075_v26  ;;  %v1132_v40 = vmin.f32 %v1130_v12, %v1131_v21  ;;  %v1083_v42 = vmax.f32 %v1081_v13, %v1082_v23  ;;  %v1139_v43 = vmin.f32 %v1137_v14, %v1138_v29 }
  0xe4   : > { %862 = vmatpush.msrb.mxu3 %v2265_v16  ;;  %v1087_v17 = vrot.slane %v1086_v32, 4  ;;  %v1143_v44 = vrot.slane %v1142_v35, 4  ;;  %v1094_v45 = vrot.slane %v1093_v38, 4  ;;  %v1150_v46 = vrot.slane %v1149_v2, 4  ;;  %978 = vmatpush.msrb.mxu0 %v880_v19 }
  0xe5   : > { %998 = vmatpush.msrb.mxu1 %v881_v20  ;;  %v1077_v47 = vrot.slane %v1076_v39, 1  ;;  %v1133_v48 = vrot.slane %v1132_v40, 1  ;;  %v1084_v49 = vrot.slane %v1083_v42, 1  ;;  %v1140_v22 = vrot.slane %v1139_v43, 1  ;;  %843 = vmatpush.msrb.mxu2 %v694_v8 }
  0xe6   : > { %863 = vmatpush.msrb.mxu3 %v2261_v9  ;;  %v1088_v54 = vmax.f32 %v1086_v32, %v1087_v17  ;;  %v1144_v55 = vmin.f32 %v1142_v35, %v1143_v44  ;;  %v1095_v56 = vmax.f32 %v1093_v38, %v1094_v45  ;;  %v1151_v57 = vmin.f32 %v1149_v2, %v1150_v46 }
  0xe7   : > { %979 = vmatpush.msrb.mxu0 %v872_v63  ;;  %v2280_v28 = vmax.f32 %v1076_v39, %v1077_v47  ;;  %999 = vmatpush.msrb.mxu1 %v873_v0  ;;  %v2293_v61 = vsel %vm1177_vm2, %v1169_v27, %v1170_v50  ;;  %v1134_v34 = vmin.f32 %v1132_v40, %v1133_v48  ;;  %v1201_v24 = vrot.slane %v2239_v18, 5 }
  0xe8   : > { %v1089_v62 = vrot.slane %v1088_v54, 2  ;;  %v1145_v63 = vrot.slane %v1144_v55, 2  ;;  %v1096_v36 = vrot.slane %v1095_v56, 2  ;;  %v1152_v5 = vrot.slane %v1151_v57, 2  ;;  %1616 = vmatmul.msk.f32.vlgmr.msrb.gmra.mxu2 %vm704_vm0, %v1677_v53  ;;  %1617 = vmatmul.msk.f32.vlgmr.msrb.gmra.mxu3 %vm704_vm0, %v1677_v53 }
  0xe9   : > { %v1085_v33 = vmax.f32 %v1083_v42, %v1084_v49  ;;  %v1141_v27 = vmin.f32 %v1139_v43, %v1140_v22  ;;  %938 = vmatpush.msra.mxu2 %v2252_v58  ;;  %958 = vmatpush.msra.mxu3 %v2256_v1  ;;  %v882_v41 = vmul.f32 %v2263_v15, %v2263_v15 }
  0xea   : > { %v1090_v50 = vmax.f32 %v1088_v54, %v1089_v62  ;;  %v1146_v51 = vmin.f32 %v1144_v55, %v1145_v63  ;;  %v1097_v52 = vmax.f32 %v1095_v56, %v1096_v36  ;;  %v1153_v0 = vmin.f32 %v1151_v57, %v1152_v5  ;;  %1618 = vmatmul.msk.f32.vlgmr.msra.gmra.mxu0 %vm704_vm0, %v1677_v53 }
  0xeb   : > { %939 = vmatpush.msra.mxu2 %v2221_v30  ;;  %959 = vmatpush.msra.mxu3 %v2225_v31  ;;  %v883_v58 = vmul.f32 %v2265_v16, %v2265_v16  ;;  %v875_v1 = vmul.f32 %v2261_v9, %v2261_v9  ;;  %v1171_v30 = vrot.slane %v2280_v28, 4  ;;  %v1202_v31 = vrot.slane %v1134_v34, 4 }
  0xec   : > { %v1091_v6 = vrot.slane %v1090_v50, 1  ;;  %v1147_v7 = vrot.slane %v1146_v51, 1  ;;  %v1098_v4 = vrot.slane %v1097_v52, 1  ;;  %v1154_v8 = vrot.slane %v1153_v0, 1  ;;  %1619 = vmatmul.msk.f32.vlgmr.msra.gmra.mxu1 %vm704_vm0, %v1677_v53 }
  0xed   : > { %v1172_v18 = vrot.slane %v1085_v33, 3  ;;  %v1203_v10 = vrot.slane %v1141_v27, 3  ;;  %1018 = vmatpush.msrb.mxu2 %v882_v41  ;;  %1038 = vmatpush.msrb.mxu3 %v883_v58  ;;  %v1207_v13 = vsel %vm1177_vm2, %v1200_v37, %v1201_v24  ;;  %v1180_v29 = vsel %vm1179_vm3, %v2259_v3, %v2293_v61 }
  0xee   : > { %v1092_v11 = vmax.f32 %v1090_v50, %v1091_v6  ;;  %v1148_v25 = vmin.f32 %v1146_v51, %v1147_v7  ;;  %v1099_v12 = vmax.f32 %v1097_v52, %v1098_v4  ;;  %v1155_v9 = vmin.f32 %v1153_v0, %v1154_v8 }
  0xef   : > { %1019 = vmatpush.msrb.mxu2 %v874_v59  ;;  %1039 = vmatpush.msrb.mxu3 %v875_v1  ;;  %v1182_v20 = vsel %vm1181_vm4, %v1171_v30, %v1172_v18  ;;  %v1209_v26 = vsel %vm1181_vm4, %v1202_v31, %v1203_v10  ;;  %v1208_v32 = vsel %vm1179_vm3, %v2286_v60, %v1207_v13 }
  0xf0   : > { %v1173_v14 = vrot.slane %v1092_v11, 2  ;;  %v1204_v15 = vrot.slane %v1148_v25, 2  ;;  %v1174_v16 = vrot.slane %v1099_v12, 1  ;;  %v1205_v19 = vrot.slane %v1155_v9, 1  ;;  %1620 = vmatmul.msk.f32.vlgmr.msra.gmra.mxu2 %vm704_vm0, %v1677_v53  ;;  %1621 = vmatmul.msk.f32.vlgmr.msra.gmra.mxu3 %vm704_vm0, %v1677_v53 }
  0xf2   : > { %1622 = vmatmul.msk.f32.vlgmr.msrb.gmra.mxu0 %vm704_vm0, %v1677_v53  ;;  %v1184_v21 = vsel %vm1183_vm5, %v1173_v14, %v1174_v16  ;;  %v1210_v23 = vsel %vm1183_vm5, %v1204_v15, %v1205_v19 }
  0xf3   : > { %v1186_v35 = vsel %vm1185_vm6, %v1182_v20, %v1184_v21  ;;  %v1211_v38 = vsel %vm1185_vm6, %v1209_v26, %v1210_v23 }
  0xf4   : > { %1623 = vmatmul.msk.f32.vlgmr.msrb.gmra.mxu1 %vm704_vm0, %v1677_v53  ;;  %v1188_v2 = vsel %vm1187_vm7, %v1180_v29, %v1186_v35  ;;  %v1212_v39 = vsel %vm1187_vm7, %v1208_v32, %v1211_v38 }
  0xf5   : > { %1190 = vst [vmem:[%s331_s13] sm:$0xff] %v1188_v2 }
  0xf6   : > { %1214 = vst [vmem:[%s339_s12] sm:$0xff] %v1212_v39 }
  0xf8   : > { %1624 = vmatmul.msk.f32.vlgmr.msrb.gmra.mxu2 %vm704_vm0, %v1677_v53  ;;  %1625 = vmatmul.msk.f32.vlgmr.msrb.gmra.mxu3 %vm704_vm0, %v1677_v53 }
 0x143   : > { %v745_v40 = vpop.f32.mrf.mxu1 }
 0x144   : > { %v725_v3 = vpop.f32.mrf.mxu0  ;;  %v1223_v45 = vrot.slane %v745_v40, 7 }
 0x146   : > { %v1230_v54 = vsel %vm1175_vm1, %v725_v3, %v1223_v45 }
 0x14a   : > { %v765_v43 = vpop.f32.mrf.mxu2 }
 0x14b   : > { %v785_v17 = vpop.f32.mrf.mxu3  ;;  %v1224_v46 = vrot.slane %v765_v43, 6 }
 0x14c   : > { %v1225_v47 = vrot.slane %v785_v17, 5 }
 0x14e   : > { %v1231_v57 = vsel %vm1177_vm2, %v1224_v46, %v1225_v47 }
 0x14f   : > { %v1232_v62 = vsel %vm1179_vm3, %v1230_v54, %v1231_v57 }
 0x15b   : > { %v805_v42 = vpop.f32.mrf.mxu0 }
 0x15c   : > { %v1226_v48 = vrot.slane %v805_v42, 4 }
 0x15e   : > { %v825_v44 = vpop.f32.mrf.mxu1 }
 0x15f   : > { %v1227_v49 = vrot.slane %v825_v44, 3 }
 0x161   : > { %v1233_v53 = vsel %vm1181_vm4, %v1226_v48, %v1227_v49 }
 0x167   : > { %v901_v22 = vpop.f32.mrf.mxu0 }
 0x169   : > { %v921_v60 = vpop.f32.mrf.mxu1 }
 0x16a   : > { %v1247_v0 = vrot.slane %v921_v60, 7 }
 0x16b   : > { %v845_v55 = vpop.f32.mrf.mxu2  ;;  %v865_v56 = vpop.f32.mrf.mxu3 }
 0x16c   : > { %v1228_v28 = vrot.slane %v845_v55, 2  ;;  %v1229_v59 = vrot.slane %v865_v56, 1  ;;  %v1254_v4 = vsel %vm1175_vm1, %v901_v22, %v1247_v0 }
 0x16e   : > { %v1234_v61 = vsel %vm1183_vm5, %v1228_v28, %v1229_v59 }
 0x16f   : > { %v1235_v63 = vsel %vm1185_vm6, %v1233_v53, %v1234_v61  ;;  %v981_v34 = vpop.f32.mrf.mxu0 }
 0x170   : > { %v1236_v36 = vsel %vm1187_vm7, %v1232_v62, %v1235_v63  ;;  %v1250_v51 = vrot.slane %v981_v34, 4 }
 0x171   : > { %1238 = vst [vmem:[%s347_s17] sm:$0xff] %v1236_v36  ;;  %v1001_v33 = vpop.f32.mrf.mxu1 }
 0x172   : > { %v1251_v52 = vrot.slane %v1001_v33, 3 }
 0x173   : > { %v941_v5 = vpop.f32.mrf.mxu2  ;;  %v961_v37 = vpop.f32.mrf.mxu3 }
 0x174   : > { %v1248_v27 = vrot.slane %v941_v5, 6  ;;  %v1249_v50 = vrot.slane %v961_v37, 5  ;;  %v1257_v1 = vsel %vm1181_vm4, %v1250_v51, %v1251_v52 }
 0x176   : > { %v1255_v58 = vsel %vm1177_vm2, %v1248_v27, %v1249_v50 }
 0x177   : > { %v1256_v30 = vsel %vm1179_vm3, %v1254_v4, %v1255_v58 }
 0x17b   : > { %v1021_v24 = vpop.f32.mrf.mxu2  ;;  %v1041_v41 = vpop.f32.mrf.mxu3 }
 0x17c   : > { %v1252_v6 = vrot.slane %v1021_v24, 2  ;;  %v1253_v7 = vrot.slane %v1041_v41, 1 }
 0x17e   : > { %v1258_v8 = vsel %vm1183_vm5, %v1252_v6, %v1253_v7 }
 0x17f   : > { %v1259_v31 = vsel %vm1185_vm6, %v1257_v1, %v1258_v8 }
 0x180   : > { %v1260_v18 = vsel %vm1187_vm7, %v1256_v30, %v1259_v31 }
 0x181   : > { %1262 = vst [vmem:[%s355_s20] sm:$0xff] %v1260_v18 }
 0x182 PF: > { %s17_s23 = sadd.s32 1, %s1675_s23   ;;  %s2395_s21 = smov %s1671_s22 }
 0x183   : > { %p14_p6 = scmp.ge.s32.totalorder %s17_s23, 4   ;;  %s2396_s22 = smov %s2398_s24 }
 0x185   :  { %16 = sbr.rel (!%p14_p6) target bundleno = 2 (0x2), region = 106 }

// kernel: input_tnet.9
= control target key start
LH: loop header
LB: loop body
LE: loop exit
PB: predicated region body
PF: predicated region fallthrough
CT: control target
= control target key end

     0   :  { %s391_s9 = smov 0   ;;  %s393_s10 = smov 0   ;;  %s432_s0 = inlined_call_operand.vmem [shape: f32[2,4,16], index: 0, kind: input, shape index: {}]   ;;  %s433_s1 = inlined_call_operand.vmem [shape: f32[2,4,4], index: 1, kind: input, shape index: {}]   ;;  %s434_s2 = inlined_call_operand.vmem [shape: f32[2,4,16], index: 2, kind: output, shape index: {}]  }
   0x1   :  { %s395_s11 = smov 0  }
   0x2 LB: > { %s24_s12 = sadd.s32 1, %s366_s10  ;;  %p309_p0 = scmp.ge.s32.totalorder %s370_s11, 1  ;;  %s370_s11 = sphi %s395_s11, %s12_s11   ;;  %s366_s10 = sphi %s393_s10, %s436_s10   ;;  %s362_s9 = sphi %s391_s9, %s435_s9  }
   0x3   : > { %p26_p1 = scmp.ge.s32.totalorder %s24_s12, 2  ;;  %p139_p2 = scmp.lt.s32.totalorder %s370_s11, 3 }
   0x5   : > { %s438_s12 = smov (%p26_p1, %s24_s12), 0  ;;  %p140_p3 = pnand %p309_p0, %p139_p2 }
   0x6   : > { %p169_p4 = scmp.lt.s32.totalorder (!%p140_p3), %s362_s9, 1 }
   0x7   : > { %143 = sbr.rel (%p140_p3) target bundleno = 149 (0x95), region = 28 }
   0xc   : > { %v372_v0 = vmov 0   ;;  %v373_v1 = vmov 2   ;;  %s440_s9 = smov (!%p169_p4, %s362_s9), 1  ;;  %v374_v3 = vmov 1   ;;  %v375_v4 = vmov 3  }
   0xd   : > { %343 = vset.pattern.permute.xlu0 %v372_v0  ;;  %345 = vset.pattern.permute.xlu1 %v373_v1  ;;  %s409_s13 = sshll.u32 %s440_s9, 2  ;;  %vm217_vm0 = vcmask 125952  }
   0xe   : > { %s179_s16 = scalar_lea.vmem %s433_s1, %s409_s13  ;;  %s175_s19 = scalar_lea.vmem %s432_s0, %s409_s13 }
   0xf   : > { %v188_v2 = vld [vmem:[%s179_s16] sm:$0xf]  ;;  %s186_s22 = scalar_lea.vmem %s434_s2, %s409_s13 }
  0x10   : > { %191 = vperm.xlu0 %343, %v188_v2   ;;  %204 = vperm.xlu1 %345, %v188_v2   ;;  %v187_v7 = vld [vmem:[%s175_s19] sm:$0xf] }
  0x11   : > { %v194_v8 = vperm.slane %v187_v7, 0  ;;  %v200_v9 = vperm.slane %v187_v7, 1  ;;  %v207_v10 = vperm.slane %v187_v7, 2  ;;  %v214_v11 = vperm.slane %v187_v7, 3 }
  0x18   : > { %344 = vset.pattern.permute.xlu0 %v374_v3  ;;  %346 = vset.pattern.permute.xlu1 %v375_v4 }
  0x19   : > { %197 = vperm.xlu0 %344, %v188_v2   ;;  %211 = vperm.xlu1 %346, %v188_v2  }
  0x21   : > { %347 = vset.pattern.permute.xlu0 %v375_v4 }
  0x82   : > { %v192_v5 = vpop.permute.xlu0 %191  ;;  %v205_v6 = vpop.permute.xlu1 %204 }
  0x83   : > { %v195_v14 = vmul.f32 %v194_v8, %v192_v5  ;;  %v208_v16 = vmul.f32 %v207_v10, %v205_v6 }
  0x8b   : > { %v198_v12 = vpop.permute.xlu0 %197  ;;  %v212_v13 = vpop.permute.xlu1 %211 }
  0x8c   : > { %v201_v15 = vmul.f32 %v200_v9, %v198_v12  ;;  %v215_v18 = vmul.f32 %v214_v11, %v212_v13 }
  0x8e   : > { %v202_v17 = vadd.f32 %v201_v15, %v195_v14 }
  0x90   : > { %v209_v19 = vadd.f32 %v208_v16, %v202_v17 }
  0x92   : > { %v216_v20 = vadd.f32 %v215_v18, %v209_v19 }
  0x94   : > { %218 = vst.msk [vmem:[%s186_s22] sm:$0xf] %vm217_vm0, %v216_v20 }
  0x95 PF: > { %s12_s11 = sadd.s32 1, %s370_s11   ;;  %s435_s9 = smov %s366_s10 }
  0x96   : > { %p9_p5 = scmp.ge.s32.totalorder %s12_s11, 4   ;;  %s436_s10 = smov %s438_s12 }
  0x98   :  { %11 = sbr.rel (!%p9_p5) target bundleno = 2 (0x2), region = 61 }

// kernel: input_tnet.8
= control target key start
LH: loop header
LB: loop body
LE: loop exit
PB: predicated region body
PF: predicated region fallthrough
CT: control target
= control target key end

     0   :  { %16 = vsyncpa [#allocation3], 0  ;;  %s1908_s20 = smov [#allocation2]   ;;  %s1909_s22 = smov 256   ;;  %s3806_s0 = inlined_call_operand.vmem [shape: f32[2,1024], index: 0, kind: input, shape index: {}]   ;;  %s3807_s1 = inlined_call_operand.vmem [shape: f32[1024,512], index: 1, kind: input, shape index: {}]   ;;  %s3808_s2 = inlined_call_operand.vmem [shape: f32[1,512], index: 2, kind: input, shape index: {}]   ;;  %s3809_s3 = inlined_call_operand.vmem [shape: f32[1,512], index: 3, kind: input, shape index: {}]   ;;  %s3810_s4 = inlined_call_operand.vmem [shape: f32[1,512], index: 4, kind: input, shape index: {}]   ;;  %s3811_s5 = inlined_call_operand.hbm [shape: f32[512,256], index: 5, kind: input, shape index: {}]   ;;  %s3812_s6 = inlined_call_operand.vmem [shape: f32[1,256], index: 6, kind: input, shape index: {}]   ;;  %s3813_s7 = inlined_call_operand.vmem [shape: f32[1,256], index: 7, kind: input, shape index: {}]   ;;  %s3814_s8 = inlined_call_operand.vmem [shape: f32[1,256], index: 8, kind: input, shape index: {}]   ;;  %s3815_s9 = inlined_call_operand.vmem [shape: f32[256,16], index: 9, kind: input, shape index: {}]   ;;  %s3816_s10 = inlined_call_operand.vmem [shape: f32[1,16], index: 10, kind: input, shape index: {}]   ;;  %s3817_s11 = inlined_call_operand.vmem [shape: f32[2,16], index: 11, kind: output, shape index: {}]  }
   0x1   :  { %s31_s19 = sshll.u32 %s3811_s5, 4  ;;  %s33_s21 = sshll.u32 %s1908_s20, 4  ;;  %s32_s19 = int_to_ptr.hbm [resolvable:$true] %s31_s19  ;;  %s34_s21 = int_to_ptr.vmem [resolvable:$true] %s33_s21 }
   0x2   :  { %s1910_s23 = smov 16  }
   0x3   :  { %39 = dma.hbm_to_vmem [thread:$0]  %s32_s19, 16384, %s34_s21, [#allocation3], %s1909_s22, %s1909_s22, %s1910_s23  }
   0x4   :  { %1906 = dma.done.wait [#allocation3], 16384  }
   0x5   :  { %1907 = vsyncadd [#allocation3], 4294950912  ;;  %v116_v0 = vld [vmem:[%s3807_s1 + $0x1e0] sm:$0xff]  ;;  %vm1245_vm0 = vcmask 1041408  }
   0x6   :  { %v244_v1 = vld [vmem:[%s3807_s1 + $0x5e0] sm:$0xff]  ;;  %599 = vmatpush.msra.mxu0 %v116_v0 }
   0x7   :  { %v112_v2 = vld [vmem:[%s3807_s1 + $0x1c0] sm:$0xff]  ;;  %639 = vmatpush.msra.mxu2 %v244_v1 }
   0x8   :  { %v240_v3 = vld [vmem:[%s3807_s1 + $0x5c0] sm:$0xff]  ;;  %600 = vmatpush.msra.mxu0 %v112_v2 }
   0x9   :  { %v308_v4 = vld [vmem:[%s3807_s1 + $0x7e0] sm:$0xff]  ;;  %640 = vmatpush.msra.mxu2 %v240_v3 }
   0xa   :  { %v108_v5 = vld [vmem:[%s3807_s1 + $0x1a0] sm:$0xff]  ;;  %659 = vmatpush.msra.mxu3 %v308_v4 }
   0xb   :  { %v180_v6 = vld [vmem:[%s3807_s1 + $0x3e0] sm:$0xff]  ;;  %601 = vmatpush.msra.mxu0 %v108_v5 }
   0xc   :  { %v236_v7 = vld [vmem:[%s3807_s1 + $0x5a0] sm:$0xff]  ;;  %619 = vmatpush.msra.mxu1 %v180_v6 }
   0xd   :  { %v304_v8 = vld [vmem:[%s3807_s1 + $0x7c0] sm:$0xff]  ;;  %641 = vmatpush.msra.mxu2 %v236_v7 }
   0xe   :  { %v176_v9 = vld [vmem:[%s3807_s1 + $0x3c0] sm:$0xff]  ;;  %660 = vmatpush.msra.mxu3 %v304_v8 }
   0xf   :  { %v104_v10 = vld [vmem:[%s3807_s1 + $0x180] sm:$0xff]  ;;  %620 = vmatpush.msra.mxu1 %v176_v9 }
  0x10   :  { %v232_v11 = vld [vmem:[%s3807_s1 + $0x580] sm:$0xff]  ;;  %602 = vmatpush.msra.mxu0 %v104_v10 }
  0x11   :  { %v300_v12 = vld [vmem:[%s3807_s1 + $0x7a0] sm:$0xff]  ;;  %642 = vmatpush.msra.mxu2 %v232_v11 }
  0x12   :  { %v172_v13 = vld [vmem:[%s3807_s1 + $0x3a0] sm:$0xff]  ;;  %661 = vmatpush.msra.mxu3 %v300_v12 }
  0x13   :  { %v296_v14 = vld [vmem:[%s3807_s1 + $0x780] sm:$0xff]  ;;  %621 = vmatpush.msra.mxu1 %v172_v13 }
  0x14   :  { %v100_v15 = vld [vmem:[%s3807_s1 + $0x160] sm:$0xff]  ;;  %662 = vmatpush.msra.mxu3 %v296_v14 }
  0x15   :  { %v228_v16 = vld [vmem:[%s3807_s1 + $0x560] sm:$0xff]  ;;  %603 = vmatpush.msra.mxu0 %v100_v15 }
  0x16   :  { %v168_v17 = vld [vmem:[%s3807_s1 + $0x380] sm:$0xff]  ;;  %643 = vmatpush.msra.mxu2 %v228_v16 }
  0x17   :  { %v292_v18 = vld [vmem:[%s3807_s1 + $0x760] sm:$0xff]  ;;  %622 = vmatpush.msra.mxu1 %v168_v17 }
  0x18   :  { %v96_v19 = vld [vmem:[%s3807_s1 + $0x140] sm:$0xff]  ;;  %663 = vmatpush.msra.mxu3 %v292_v18 }
  0x19   :  { %v224_v20 = vld [vmem:[%s3807_s1 + $0x540] sm:$0xff]  ;;  %604 = vmatpush.msra.mxu0 %v96_v19 }
  0x1a   :  { %v164_v21 = vld [vmem:[%s3807_s1 + $0x360] sm:$0xff]  ;;  %644 = vmatpush.msra.mxu2 %v224_v20 }
  0x1b   :  { %v288_v22 = vld [vmem:[%s3807_s1 + $0x740] sm:$0xff]  ;;  %623 = vmatpush.msra.mxu1 %v164_v21 }
  0x1c   :  { %v92_v23 = vld [vmem:[%s3807_s1 + $0x120] sm:$0xff]  ;;  %664 = vmatpush.msra.mxu3 %v288_v22 }
  0x1d   :  { %v220_v24 = vld [vmem:[%s3807_s1 + $0x520] sm:$0xff]  ;;  %605 = vmatpush.msra.mxu0 %v92_v23 }
  0x1e   :  { %v160_v25 = vld [vmem:[%s3807_s1 + $0x340] sm:$0xff]  ;;  %645 = vmatpush.msra.mxu2 %v220_v24 }
  0x1f   :  { %v284_v26 = vld [vmem:[%s3807_s1 + $0x720] sm:$0xff]  ;;  %624 = vmatpush.msra.mxu1 %v160_v25 }
  0x20   :  { %v88_v27 = vld [vmem:[%s3807_s1 + $0x100] sm:$0xff]  ;;  %665 = vmatpush.msra.mxu3 %v284_v26  ;;  %v55_v26 = vld [vmem:[%s3806_s0 + $0x8] sm:$0xff] }
  0x21   :  { %v216_v28 = vld [vmem:[%s3807_s1 + $0x500] sm:$0xff]  ;;  %606 = vmatpush.msra.mxu0 %v88_v27  ;;  %582 = vst [vmem:[#allocation1 + $0x20] ss:$4 sm:$0xff] %v55_v26  ;;  %v297_v26 = vld [vmem:[%s3807_s1 + $0x788] sm:$0xff] }
  0x22   :  { %v156_v29 = vld [vmem:[%s3807_s1 + $0x320] sm:$0xff]  ;;  %646 = vmatpush.msra.mxu2 %v216_v28 }
  0x23   :  { %v280_v30 = vld [vmem:[%s3807_s1 + $0x700] sm:$0xff]  ;;  %625 = vmatpush.msra.mxu1 %v156_v29 }
  0x24   :  { %v84_v31 = vld [vmem:[%s3807_s1 + $0xe0] sm:$0xff]  ;;  %666 = vmatpush.msra.mxu3 %v280_v30 }
  0x25   :  { %v212_v32 = vld [vmem:[%s3807_s1 + $0x4e0] sm:$0xff]  ;;  %607 = vmatpush.msra.mxu0 %v84_v31 }
  0x26   :  { %v152_v33 = vld [vmem:[%s3807_s1 + $0x300] sm:$0xff]  ;;  %647 = vmatpush.msra.mxu2 %v212_v32 }
  0x27   :  { %v276_v34 = vld [vmem:[%s3807_s1 + $0x6e0] sm:$0xff]  ;;  %626 = vmatpush.msra.mxu1 %v152_v33 }
  0x28   :  { %v80_v35 = vld [vmem:[%s3807_s1 + $0xc0] sm:$0xff]  ;;  %667 = vmatpush.msra.mxu3 %v276_v34 }
  0x29   :  { %v208_v36 = vld [vmem:[%s3807_s1 + $0x4c0] sm:$0xff]  ;;  %608 = vmatpush.msra.mxu0 %v80_v35 }
  0x2a   :  { %v148_v37 = vld [vmem:[%s3807_s1 + $0x2e0] sm:$0xff]  ;;  %648 = vmatpush.msra.mxu2 %v208_v36 }
  0x2b   :  { %v272_v38 = vld [vmem:[%s3807_s1 + $0x6c0] sm:$0xff]  ;;  %627 = vmatpush.msra.mxu1 %v148_v37 }
  0x2c   :  { %v76_v39 = vld [vmem:[%s3807_s1 + $0xa0] sm:$0xff]  ;;  %668 = vmatpush.msra.mxu3 %v272_v38 }
  0x2d   :  { %v204_v40 = vld [vmem:[%s3807_s1 + $0x4a0] sm:$0xff]  ;;  %609 = vmatpush.msra.mxu0 %v76_v39 }
  0x2e   :  { %v144_v41 = vld [vmem:[%s3807_s1 + $0x2c0] sm:$0xff]  ;;  %649 = vmatpush.msra.mxu2 %v204_v40 }
  0x2f   :  { %v268_v42 = vld [vmem:[%s3807_s1 + $0x6a0] sm:$0xff]  ;;  %628 = vmatpush.msra.mxu1 %v144_v41 }
  0x30   :  { %v72_v43 = vld [vmem:[%s3807_s1 + $0x80] sm:$0xff]  ;;  %669 = vmatpush.msra.mxu3 %v268_v42 }
  0x31   :  { %v200_v44 = vld [vmem:[%s3807_s1 + $0x480] sm:$0xff]  ;;  %610 = vmatpush.msra.mxu0 %v72_v43 }
  0x32   :  { %v140_v45 = vld [vmem:[%s3807_s1 + $0x2a0] sm:$0xff]  ;;  %650 = vmatpush.msra.mxu2 %v200_v44 }
  0x33   :  { %v264_v46 = vld [vmem:[%s3807_s1 + $0x680] sm:$0xff]  ;;  %629 = vmatpush.msra.mxu1 %v140_v45 }
  0x34   :  { %v68_v47 = vld [vmem:[%s3807_s1 + $0x60] sm:$0xff]  ;;  %670 = vmatpush.msra.mxu3 %v264_v46 }
  0x35   :  { %v196_v48 = vld [vmem:[%s3807_s1 + $0x460] sm:$0xff]  ;;  %611 = vmatpush.msra.mxu0 %v68_v47 }
  0x36   :  { %v136_v49 = vld [vmem:[%s3807_s1 + $0x280] sm:$0xff]  ;;  %651 = vmatpush.msra.mxu2 %v196_v48 }
  0x37   :  { %v260_v50 = vld [vmem:[%s3807_s1 + $0x660] sm:$0xff]  ;;  %630 = vmatpush.msra.mxu1 %v136_v49 }
  0x38   :  { %v64_v51 = vld [vmem:[%s3807_s1 + $0x40] sm:$0xff]  ;;  %671 = vmatpush.msra.mxu3 %v260_v50 }
  0x39   :  { %v192_v52 = vld [vmem:[%s3807_s1 + $0x440] sm:$0xff]  ;;  %612 = vmatpush.msra.mxu0 %v64_v51 }
  0x3a   :  { %v132_v53 = vld [vmem:[%s3807_s1 + $0x260] sm:$0xff]  ;;  %652 = vmatpush.msra.mxu2 %v192_v52 }
  0x3b   :  { %v256_v54 = vld [vmem:[%s3807_s1 + $0x640] sm:$0xff]  ;;  %631 = vmatpush.msra.mxu1 %v132_v53 }
  0x3c   :  { %v60_v55 = vld [vmem:[%s3807_s1 + $0x20] sm:$0xff]  ;;  %672 = vmatpush.msra.mxu3 %v256_v54 }
  0x3d   :  { %v188_v56 = vld [vmem:[%s3807_s1 + $0x420] sm:$0xff]  ;;  %613 = vmatpush.msra.mxu0 %v60_v55 }
  0x3e   :  { %v128_v57 = vld [vmem:[%s3807_s1 + $0x240] sm:$0xff]  ;;  %653 = vmatpush.msra.mxu2 %v188_v56 }
  0x3f   :  { %v252_v58 = vld [vmem:[%s3807_s1 + $0x620] sm:$0xff]  ;;  %632 = vmatpush.msra.mxu1 %v128_v57 }
  0x40   :  { %v56_v59 = vld [vmem:[%s3807_s1] sm:$0xff]  ;;  %673 = vmatpush.msra.mxu3 %v252_v58 }
  0x41   :  { %v184_v60 = vld [vmem:[%s3807_s1 + $0x400] sm:$0xff]  ;;  %614 = vmatpush.msra.mxu0 %v56_v59 }
  0x42   :  { %v372_v61 = vld [vmem:[%s3807_s1 + $0x9e0] sm:$0xff]  ;;  %654 = vmatpush.msra.mxu2 %v184_v60 }
  0x43   :  { %v500_v62 = vld [vmem:[%s3807_s1 + $0xde0] sm:$0xff]  ;;  %679 = vmatpush.msrb.mxu0 %v372_v61 }
  0x44   :  { %v124_v63 = vld [vmem:[%s3807_s1 + $0x220] sm:$0xff]  ;;  %719 = vmatpush.msrb.mxu2 %v500_v62 }
  0x45   :  { %v248_v0 = vld [vmem:[%s3807_s1 + $0x600] sm:$0xff]  ;;  %633 = vmatpush.msra.mxu1 %v124_v63 }
  0x46   :  { %v368_v1 = vld [vmem:[%s3807_s1 + $0x9c0] sm:$0xff]  ;;  %674 = vmatpush.msra.mxu3 %v248_v0 }
  0x47   :  { %v496_v2 = vld [vmem:[%s3807_s1 + $0xdc0] sm:$0xff]  ;;  %680 = vmatpush.msrb.mxu0 %v368_v1 }
  0x48   :  { %v564_v3 = vld [vmem:[%s3807_s1 + $0xfe0] sm:$0xff]  ;;  %720 = vmatpush.msrb.mxu2 %v496_v2 }
  0x49   :  { %v120_v4 = vld [vmem:[%s3807_s1 + $0x200] sm:$0xff]  ;;  %739 = vmatpush.msrb.mxu3 %v564_v3  ;;  %v2368_v3 = vld.sshfl [vmem:[#allocation1 + $0x30] sm:$0xff pattern:$0x73625140] }
  0x4a   :  { %v364_v5 = vld [vmem:[%s3807_s1 + $0x9a0] sm:$0xff]  ;;  %634 = vmatpush.msra.mxu1 %v120_v4  ;;  %v117_v4 = vld [vmem:[%s3807_s1 + $0x1e8] sm:$0xff] }
  0x4b   :  { %v436_v6 = vld [vmem:[%s3807_s1 + $0xbe0] sm:$0xff]  ;;  %681 = vmatpush.msrb.mxu0 %v364_v5  ;;  %v245_v5 = vld [vmem:[%s3807_s1 + $0x5e8] sm:$0xff] }
  0x4c   :  { %v492_v7 = vld [vmem:[%s3807_s1 + $0xda0] sm:$0xff]  ;;  %699 = vmatpush.msrb.mxu1 %v436_v6 }
  0x4d   :  { %v560_v8 = vld [vmem:[%s3807_s1 + $0xfc0] sm:$0xff]  ;;  %721 = vmatpush.msrb.mxu2 %v492_v7 }
  0x4e   :  { %v360_v9 = vld [vmem:[%s3807_s1 + $0x980] sm:$0xff]  ;;  %740 = vmatpush.msrb.mxu3 %v560_v8 }
  0x4f   :  { %v432_v10 = vld [vmem:[%s3807_s1 + $0xbc0] sm:$0xff]  ;;  %682 = vmatpush.msrb.mxu0 %v360_v9  ;;  %v2385_v9 = vld.sshfl [vmem:[#allocation1 + $0x38] sm:$0xff pattern:$0x73625140] }
  0x50   :  { %v488_v11 = vld [vmem:[%s3807_s1 + $0xd80] sm:$0xff]  ;;  %700 = vmatpush.msrb.mxu1 %v432_v10  ;;  %v113_v10 = vld [vmem:[%s3807_s1 + $0x1c8] sm:$0xff] }
  0x51   :  { %v556_v12 = vld [vmem:[%s3807_s1 + $0xfa0] sm:$0xff]  ;;  %722 = vmatpush.msrb.mxu2 %v488_v11  ;;  %v241_v11 = vld [vmem:[%s3807_s1 + $0x5c8] sm:$0xff] }
  0x52   :  { %v54_v13 = vld [vmem:[%s3806_s0] sm:$0xff]  ;;  %741 = vmatpush.msrb.mxu3 %v556_v12  ;;  %v309_v12 = vld [vmem:[%s3807_s1 + $0x7e8] sm:$0xff] }
  0x53   :  { %v356_v14 = vld [vmem:[%s3807_s1 + $0x960] sm:$0xff]  ;;  %580 = vst [vmem:[#allocation1] ss:$4 sm:$0xff] %v54_v13 }
  0x54   :  { %v428_v15 = vld [vmem:[%s3807_s1 + $0xba0] sm:$0xff]  ;;  %683 = vmatpush.msrb.mxu0 %v356_v14  ;;  %v109_v14 = vld [vmem:[%s3807_s1 + $0x1a8] sm:$0xff] }
  0x55   :  { %v484_v16 = vld [vmem:[%s3807_s1 + $0xd60] sm:$0xff]  ;;  %701 = vmatpush.msrb.mxu1 %v428_v15  ;;  %v2404_v15 = vld.sshfl [vmem:[#allocation1 + $0x28] sm:$0xff pattern:$0x73625140] }
  0x56   :  { %v552_v17 = vld [vmem:[%s3807_s1 + $0xf80] sm:$0xff]  ;;  %723 = vmatpush.msrb.mxu2 %v484_v16  ;;  %v237_v16 = vld [vmem:[%s3807_s1 + $0x5a8] sm:$0xff] }
  0x57   :  { %v352_v18 = vld [vmem:[%s3807_s1 + $0x940] sm:$0xff]  ;;  %742 = vmatpush.msrb.mxu3 %v552_v17  ;;  %v181_v17 = vld [vmem:[%s3807_s1 + $0x3e8] sm:$0xff] }
  0x58   :  { %v424_v19 = vld [vmem:[%s3807_s1 + $0xb80] sm:$0xff]  ;;  %684 = vmatpush.msrb.mxu0 %v352_v18  ;;  %v305_v18 = vld [vmem:[%s3807_s1 + $0x7c8] sm:$0xff] }
  0x59   :  { %v480_v20 = vld [vmem:[%s3807_s1 + $0xd40] sm:$0xff]  ;;  %702 = vmatpush.msrb.mxu1 %v424_v19  ;;  %v105_v19 = vld [vmem:[%s3807_s1 + $0x188] sm:$0xff] }
  0x5a   :  { %v548_v21 = vld [vmem:[%s3807_s1 + $0xf60] sm:$0xff]  ;;  %724 = vmatpush.msrb.mxu2 %v480_v20  ;;  %v2308_v47 = vld.sshfl [vmem:[#allocation1 + $0x10] sm:$0xff pattern:$0x73625140]  ;;  %v233_v20 = vld [vmem:[%s3807_s1 + $0x588] sm:$0xff] }
  0x5b   :  { %v348_v22 = vld [vmem:[%s3807_s1 + $0x920] sm:$0xff]  ;;  %743 = vmatpush.msrb.mxu3 %v548_v21  ;;  %655 = vmatmul.f32.vlgmr.msra.gmra.mxu2 %v2308_v47  ;;  %v2325_v53 = vld.sshfl [vmem:[#allocation1 + $0x18] sm:$0xff pattern:$0x73625140]  ;;  %v177_v21 = vld [vmem:[%s3807_s1 + $0x3c8] sm:$0xff] }
  0x5c   :  { %v420_v23 = vld [vmem:[%s3807_s1 + $0xb60] sm:$0xff]  ;;  %685 = vmatpush.msrb.mxu0 %v348_v22  ;;  %v2340_v58 = vld.sshfl [vmem:[#allocation1 + $0x8] sm:$0xff pattern:$0x73625140]  ;;  %675 = vmatmul.f32.vlgmr.msra.gmra.mxu3 %v2325_v53 }
  0x5d   :  { %v476_v24 = vld [vmem:[%s3807_s1 + $0xd20] sm:$0xff]  ;;  %703 = vmatpush.msrb.mxu1 %v420_v23  ;;  %v301_v22 = vld [vmem:[%s3807_s1 + $0x7a8] sm:$0xff] }
  0x5e   :  { %v544_v25 = vld [vmem:[%s3807_s1 + $0xf40] sm:$0xff]  ;;  %725 = vmatpush.msrb.mxu2 %v476_v24  ;;  %635 = vmatmul.f32.vlgmr.msra.gmra.mxu1 %v2340_v58  ;;  %v101_v23 = vld [vmem:[%s3807_s1 + $0x168] sm:$0xff] }
  0x5f   :  { %v344_v27 = vld [vmem:[%s3807_s1 + $0x900] sm:$0xff]  ;;  %744 = vmatpush.msrb.mxu3 %v544_v25  ;;  %v229_v24 = vld [vmem:[%s3807_s1 + $0x568] sm:$0xff] }
  0x60   :  { %v416_v28 = vld [vmem:[%s3807_s1 + $0xb40] sm:$0xff]  ;;  %686 = vmatpush.msrb.mxu0 %v344_v27  ;;  %v173_v25 = vld [vmem:[%s3807_s1 + $0x3a8] sm:$0xff] }
  0x61   :  { %v472_v29 = vld [vmem:[%s3807_s1 + $0xd00] sm:$0xff]  ;;  %704 = vmatpush.msrb.mxu1 %v416_v28  ;;  %v97_v27 = vld [vmem:[%s3807_s1 + $0x148] sm:$0xff] }
  0x62   :  { %v540_v30 = vld [vmem:[%s3807_s1 + $0xf20] sm:$0xff]  ;;  %726 = vmatpush.msrb.mxu2 %v472_v29  ;;  %v225_v28 = vld [vmem:[%s3807_s1 + $0x548] sm:$0xff] }
  0x63   :  { %v340_v31 = vld [vmem:[%s3807_s1 + $0x8e0] sm:$0xff]  ;;  %745 = vmatpush.msrb.mxu3 %v540_v30  ;;  %v169_v29 = vld [vmem:[%s3807_s1 + $0x388] sm:$0xff] }
  0x64   :  { %v412_v32 = vld [vmem:[%s3807_s1 + $0xb20] sm:$0xff]  ;;  %687 = vmatpush.msrb.mxu0 %v340_v31  ;;  %v293_v30 = vld [vmem:[%s3807_s1 + $0x768] sm:$0xff] }
  0x65   :  { %v468_v33 = vld [vmem:[%s3807_s1 + $0xce0] sm:$0xff]  ;;  %705 = vmatpush.msrb.mxu1 %v412_v32  ;;  %v93_v31 = vld [vmem:[%s3807_s1 + $0x128] sm:$0xff] }
  0x66   :  { %v536_v34 = vld [vmem:[%s3807_s1 + $0xf00] sm:$0xff]  ;;  %727 = vmatpush.msrb.mxu2 %v468_v33  ;;  %v221_v32 = vld [vmem:[%s3807_s1 + $0x528] sm:$0xff] }
  0x67   :  { %v336_v35 = vld [vmem:[%s3807_s1 + $0x8c0] sm:$0xff]  ;;  %746 = vmatpush.msrb.mxu3 %v536_v34  ;;  %v165_v33 = vld [vmem:[%s3807_s1 + $0x368] sm:$0xff] }
  0x68   :  { %v408_v36 = vld [vmem:[%s3807_s1 + $0xb00] sm:$0xff]  ;;  %688 = vmatpush.msrb.mxu0 %v336_v35  ;;  %v289_v34 = vld [vmem:[%s3807_s1 + $0x748] sm:$0xff] }
  0x69   :  { %v464_v37 = vld [vmem:[%s3807_s1 + $0xcc0] sm:$0xff]  ;;  %706 = vmatpush.msrb.mxu1 %v408_v36  ;;  %v89_v35 = vld [vmem:[%s3807_s1 + $0x108] sm:$0xff] }
  0x6a   :  { %v532_v38 = vld [vmem:[%s3807_s1 + $0xee0] sm:$0xff]  ;;  %728 = vmatpush.msrb.mxu2 %v464_v37  ;;  %v217_v36 = vld [vmem:[%s3807_s1 + $0x508] sm:$0xff] }
  0x6b   :  { %v332_v39 = vld [vmem:[%s3807_s1 + $0x8a0] sm:$0xff]  ;;  %747 = vmatpush.msrb.mxu3 %v532_v38  ;;  %v161_v37 = vld [vmem:[%s3807_s1 + $0x348] sm:$0xff] }
  0x6c   :  { %v404_v40 = vld [vmem:[%s3807_s1 + $0xae0] sm:$0xff]  ;;  %689 = vmatpush.msrb.mxu0 %v332_v39  ;;  %v285_v38 = vld [vmem:[%s3807_s1 + $0x728] sm:$0xff] }
  0x6d   :  { %v460_v41 = vld [vmem:[%s3807_s1 + $0xca0] sm:$0xff]  ;;  %707 = vmatpush.msrb.mxu1 %v404_v40  ;;  %v85_v39 = vld [vmem:[%s3807_s1 + $0xe8] sm:$0xff] }
  0x6e   :  { %v528_v42 = vld [vmem:[%s3807_s1 + $0xec0] sm:$0xff]  ;;  %729 = vmatpush.msrb.mxu2 %v460_v41  ;;  %v213_v40 = vld [vmem:[%s3807_s1 + $0x4e8] sm:$0xff] }
  0x6f   :  { %v328_v43 = vld [vmem:[%s3807_s1 + $0x880] sm:$0xff]  ;;  %748 = vmatpush.msrb.mxu3 %v528_v42  ;;  %v157_v41 = vld [vmem:[%s3807_s1 + $0x328] sm:$0xff] }
  0x70   :  { %v400_v44 = vld [vmem:[%s3807_s1 + $0xac0] sm:$0xff]  ;;  %690 = vmatpush.msrb.mxu0 %v328_v43  ;;  %v281_v42 = vld [vmem:[%s3807_s1 + $0x708] sm:$0xff] }
  0x71   :  { %v456_v45 = vld [vmem:[%s3807_s1 + $0xc80] sm:$0xff]  ;;  %708 = vmatpush.msrb.mxu1 %v400_v44  ;;  %v81_v43 = vld [vmem:[%s3807_s1 + $0xc8] sm:$0xff] }
  0x72   :  { %v524_v46 = vld [vmem:[%s3807_s1 + $0xea0] sm:$0xff]  ;;  %730 = vmatpush.msrb.mxu2 %v456_v45  ;;  %v209_v44 = vld [vmem:[%s3807_s1 + $0x4c8] sm:$0xff] }
  0x73   :  { %v324_v48 = vld [vmem:[%s3807_s1 + $0x860] sm:$0xff]  ;;  %749 = vmatpush.msrb.mxu3 %v524_v46  ;;  %v153_v45 = vld [vmem:[%s3807_s1 + $0x308] sm:$0xff] }
  0x74   :  { %v396_v49 = vld [vmem:[%s3807_s1 + $0xaa0] sm:$0xff]  ;;  %691 = vmatpush.msrb.mxu0 %v324_v48  ;;  %v277_v46 = vld [vmem:[%s3807_s1 + $0x6e8] sm:$0xff] }
  0x75   :  { %v452_v50 = vld [vmem:[%s3807_s1 + $0xc60] sm:$0xff]  ;;  %709 = vmatpush.msrb.mxu1 %v396_v49  ;;  %v77_v48 = vld [vmem:[%s3807_s1 + $0xa8] sm:$0xff] }
  0x76   :  { %v520_v51 = vld [vmem:[%s3807_s1 + $0xe80] sm:$0xff]  ;;  %731 = vmatpush.msrb.mxu2 %v452_v50  ;;  %v205_v49 = vld [vmem:[%s3807_s1 + $0x4a8] sm:$0xff] }
  0x77   :  { %v2322_v52 = vld.sshfl [vmem:[#allocation1] sm:$0xff pattern:$0x73625140]  ;;  %750 = vmatpush.msrb.mxu3 %v520_v51  ;;  %v149_v50 = vld [vmem:[%s3807_s1 + $0x2e8] sm:$0xff] }
  0x78   :  { %v320_v54 = vld [vmem:[%s3807_s1 + $0x840] sm:$0xff]  ;;  %615 = vmatmul.f32.vlgmr.msra.gmra.mxu0 %v2322_v52  ;;  %v273_v51 = vld [vmem:[%s3807_s1 + $0x6c8] sm:$0xff] }
  0x79   :  { %v392_v55 = vld [vmem:[%s3807_s1 + $0xa80] sm:$0xff]  ;;  %692 = vmatpush.msrb.mxu0 %v320_v54  ;;  %v73_v54 = vld [vmem:[%s3807_s1 + $0x88] sm:$0xff] }
  0x7a   :  { %v448_v56 = vld [vmem:[%s3807_s1 + $0xc40] sm:$0xff]  ;;  %710 = vmatpush.msrb.mxu1 %v392_v55  ;;  %v201_v55 = vld [vmem:[%s3807_s1 + $0x488] sm:$0xff] }
  0x7b   :  { %v516_v57 = vld [vmem:[%s3807_s1 + $0xe60] sm:$0xff]  ;;  %732 = vmatpush.msrb.mxu2 %v448_v56  ;;  %v145_v56 = vld [vmem:[%s3807_s1 + $0x2c8] sm:$0xff] }
  0x7c   :  { %v316_v59 = vld [vmem:[%s3807_s1 + $0x820] sm:$0xff]  ;;  %751 = vmatpush.msrb.mxu3 %v516_v57  ;;  %v269_v57 = vld [vmem:[%s3807_s1 + $0x6a8] sm:$0xff] }
  0x7d   :  { %v388_v60 = vld [vmem:[%s3807_s1 + $0xa60] sm:$0xff]  ;;  %693 = vmatpush.msrb.mxu0 %v316_v59  ;;  %v69_v59 = vld [vmem:[%s3807_s1 + $0x68] sm:$0xff] }
  0x7e   :  { %v444_v61 = vld [vmem:[%s3807_s1 + $0xc20] sm:$0xff]  ;;  %711 = vmatpush.msrb.mxu1 %v388_v60  ;;  %v197_v60 = vld [vmem:[%s3807_s1 + $0x468] sm:$0xff] }
  0x7f   :  { %v512_v62 = vld [vmem:[%s3807_s1 + $0xe40] sm:$0xff]  ;;  %733 = vmatpush.msrb.mxu2 %v444_v61  ;;  %v141_v61 = vld [vmem:[%s3807_s1 + $0x2a8] sm:$0xff] }
  0x80   :  { %v312_v63 = vld [vmem:[%s3807_s1 + $0x800] sm:$0xff]  ;;  %752 = vmatpush.msrb.mxu3 %v512_v62  ;;  %v265_v62 = vld [vmem:[%s3807_s1 + $0x688] sm:$0xff] }
  0x81   :  { %v384_v0 = vld [vmem:[%s3807_s1 + $0xa40] sm:$0xff]  ;;  %694 = vmatpush.msrb.mxu0 %v312_v63  ;;  %v65_v63 = vld [vmem:[%s3807_s1 + $0x48] sm:$0xff] }
  0x82   :  { %v440_v1 = vld [vmem:[%s3807_s1 + $0xc00] sm:$0xff]  ;;  %712 = vmatpush.msrb.mxu1 %v384_v0  ;;  %v193_v0 = vld [vmem:[%s3807_s1 + $0x448] sm:$0xff] }
  0x83   :  { %v508_v2 = vld [vmem:[%s3807_s1 + $0xe20] sm:$0xff]  ;;  %734 = vmatpush.msrb.mxu2 %v440_v1  ;;  %759 = vmatpush.msra.mxu0 %v117_v4  ;;  %v137_v1 = vld [vmem:[%s3807_s1 + $0x288] sm:$0xff] }
  0x84   :  { %v380_v6 = vld [vmem:[%s3807_s1 + $0xa20] sm:$0xff]  ;;  %753 = vmatpush.msrb.mxu3 %v508_v2  ;;  %735 = vmatmul.f32.vlgmr.msrb.gmra.mxu2 %v2368_v3  ;;  %v261_v2 = vld [vmem:[%s3807_s1 + $0x668] sm:$0xff] }
  0x85   :  { %v504_v7 = vld [vmem:[%s3807_s1 + $0xe00] sm:$0xff]  ;;  %799 = vmatpush.msra.mxu2 %v245_v5  ;;  %713 = vmatpush.msrb.mxu1 %v380_v6  ;;  %v61_v4 = vld [vmem:[%s3807_s1 + $0x28] sm:$0xff] }
  0x86   :  { %v2382_v8 = vld.sshfl [vmem:[#allocation1 + $0x20] sm:$0xff pattern:$0x73625140]  ;;  %754 = vmatpush.msrb.mxu3 %v504_v7  ;;  %760 = vmatpush.msra.mxu0 %v113_v10  ;;  %v189_v5 = vld [vmem:[%s3807_s1 + $0x428] sm:$0xff] }
  0x87   :  { %695 = vmatmul.f32.vlgmr.msrb.gmra.mxu0 %v2382_v8  ;;  %v376_v13 = vld [vmem:[%s3807_s1 + $0xa00] sm:$0xff]  ;;  %755 = vmatmul.f32.vlgmr.msrb.gmra.mxu3 %v2385_v9  ;;  %v133_v6 = vld [vmem:[%s3807_s1 + $0x268] sm:$0xff] }
  0x88   :  { %800 = vmatpush.msra.mxu2 %v241_v11  ;;  %819 = vmatpush.msra.mxu3 %v309_v12  ;;  %v257_v7 = vld [vmem:[%s3807_s1 + $0x648] sm:$0xff] }
  0x89   :  { %714 = vmatpush.msrb.mxu1 %v376_v13  ;;  %761 = vmatpush.msra.mxu0 %v109_v14  ;;  %v57_v10 = vld [vmem:[%s3807_s1 + $0x8] sm:$0xff] }
  0x8a   :  { %715 = vmatmul.f32.vlgmr.msrb.gmra.mxu1 %v2404_v15  ;;  %801 = vmatpush.msra.mxu2 %v237_v16  ;;  %v185_v11 = vld [vmem:[%s3807_s1 + $0x408] sm:$0xff] }
  0x8b   :  { %779 = vmatpush.msra.mxu1 %v181_v17  ;;  %820 = vmatpush.msra.mxu3 %v305_v18  ;;  %v129_v12 = vld [vmem:[%s3807_s1 + $0x248] sm:$0xff] }
  0x8c   :  { %762 = vmatpush.msra.mxu0 %v105_v19  ;;  %802 = vmatpush.msra.mxu2 %v233_v20  ;;  %v253_v13 = vld [vmem:[%s3807_s1 + $0x628] sm:$0xff] }
  0x8d   :  { %780 = vmatpush.msra.mxu1 %v177_v21  ;;  %821 = vmatpush.msra.mxu3 %v301_v22  ;;  %v373_v14 = vld [vmem:[%s3807_s1 + $0x9e8] sm:$0xff] }
  0x8e   :  { %763 = vmatpush.msra.mxu0 %v101_v23  ;;  %803 = vmatpush.msra.mxu2 %v229_v24  ;;  %v501_v16 = vld [vmem:[%s3807_s1 + $0xde8] sm:$0xff] }
  0x8f   :  { %781 = vmatpush.msra.mxu1 %v173_v25  ;;  %822 = vmatpush.msra.mxu3 %v297_v26  ;;  %v125_v17 = vld [vmem:[%s3807_s1 + $0x228] sm:$0xff] }
  0x90   :  { %764 = vmatpush.msra.mxu0 %v97_v27  ;;  %804 = vmatpush.msra.mxu2 %v225_v28  ;;  %v249_v18 = vld [vmem:[%s3807_s1 + $0x608] sm:$0xff] }
  0x91   :  { %782 = vmatpush.msra.mxu1 %v169_v29  ;;  %823 = vmatpush.msra.mxu3 %v293_v30  ;;  %v369_v19 = vld [vmem:[%s3807_s1 + $0x9c8] sm:$0xff] }
  0x92   :  { %765 = vmatpush.msra.mxu0 %v93_v31  ;;  %805 = vmatpush.msra.mxu2 %v221_v32  ;;  %v497_v20 = vld [vmem:[%s3807_s1 + $0xdc8] sm:$0xff] }
  0x93   :  { %783 = vmatpush.msra.mxu1 %v165_v33  ;;  %824 = vmatpush.msra.mxu3 %v289_v34  ;;  %v565_v21 = vld [vmem:[%s3807_s1 + $0xfe8] sm:$0xff] }
  0x94   :  { %766 = vmatpush.msra.mxu0 %v89_v35  ;;  %806 = vmatpush.msra.mxu2 %v217_v36  ;;  %v121_v22 = vld [vmem:[%s3807_s1 + $0x208] sm:$0xff] }
  0x95   :  { %784 = vmatpush.msra.mxu1 %v161_v37  ;;  %825 = vmatpush.msra.mxu3 %v285_v38  ;;  %v365_v23 = vld [vmem:[%s3807_s1 + $0x9a8] sm:$0xff] }
  0x96   :  { %767 = vmatpush.msra.mxu0 %v85_v39  ;;  %807 = vmatpush.msra.mxu2 %v213_v40  ;;  %v437_v24 = vld [vmem:[%s3807_s1 + $0xbe8] sm:$0xff] }
  0x97   :  { %785 = vmatpush.msra.mxu1 %v157_v41  ;;  %826 = vmatpush.msra.mxu3 %v281_v42  ;;  %v493_v25 = vld [vmem:[%s3807_s1 + $0xda8] sm:$0xff] }
  0x98   :  { %768 = vmatpush.msra.mxu0 %v81_v43  ;;  %808 = vmatpush.msra.mxu2 %v209_v44  ;;  %v561_v26 = vld [vmem:[%s3807_s1 + $0xfc8] sm:$0xff] }
  0x99   :  { %786 = vmatpush.msra.mxu1 %v153_v45  ;;  %827 = vmatpush.msra.mxu3 %v277_v46  ;;  %v361_v27 = vld [vmem:[%s3807_s1 + $0x988] sm:$0xff] }
  0x9a   :  { %769 = vmatpush.msra.mxu0 %v77_v48  ;;  %809 = vmatpush.msra.mxu2 %v205_v49  ;;  %v433_v28 = vld [vmem:[%s3807_s1 + $0xbc8] sm:$0xff] }
  0x9b   :  { %787 = vmatpush.msra.mxu1 %v149_v50  ;;  %828 = vmatpush.msra.mxu3 %v273_v51  ;;  %v489_v29 = vld [vmem:[%s3807_s1 + $0xd88] sm:$0xff] }
  0x9c   :  { %770 = vmatpush.msra.mxu0 %v73_v54  ;;  %810 = vmatpush.msra.mxu2 %v201_v55  ;;  %v557_v30 = vld [vmem:[%s3807_s1 + $0xfa8] sm:$0xff] }
  0x9d   :  { %788 = vmatpush.msra.mxu1 %v145_v56  ;;  %829 = vmatpush.msra.mxu3 %v269_v57  ;;  %v357_v31 = vld [vmem:[%s3807_s1 + $0x968] sm:$0xff] }
  0x9e   :  { %771 = vmatpush.msra.mxu0 %v69_v59  ;;  %811 = vmatpush.msra.mxu2 %v197_v60  ;;  %v429_v32 = vld [vmem:[%s3807_s1 + $0xba8] sm:$0xff] }
  0x9f   :  { %789 = vmatpush.msra.mxu1 %v141_v61  ;;  %830 = vmatpush.msra.mxu3 %v265_v62  ;;  %v485_v33 = vld [vmem:[%s3807_s1 + $0xd68] sm:$0xff] }
  0xa0   :  { %772 = vmatpush.msra.mxu0 %v65_v63  ;;  %812 = vmatpush.msra.mxu2 %v193_v0  ;;  %v553_v34 = vld [vmem:[%s3807_s1 + $0xf88] sm:$0xff] }
  0xa1   :  { %790 = vmatpush.msra.mxu1 %v137_v1  ;;  %831 = vmatpush.msra.mxu3 %v261_v2  ;;  %v353_v35 = vld [vmem:[%s3807_s1 + $0x948] sm:$0xff] }
  0xa2   :  { %773 = vmatpush.msra.mxu0 %v61_v4  ;;  %813 = vmatpush.msra.mxu2 %v189_v5  ;;  %v425_v36 = vld [vmem:[%s3807_s1 + $0xb88] sm:$0xff] }
  0xa3   :  { %791 = vmatpush.msra.mxu1 %v133_v6  ;;  %832 = vmatpush.msra.mxu3 %v257_v7  ;;  %v481_v37 = vld [vmem:[%s3807_s1 + $0xd48] sm:$0xff] }
  0xa4   :  { %774 = vmatpush.msra.mxu0 %v57_v10  ;;  %814 = vmatpush.msra.mxu2 %v185_v11  ;;  %v549_v38 = vld [vmem:[%s3807_s1 + $0xf68] sm:$0xff] }
  0xa5   :  { %792 = vmatpush.msra.mxu1 %v129_v12  ;;  %833 = vmatpush.msra.mxu3 %v253_v13  ;;  %v349_v39 = vld [vmem:[%s3807_s1 + $0x928] sm:$0xff] }
  0xa6   :  { %839 = vmatpush.msrb.mxu0 %v373_v14  ;;  %879 = vmatpush.msrb.mxu2 %v501_v16  ;;  %v421_v40 = vld [vmem:[%s3807_s1 + $0xb68] sm:$0xff] }
  0xa7   :  { %793 = vmatpush.msra.mxu1 %v125_v17  ;;  %834 = vmatpush.msra.mxu3 %v249_v18  ;;  %v477_v41 = vld [vmem:[%s3807_s1 + $0xd28] sm:$0xff] }
  0xa8   :  { %840 = vmatpush.msrb.mxu0 %v369_v19  ;;  %880 = vmatpush.msrb.mxu2 %v497_v20  ;;  %v545_v42 = vld [vmem:[%s3807_s1 + $0xf48] sm:$0xff]  ;;  %v246_v20 = vld [vmem:[%s3807_s1 + $0x5f0] sm:$0xff] }
  0xa9   :  { %899 = vmatpush.msrb.mxu3 %v565_v21  ;;  %794 = vmatpush.msra.mxu1 %v121_v22  ;;  %v345_v43 = vld [vmem:[%s3807_s1 + $0x908] sm:$0xff] }
  0xaa   :  { %841 = vmatpush.msrb.mxu0 %v365_v23  ;;  %881 = vmatpush.msrb.mxu2 %v493_v25  ;;  %v417_v44 = vld [vmem:[%s3807_s1 + $0xb48] sm:$0xff]  ;;  %v114_v23 = vld [vmem:[%s3807_s1 + $0x1d0] sm:$0xff] }
  0xab   :  { %859 = vmatpush.msrb.mxu1 %v437_v24  ;;  %900 = vmatpush.msrb.mxu3 %v561_v26  ;;  %v473_v45 = vld [vmem:[%s3807_s1 + $0xd08] sm:$0xff]  ;;  %v242_v24 = vld [vmem:[%s3807_s1 + $0x5d0] sm:$0xff] }
  0xac   :  { %842 = vmatpush.msrb.mxu0 %v361_v27  ;;  %882 = vmatpush.msrb.mxu2 %v489_v29  ;;  %v541_v46 = vld [vmem:[%s3807_s1 + $0xf28] sm:$0xff]  ;;  %v310_v25 = vld [vmem:[%s3807_s1 + $0x7f0] sm:$0xff] }
  0xad   :  { %860 = vmatpush.msrb.mxu1 %v433_v28  ;;  %901 = vmatpush.msrb.mxu3 %v557_v30  ;;  %v341_v48 = vld [vmem:[%s3807_s1 + $0x8e8] sm:$0xff]  ;;  %v110_v26 = vld [vmem:[%s3807_s1 + $0x1b0] sm:$0xff] }
  0xae   :  { %843 = vmatpush.msrb.mxu0 %v357_v31  ;;  %883 = vmatpush.msrb.mxu2 %v485_v33  ;;  %v413_v49 = vld [vmem:[%s3807_s1 + $0xb28] sm:$0xff]  ;;  %v238_v27 = vld [vmem:[%s3807_s1 + $0x5b0] sm:$0xff] }
  0xaf   :  { %861 = vmatpush.msrb.mxu1 %v429_v32  ;;  %902 = vmatpush.msrb.mxu3 %v553_v34  ;;  %v469_v50 = vld [vmem:[%s3807_s1 + $0xce8] sm:$0xff]  ;;  %v306_v28 = vld [vmem:[%s3807_s1 + $0x7d0] sm:$0xff] }
  0xb0   :  { %844 = vmatpush.msrb.mxu0 %v353_v35  ;;  %884 = vmatpush.msrb.mxu2 %v481_v37  ;;  %v537_v51 = vld [vmem:[%s3807_s1 + $0xf08] sm:$0xff]  ;;  %v234_v29 = vld [vmem:[%s3807_s1 + $0x590] sm:$0xff] }
  0xb1   :  { %862 = vmatpush.msrb.mxu1 %v425_v36  ;;  %903 = vmatpush.msrb.mxu3 %v549_v38  ;;  %v337_v54 = vld [vmem:[%s3807_s1 + $0x8c8] sm:$0xff]  ;;  %v178_v30 = vld [vmem:[%s3807_s1 + $0x3d0] sm:$0xff] }
  0xb2   :  { %845 = vmatpush.msrb.mxu0 %v349_v39  ;;  %885 = vmatpush.msrb.mxu2 %v477_v41  ;;  %v409_v55 = vld [vmem:[%s3807_s1 + $0xb08] sm:$0xff]  ;;  %v302_v31 = vld [vmem:[%s3807_s1 + $0x7b0] sm:$0xff] }
  0xb3   :  { %863 = vmatpush.msrb.mxu1 %v421_v40  ;;  %904 = vmatpush.msrb.mxu3 %v545_v42  ;;  %v465_v56 = vld [vmem:[%s3807_s1 + $0xcc8] sm:$0xff]  ;;  %v102_v32 = vld [vmem:[%s3807_s1 + $0x170] sm:$0xff] }
  0xb4   :  { %846 = vmatpush.msrb.mxu0 %v345_v43  ;;  %886 = vmatpush.msrb.mxu2 %v473_v45  ;;  %v533_v57 = vld [vmem:[%s3807_s1 + $0xee8] sm:$0xff]  ;;  %v230_v33 = vld [vmem:[%s3807_s1 + $0x570] sm:$0xff] }
  0xb5   :  { %864 = vmatpush.msrb.mxu1 %v417_v44  ;;  %905 = vmatpush.msrb.mxu3 %v541_v46  ;;  %v333_v59 = vld [vmem:[%s3807_s1 + $0x8a8] sm:$0xff]  ;;  %v298_v34 = vld [vmem:[%s3807_s1 + $0x790] sm:$0xff] }
  0xb6   :  { %847 = vmatpush.msrb.mxu0 %v341_v48  ;;  %887 = vmatpush.msrb.mxu2 %v469_v50  ;;  %v405_v60 = vld [vmem:[%s3807_s1 + $0xae8] sm:$0xff]  ;;  %v98_v35 = vld [vmem:[%s3807_s1 + $0x150] sm:$0xff] }
  0xb7   :  { %865 = vmatpush.msrb.mxu1 %v413_v49  ;;  %906 = vmatpush.msrb.mxu3 %v537_v51  ;;  %v461_v61 = vld [vmem:[%s3807_s1 + $0xca8] sm:$0xff]  ;;  %v226_v36 = vld [vmem:[%s3807_s1 + $0x550] sm:$0xff] }
  0xb8   :  { %848 = vmatpush.msrb.mxu0 %v337_v54  ;;  %v529_v62 = vld [vmem:[%s3807_s1 + $0xec8] sm:$0xff]  ;;  %888 = vmatpush.msrb.mxu2 %v465_v56  ;;  %v170_v37 = vld [vmem:[%s3807_s1 + $0x390] sm:$0xff] }
  0xb9   :  { %866 = vmatpush.msrb.mxu1 %v409_v55  ;;  %907 = vmatpush.msrb.mxu3 %v533_v57  ;;  %v329_v63 = vld [vmem:[%s3807_s1 + $0x888] sm:$0xff]  ;;  %v294_v38 = vld [vmem:[%s3807_s1 + $0x770] sm:$0xff] }
  0xba   :  { %v401_v0 = vld [vmem:[%s3807_s1 + $0xac8] sm:$0xff]  ;;  %849 = vmatpush.msrb.mxu0 %v333_v59  ;;  %889 = vmatpush.msrb.mxu2 %v461_v61  ;;  %v94_v39 = vld [vmem:[%s3807_s1 + $0x130] sm:$0xff] }
  0xbb   :  { %867 = vmatpush.msrb.mxu1 %v405_v60  ;;  %v457_v1 = vld [vmem:[%s3807_s1 + $0xc88] sm:$0xff]  ;;  %908 = vmatpush.msrb.mxu3 %v529_v62  ;;  %v222_v40 = vld [vmem:[%s3807_s1 + $0x530] sm:$0xff] }
  0xbc   :  { %v525_v2 = vld [vmem:[%s3807_s1 + $0xea8] sm:$0xff]  ;;  %850 = vmatpush.msrb.mxu0 %v329_v63  ;;  %890 = vmatpush.msrb.mxu2 %v457_v1  ;;  %v166_v41 = vld [vmem:[%s3807_s1 + $0x370] sm:$0xff] }
  0xbd   :  { %v325_v4 = vld [vmem:[%s3807_s1 + $0x868] sm:$0xff]  ;;  %868 = vmatpush.msrb.mxu1 %v401_v0  ;;  %909 = vmatpush.msrb.mxu3 %v525_v2  ;;  %v290_v42 = vld [vmem:[%s3807_s1 + $0x750] sm:$0xff] }
  0xbe   :  { %v397_v5 = vld [vmem:[%s3807_s1 + $0xaa8] sm:$0xff]  ;;  %815 = vmatmul.f32.vlgmr.msra.gmra.mxu2 %v2308_v47  ;;  %851 = vmatpush.msrb.mxu0 %v325_v4  ;;  %v90_v43 = vld [vmem:[%s3807_s1 + $0x110] sm:$0xff] }
  0xbf   :  { %v453_v6 = vld [vmem:[%s3807_s1 + $0xc68] sm:$0xff]  ;;  %869 = vmatpush.msrb.mxu1 %v397_v5  ;;  %775 = vmatmul.f32.vlgmr.msra.gmra.mxu0 %v2322_v52  ;;  %v218_v44 = vld [vmem:[%s3807_s1 + $0x510] sm:$0xff] }
  0xc0   :  { %v521_v7 = vld [vmem:[%s3807_s1 + $0xe88] sm:$0xff]  ;;  %891 = vmatpush.msrb.mxu2 %v453_v6  ;;  %835 = vmatmul.f32.vlgmr.msra.gmra.mxu3 %v2325_v53  ;;  %v162_v45 = vld [vmem:[%s3807_s1 + $0x350] sm:$0xff] }
  0xc1   :  { %v321_v10 = vld [vmem:[%s3807_s1 + $0x848] sm:$0xff]  ;;  %910 = vmatpush.msrb.mxu3 %v521_v7  ;;  %795 = vmatmul.f32.vlgmr.msra.gmra.mxu1 %v2340_v58  ;;  %v118_v58 = vld [vmem:[%s3807_s1 + $0x1f0] sm:$0xff] }
  0xc2   :  { %v393_v11 = vld [vmem:[%s3807_s1 + $0xa88] sm:$0xff]  ;;  %852 = vmatpush.msrb.mxu0 %v321_v10  ;;  %v286_v46 = vld [vmem:[%s3807_s1 + $0x730] sm:$0xff] }
  0xc3   :  { %v449_v12 = vld [vmem:[%s3807_s1 + $0xc48] sm:$0xff]  ;;  %870 = vmatpush.msrb.mxu1 %v393_v11  ;;  %v86_v48 = vld [vmem:[%s3807_s1 + $0xf0] sm:$0xff] }
  0xc4   :  { %v517_v47 = vld [vmem:[%s3807_s1 + $0xe68] sm:$0xff]  ;;  %892 = vmatpush.msrb.mxu2 %v449_v12  ;;  %v214_v49 = vld [vmem:[%s3807_s1 + $0x4f0] sm:$0xff] }
  0xc5   :  { %v317_v13 = vld [vmem:[%s3807_s1 + $0x828] sm:$0xff]  ;;  %911 = vmatpush.msrb.mxu3 %v517_v47  ;;  %v158_v50 = vld [vmem:[%s3807_s1 + $0x330] sm:$0xff] }
  0xc6   :  { %v389_v14 = vld [vmem:[%s3807_s1 + $0xa68] sm:$0xff]  ;;  %853 = vmatpush.msrb.mxu0 %v317_v13  ;;  %v282_v51 = vld [vmem:[%s3807_s1 + $0x710] sm:$0xff] }
  0xc7   :  { %v445_v52 = vld [vmem:[%s3807_s1 + $0xc28] sm:$0xff]  ;;  %871 = vmatpush.msrb.mxu1 %v389_v14  ;;  %v82_v54 = vld [vmem:[%s3807_s1 + $0xd0] sm:$0xff] }
  0xc8   :  { %v513_v16 = vld [vmem:[%s3807_s1 + $0xe48] sm:$0xff]  ;;  %893 = vmatpush.msrb.mxu2 %v445_v52  ;;  %v210_v55 = vld [vmem:[%s3807_s1 + $0x4d0] sm:$0xff] }
  0xc9   :  { %v313_v53 = vld [vmem:[%s3807_s1 + $0x808] sm:$0xff]  ;;  %912 = vmatpush.msrb.mxu3 %v513_v16  ;;  %v154_v56 = vld [vmem:[%s3807_s1 + $0x310] sm:$0xff] }
  0xca   :  { %v385_v17 = vld [vmem:[%s3807_s1 + $0xa48] sm:$0xff]  ;;  %854 = vmatpush.msrb.mxu0 %v313_v53  ;;  %v278_v57 = vld [vmem:[%s3807_s1 + $0x6f0] sm:$0xff] }
  0xcb   :  { %v441_v18 = vld [vmem:[%s3807_s1 + $0xc08] sm:$0xff]  ;;  %872 = vmatpush.msrb.mxu1 %v385_v17  ;;  %855 = vmatmul.f32.vlgmr.msrb.gmra.mxu0 %v2382_v8  ;;  %v182_v8 = vld [vmem:[%s3807_s1 + $0x3f0] sm:$0xff] }
  0xcc   :  { %v509_v19 = vld [vmem:[%s3807_s1 + $0xe28] sm:$0xff]  ;;  %894 = vmatpush.msrb.mxu2 %v441_v18  ;;  %919 = vmatpush.msra.mxu0 %v118_v58  ;;  %v78_v59 = vld [vmem:[%s3807_s1 + $0xb0] sm:$0xff] }
  0xcd   :  { %v381_v21 = vld [vmem:[%s3807_s1 + $0xa28] sm:$0xff]  ;;  %913 = vmatpush.msrb.mxu3 %v509_v19  ;;  %895 = vmatmul.f32.vlgmr.msrb.gmra.mxu2 %v2368_v3  ;;  %v206_v60 = vld [vmem:[%s3807_s1 + $0x4b0] sm:$0xff] }
  0xce   :  { %v505_v22 = vld [vmem:[%s3807_s1 + $0xe08] sm:$0xff]  ;;  %959 = vmatpush.msra.mxu2 %v246_v20  ;;  %873 = vmatpush.msrb.mxu1 %v381_v21  ;;  %v150_v61 = vld [vmem:[%s3807_s1 + $0x2f0] sm:$0xff] }
  0xcf   :  { %914 = vmatpush.msrb.mxu3 %v505_v22  ;;  %v377_v3 = vld [vmem:[%s3807_s1 + $0xa08] sm:$0xff]  ;;  %920 = vmatpush.msra.mxu0 %v114_v23  ;;  %v274_v62 = vld [vmem:[%s3807_s1 + $0x6d0] sm:$0xff] }
  0xd0   :  { %915 = vmatmul.f32.vlgmr.msrb.gmra.mxu3 %v2385_v9  ;;  %960 = vmatpush.msra.mxu2 %v242_v24  ;;  %v106_v9 = vld [vmem:[%s3807_s1 + $0x190] sm:$0xff] }
  0xd1   :  { %979 = vmatpush.msra.mxu3 %v310_v25  ;;  %874 = vmatpush.msrb.mxu1 %v377_v3  ;;  %v74_v63 = vld [vmem:[%s3807_s1 + $0x90] sm:$0xff] }
  0xd2   :  { %921 = vmatpush.msra.mxu0 %v110_v26  ;;  %875 = vmatmul.f32.vlgmr.msrb.gmra.mxu1 %v2404_v15  ;;  %v174_v15 = vld [vmem:[%s3807_s1 + $0x3b0] sm:$0xff] }
  0xd3   :  { %961 = vmatpush.msra.mxu2 %v238_v27  ;;  %939 = vmatpush.msra.mxu1 %v182_v8  ;;  %v202_v0 = vld [vmem:[%s3807_s1 + $0x490] sm:$0xff] }
  0xd4   :  { %980 = vmatpush.msra.mxu3 %v306_v28  ;;  %922 = vmatpush.msra.mxu0 %v106_v9  ;;  %v146_v1 = vld [vmem:[%s3807_s1 + $0x2d0] sm:$0xff] }
  0xd5   :  { %962 = vmatpush.msra.mxu2 %v234_v29  ;;  %940 = vmatpush.msra.mxu1 %v178_v30  ;;  %v270_v2 = vld [vmem:[%s3807_s1 + $0x6b0] sm:$0xff] }
  0xd6   :  { %981 = vmatpush.msra.mxu3 %v302_v31  ;;  %923 = vmatpush.msra.mxu0 %v102_v32  ;;  %v70_v4 = vld [vmem:[%s3807_s1 + $0x70] sm:$0xff] }
  0xd7   :  { %963 = vmatpush.msra.mxu2 %v230_v33  ;;  %941 = vmatpush.msra.mxu1 %v174_v15  ;;  %v198_v5 = vld [vmem:[%s3807_s1 + $0x470] sm:$0xff] }
  0xd8   :  { %982 = vmatpush.msra.mxu3 %v298_v34  ;;  %924 = vmatpush.msra.mxu0 %v98_v35  ;;  %v142_v6 = vld [vmem:[%s3807_s1 + $0x2b0] sm:$0xff] }
  0xd9   :  { %964 = vmatpush.msra.mxu2 %v226_v36  ;;  %942 = vmatpush.msra.mxu1 %v170_v37  ;;  %v266_v7 = vld [vmem:[%s3807_s1 + $0x690] sm:$0xff] }
  0xda   :  { %983 = vmatpush.msra.mxu3 %v294_v38  ;;  %925 = vmatpush.msra.mxu0 %v94_v39  ;;  %v66_v10 = vld [vmem:[%s3807_s1 + $0x50] sm:$0xff] }
  0xdb   :  { %965 = vmatpush.msra.mxu2 %v222_v40  ;;  %943 = vmatpush.msra.mxu1 %v166_v41  ;;  %v194_v11 = vld [vmem:[%s3807_s1 + $0x450] sm:$0xff]  ;;  %v3045_v41 = vld [vmem:[%s3808_s2] sm:$0xf] }
  0xdc   :  { %984 = vmatpush.msra.mxu3 %v290_v42  ;;  %926 = vmatpush.msra.mxu0 %v90_v43  ;;  %v138_v12 = vld [vmem:[%s3807_s1 + $0x290] sm:$0xff] }
  0xdd   :  { %966 = vmatpush.msra.mxu2 %v218_v44  ;;  %944 = vmatpush.msra.mxu1 %v162_v45  ;;  %v262_v47 = vld [vmem:[%s3807_s1 + $0x670] sm:$0xff] }
  0xde   :  { %985 = vmatpush.msra.mxu3 %v286_v46  ;;  %927 = vmatpush.msra.mxu0 %v86_v48  ;;  %v62_v13 = vld [vmem:[%s3807_s1 + $0x30] sm:$0xff] }
  0xdf   :  { %967 = vmatpush.msra.mxu2 %v214_v49  ;;  %945 = vmatpush.msra.mxu1 %v158_v50  ;;  %v190_v14 = vld [vmem:[%s3807_s1 + $0x430] sm:$0xff]  ;;  %v570_v49 = vperm.slane %v3045_v41, 0 }
  0xe0   :  { %986 = vmatpush.msra.mxu3 %v282_v51  ;;  %928 = vmatpush.msra.mxu0 %v82_v54  ;;  %v134_v52 = vld [vmem:[%s3807_s1 + $0x270] sm:$0xff] }
  0xe1   :  { %968 = vmatpush.msra.mxu2 %v210_v55  ;;  %946 = vmatpush.msra.mxu1 %v154_v56  ;;  %v258_v16 = vld [vmem:[%s3807_s1 + $0x650] sm:$0xff] }
  0xe2   :  { %987 = vmatpush.msra.mxu3 %v278_v57  ;;  %929 = vmatpush.msra.mxu0 %v78_v59  ;;  %v58_v53 = vld [vmem:[%s3807_s1 + $0x10] sm:$0xff] }
  0xe3   :  { %969 = vmatpush.msra.mxu2 %v206_v60  ;;  %947 = vmatpush.msra.mxu1 %v150_v61  ;;  %v186_v17 = vld [vmem:[%s3807_s1 + $0x410] sm:$0xff] }
  0xe4   :  { %988 = vmatpush.msra.mxu3 %v274_v62  ;;  %930 = vmatpush.msra.mxu0 %v74_v63  ;;  %v130_v18 = vld [vmem:[%s3807_s1 + $0x250] sm:$0xff] }
  0xe5   :  { %970 = vmatpush.msra.mxu2 %v202_v0  ;;  %948 = vmatpush.msra.mxu1 %v146_v1  ;;  %v254_v19 = vld [vmem:[%s3807_s1 + $0x630] sm:$0xff] }
  0xe6   :  { %989 = vmatpush.msra.mxu3 %v270_v2  ;;  %931 = vmatpush.msra.mxu0 %v70_v4  ;;  %v374_v58 = vld [vmem:[%s3807_s1 + $0x9f0] sm:$0xff]  ;;  %v636_v4 = vpop.f32.mrf.mxu1 }
  0xe7   :  { %971 = vmatpush.msra.mxu2 %v198_v5  ;;  %949 = vmatpush.msra.mxu1 %v142_v6  ;;  %v502_v20 = vld [vmem:[%s3807_s1 + $0xdf0] sm:$0xff] }
  0xe8   :  { %990 = vmatpush.msra.mxu3 %v266_v7  ;;  %932 = vmatpush.msra.mxu0 %v66_v10  ;;  %v126_v21 = vld [vmem:[%s3807_s1 + $0x230] sm:$0xff]  ;;  %v656_v10 = vpop.f32.mrf.mxu2 }
  0xe9   :  { %972 = vmatpush.msra.mxu2 %v194_v11  ;;  %950 = vmatpush.msra.mxu1 %v138_v12  ;;  %v250_v22 = vld [vmem:[%s3807_s1 + $0x610] sm:$0xff] }
  0xea   :  { %991 = vmatpush.msra.mxu3 %v262_v47  ;;  %933 = vmatpush.msra.mxu0 %v62_v13  ;;  %v370_v23 = vld [vmem:[%s3807_s1 + $0x9d0] sm:$0xff] }
  0xeb   :  { %973 = vmatpush.msra.mxu2 %v190_v14  ;;  %951 = vmatpush.msra.mxu1 %v134_v52  ;;  %v498_v24 = vld [vmem:[%s3807_s1 + $0xdd0] sm:$0xff] }
  0xec   :  { %992 = vmatpush.msra.mxu3 %v258_v16  ;;  %934 = vmatpush.msra.mxu0 %v58_v53  ;;  %v566_v25 = vld [vmem:[%s3807_s1 + $0xff0] sm:$0xff]  ;;  %v676_v16 = vpop.f32.mrf.mxu3 }
  0xed   :  { %974 = vmatpush.msra.mxu2 %v186_v17  ;;  %952 = vmatpush.msra.mxu1 %v130_v18  ;;  %v122_v3 = vld [vmem:[%s3807_s1 + $0x210] sm:$0xff]  ;;  %v1911_v18 = vmov 2.0  }
  0xee   :  { %993 = vmatpush.msra.mxu3 %v254_v19  ;;  %999 = vmatpush.msrb.mxu0 %v374_v58  ;;  %v366_v26 = vld [vmem:[%s3807_s1 + $0x9b0] sm:$0xff]  ;;  %1859 = vrcp.f32 %v1911_v18 }
  0xef   :  { %1039 = vmatpush.msrb.mxu2 %v502_v20  ;;  %953 = vmatpush.msra.mxu1 %v126_v21  ;;  %v438_v27 = vld [vmem:[%s3807_s1 + $0xbf0] sm:$0xff] }
  0xf0   :  { %994 = vmatpush.msra.mxu3 %v250_v22  ;;  %1000 = vmatpush.msrb.mxu0 %v370_v23  ;;  %v494_v8 = vld [vmem:[%s3807_s1 + $0xdb0] sm:$0xff]  ;;  %v3138_v23 = vld.sshfl [vmem:[#allocation1] sm:$0xff pattern:$0x73625140] }
  0xf1   :  { %1040 = vmatpush.msrb.mxu2 %v498_v24  ;;  %v562_v28 = vld [vmem:[%s3807_s1 + $0xfd0] sm:$0xff]  ;;  %954 = vmatpush.msra.mxu1 %v122_v3  ;;  %v3144_v3 = vld.sshfl [vmem:[#allocation1 + $0x18] sm:$0xff pattern:$0x73625140] }
  0xf2   :  { %1059 = vmatpush.msrb.mxu3 %v566_v25  ;;  %v362_v9 = vld [vmem:[%s3807_s1 + $0x990] sm:$0xff]  ;;  %1001 = vmatpush.msrb.mxu0 %v366_v26 }
  0xf3   :  { %v434_v29 = vld [vmem:[%s3807_s1 + $0xbd0] sm:$0xff]  ;;  %1019 = vmatpush.msrb.mxu1 %v438_v27  ;;  %1041 = vmatpush.msrb.mxu2 %v494_v8 }
  0xf4   :  { %v490_v30 = vld [vmem:[%s3807_s1 + $0xd90] sm:$0xff]  ;;  %1060 = vmatpush.msrb.mxu3 %v562_v28  ;;  %1002 = vmatpush.msrb.mxu0 %v362_v9  ;;  %v3159_v9 = vpop.eup %1859 }
  0xf5   :  { %v558_v31 = vld [vmem:[%s3807_s1 + $0xfb0] sm:$0xff]  ;;  %1020 = vmatpush.msrb.mxu1 %v434_v29  ;;  %1042 = vmatpush.msrb.mxu2 %v490_v30  ;;  %v616_v59 = vpop.f32.mrf.mxu0  ;;  %v3161_v29 = vld.sshfl [vmem:[#allocation1 + $0x8] sm:$0xff pattern:$0x73625140]  ;;  %vm1279_vm1 = vweird.f32 %v3159_v9 }
  0xf6   :  { %v358_v32 = vld [vmem:[%s3807_s1 + $0x970] sm:$0xff]  ;;  %1061 = vmatpush.msrb.mxu3 %v558_v31  ;;  %v617_v62 = vadd.f32 %v616_v59, %v570_v49  ;;  %935 = vmatmul.f32.vlgmr.msra.gmra.mxu0 %v3138_v23  ;;  %v311_v49 = vld [vmem:[%s3807_s1 + $0x7f8] sm:$0xff] }
  0xf7   :  { %v430_v33 = vld [vmem:[%s3807_s1 + $0xbb0] sm:$0xff]  ;;  %1003 = vmatpush.msrb.mxu0 %v358_v32  ;;  %995 = vmatmul.f32.vlgmr.msra.gmra.mxu3 %v3144_v3  ;;  %v239_v59 = vld [vmem:[%s3807_s1 + $0x5b8] sm:$0xff] }
  0xf8   :  { %v486_v15 = vld [vmem:[%s3807_s1 + $0xd70] sm:$0xff]  ;;  %1021 = vmatpush.msrb.mxu1 %v430_v33  ;;  %v637_v7 = vadd.f32 %v636_v4, %v617_v62  ;;  %v179_v4 = vld [vmem:[%s3807_s1 + $0x3d8] sm:$0xff] }
  0xf9   :  { %v554_v34 = vld [vmem:[%s3807_s1 + $0xf90] sm:$0xff]  ;;  %1043 = vmatpush.msrb.mxu2 %v486_v15  ;;  %955 = vmatmul.f32.vlgmr.msra.gmra.mxu1 %v3161_v29 }
  0xfa   :  { %v354_v35 = vld [vmem:[%s3807_s1 + $0x950] sm:$0xff]  ;;  %1062 = vmatpush.msrb.mxu3 %v554_v34  ;;  %v657_v13 = vadd.f32 %v656_v10, %v637_v7  ;;  %v103_v7 = vld [vmem:[%s3807_s1 + $0x178] sm:$0xff] }
  0xfb   :  { %v426_v36 = vld [vmem:[%s3807_s1 + $0xb90] sm:$0xff]  ;;  %1004 = vmatpush.msrb.mxu0 %v354_v35  ;;  %v231_v10 = vld [vmem:[%s3807_s1 + $0x578] sm:$0xff] }
  0xfc   :  { %v482_v37 = vld [vmem:[%s3807_s1 + $0xd50] sm:$0xff]  ;;  %1022 = vmatpush.msrb.mxu1 %v426_v36  ;;  %v677_v17 = vadd.f32 %v676_v16, %v657_v13  ;;  %v119_v36 = vld [vmem:[%s3807_s1 + $0x1f8] sm:$0xff] }
  0xfd   :  { %v550_v38 = vld [vmem:[%s3807_s1 + $0xf70] sm:$0xff]  ;;  %1044 = vmatpush.msrb.mxu2 %v482_v37  ;;  %v247_v37 = vld [vmem:[%s3807_s1 + $0x5f8] sm:$0xff] }
  0xfe   :  { %v350_v39 = vld [vmem:[%s3807_s1 + $0x930] sm:$0xff]  ;;  %1063 = vmatpush.msrb.mxu3 %v550_v38 }
  0xff   :  { %v422_v40 = vld [vmem:[%s3807_s1 + $0xb70] sm:$0xff]  ;;  %1005 = vmatpush.msrb.mxu0 %v350_v39 }
 0x100   :  { %v478_v42 = vld [vmem:[%s3807_s1 + $0xd30] sm:$0xff]  ;;  %1023 = vmatpush.msrb.mxu1 %v422_v40 }
 0x101   :  { %v546_v43 = vld [vmem:[%s3807_s1 + $0xf50] sm:$0xff]  ;;  %1045 = vmatpush.msrb.mxu2 %v478_v42  ;;  %v1275_v42 = vmul.f32 2.0, %v3159_v9 }
 0x102   :  { %v346_v44 = vld [vmem:[%s3807_s1 + $0x910] sm:$0xff]  ;;  %1064 = vmatpush.msrb.mxu3 %v546_v43 }
 0x103   :  { %v418_v45 = vld [vmem:[%s3807_s1 + $0xb50] sm:$0xff]  ;;  %1006 = vmatpush.msrb.mxu0 %v346_v44 }
 0x104   :  { %v474_v46 = vld [vmem:[%s3807_s1 + $0xd10] sm:$0xff]  ;;  %1024 = vmatpush.msrb.mxu1 %v418_v45  ;;  %v696_v22 = vpop.f32.mrf.mxu0  ;;  %v115_v45 = vld [vmem:[%s3807_s1 + $0x1d8] sm:$0xff] }
 0x105   :  { %v542_v48 = vld [vmem:[%s3807_s1 + $0xf30] sm:$0xff]  ;;  %1046 = vmatpush.msrb.mxu2 %v474_v46  ;;  %v697_v25 = vadd.f32 %v696_v22, %v677_v17  ;;  %v295_v17 = vld [vmem:[%s3807_s1 + $0x778] sm:$0xff] }
 0x106   :  { %v342_v50 = vld [vmem:[%s3807_s1 + $0x8f0] sm:$0xff]  ;;  %1065 = vmatpush.msrb.mxu3 %v542_v48  ;;  %v243_v48 = vld [vmem:[%s3807_s1 + $0x5d8] sm:$0xff] }
 0x107   :  { %v414_v51 = vld [vmem:[%s3807_s1 + $0xb30] sm:$0xff]  ;;  %1007 = vmatpush.msrb.mxu0 %v342_v50  ;;  %v716_v32 = vpop.f32.mrf.mxu1  ;;  %v736_v33 = vpop.f32.mrf.mxu2  ;;  %v3203_v50 = vld.sshfl [vmem:[#allocation1 + $0x20] sm:$0xff pattern:$0x73625140]  ;;  %v291_v22 = vld [vmem:[%s3807_s1 + $0x758] sm:$0xff] }
 0x108   :  { %v470_v54 = vld [vmem:[%s3807_s1 + $0xcf0] sm:$0xff]  ;;  %1025 = vmatpush.msrb.mxu1 %v414_v51  ;;  %v717_v35 = vadd.f32 %v716_v32, %v697_v25  ;;  %v91_v25 = vld [vmem:[%s3807_s1 + $0x118] sm:$0xff] }
 0x109   :  { %v538_v55 = vld [vmem:[%s3807_s1 + $0xf10] sm:$0xff]  ;;  %1047 = vmatpush.msrb.mxu2 %v470_v54  ;;  %v111_v54 = vld [vmem:[%s3807_s1 + $0x1b8] sm:$0xff] }
 0x10a   :  { %v338_v56 = vld [vmem:[%s3807_s1 + $0x8d0] sm:$0xff]  ;;  %1066 = vmatpush.msrb.mxu3 %v538_v55  ;;  %v737_v39 = vadd.f32 %v736_v33, %v717_v35  ;;  %v756_v40 = vpop.f32.mrf.mxu3  ;;  %v159_v32 = vld [vmem:[%s3807_s1 + $0x338] sm:$0xff] }
 0x10b   :  { %v410_v57 = vld [vmem:[%s3807_s1 + $0xb10] sm:$0xff]  ;;  %1008 = vmatpush.msrb.mxu0 %v338_v56  ;;  %v1276_v56 = vsub.f32 1.0, %v1275_v42  ;;  %v283_v33 = vld [vmem:[%s3807_s1 + $0x718] sm:$0xff] }
 0x10c   :  { %v466_v60 = vld [vmem:[%s3807_s1 + $0xcd0] sm:$0xff]  ;;  %1026 = vmatpush.msrb.mxu1 %v410_v57  ;;  %v3195_v46 = vadd.f32 %v756_v40, %v737_v39  ;;  %v3213_v57 = vld.sshfl [vmem:[#allocation1 + $0x38] sm:$0xff pattern:$0x73625140] }
 0x10d   :  { %v534_v61 = vld [vmem:[%s3807_s1 + $0xef0] sm:$0xff]  ;;  %1048 = vmatpush.msrb.mxu2 %v466_v60  ;;  %v183_v60 = vld [vmem:[%s3807_s1 + $0x3f8] sm:$0xff] }
 0x10e   :  { %v334_v63 = vld [vmem:[%s3807_s1 + $0x8b0] sm:$0xff]  ;;  %1067 = vmatpush.msrb.mxu3 %v534_v61  ;;  %v1239_v55 = vmax.f32 %v3195_v46, 0.0  ;;  %v307_v61 = vld [vmem:[%s3807_s1 + $0x7d8] sm:$0xff] }
 0x10f   :  { %v406_v0 = vld [vmem:[%s3807_s1 + $0xaf0] sm:$0xff]  ;;  %1009 = vmatpush.msrb.mxu0 %v334_v63  ;;  %v107_v63 = vld [vmem:[%s3807_s1 + $0x198] sm:$0xff] }
 0x110   :  { %v462_v1 = vld [vmem:[%s3807_s1 + $0xcb0] sm:$0xff]  ;;  %1027 = vmatpush.msrb.mxu1 %v406_v0  ;;  %v1246_v62 = vsel %vm1245_vm0, %v1239_v55, 0.0  ;;  %v235_v0 = vld [vmem:[%s3807_s1 + $0x598] sm:$0xff] }
 0x111   :  { %v530_v2 = vld [vmem:[%s3807_s1 + $0xed0] sm:$0xff]  ;;  %1049 = vmatpush.msrb.mxu2 %v462_v1  ;;  %v1247_v1 = vrot.slane %v1246_v62, 4  ;;  %v211_v35 = vld [vmem:[%s3807_s1 + $0x4d8] sm:$0xff] }
 0x112   :  { %v330_v5 = vld [vmem:[%s3807_s1 + $0x890] sm:$0xff]  ;;  %1068 = vmatpush.msrb.mxu3 %v530_v2  ;;  %v3234_v2 = vld.sshfl [vmem:[#allocation1 + $0x28] sm:$0xff pattern:$0x73625140]  ;;  %v79_v39 = vld [vmem:[%s3807_s1 + $0xb8] sm:$0xff] }
 0x113   :  { %v402_v6 = vld [vmem:[%s3807_s1 + $0xad0] sm:$0xff]  ;;  %1010 = vmatpush.msrb.mxu0 %v330_v5  ;;  %v303_v5 = vld [vmem:[%s3807_s1 + $0x7b8] sm:$0xff] }
 0x114   :  { %v458_v11 = vld [vmem:[%s3807_s1 + $0xc90] sm:$0xff]  ;;  %1028 = vmatpush.msrb.mxu1 %v402_v6  ;;  %v1277_v6 = vmul.f32 %v3159_v9, %v1276_v56  ;;  %v207_v40 = vld [vmem:[%s3807_s1 + $0x4b8] sm:$0xff] }
 0x115   :  { %v526_v12 = vld [vmem:[%s3807_s1 + $0xeb0] sm:$0xff]  ;;  %1050 = vmatpush.msrb.mxu2 %v458_v11  ;;  %v1248_v11 = vadd.f32 %v1247_v1, %v1246_v62  ;;  %v151_v42 = vld [vmem:[%s3807_s1 + $0x2f8] sm:$0xff] }
 0x116   :  { %v326_v47 = vld [vmem:[%s3807_s1 + $0x870] sm:$0xff]  ;;  %1069 = vmatpush.msrb.mxu3 %v526_v12  ;;  %v175_v12 = vld [vmem:[%s3807_s1 + $0x3b8] sm:$0xff]  ;;  %v1278_v16 = vadd.f32 %v3159_v9, %v1277_v6 }
 0x117   :  { %v398_v14 = vld [vmem:[%s3807_s1 + $0xab0] sm:$0xff]  ;;  %1011 = vmatpush.msrb.mxu0 %v326_v47  ;;  %v299_v47 = vld [vmem:[%s3807_s1 + $0x798] sm:$0xff]  ;;  %v1249_v13 = vrot.slane %v1248_v11, 2 }
 0x118   :  { %v454_v52 = vld [vmem:[%s3807_s1 + $0xc70] sm:$0xff]  ;;  %1029 = vmatpush.msrb.mxu1 %v398_v14  ;;  %v99_v14 = vld [vmem:[%s3807_s1 + $0x158] sm:$0xff] }
 0x119   :  { %v522_v53 = vld [vmem:[%s3807_s1 + $0xe90] sm:$0xff]  ;;  %1051 = vmatpush.msrb.mxu2 %v454_v52  ;;  %v227_v52 = vld [vmem:[%s3807_s1 + $0x558] sm:$0xff]  ;;  %v1250_v18 = vadd.f32 %v1249_v13, %v1248_v11 }
 0x11a   :  { %v3126_v19 = vld.sshfl [vmem:[#allocation1 + $0x10] sm:$0xff pattern:$0x73625140]  ;;  %1070 = vmatpush.msrb.mxu3 %v522_v53  ;;  %v171_v53 = vld [vmem:[%s3807_s1 + $0x398] sm:$0xff] }
 0x11b   :  { %975 = vmatmul.f32.vlgmr.msra.gmra.mxu2 %v3126_v19  ;;  %v322_v58 = vld [vmem:[%s3807_s1 + $0x850] sm:$0xff]  ;;  %v75_v46 = vld [vmem:[%s3807_s1 + $0x98] sm:$0xff] }
 0x11c   :  { %v394_v20 = vld [vmem:[%s3807_s1 + $0xa90] sm:$0xff]  ;;  %1012 = vmatpush.msrb.mxu0 %v322_v58  ;;  %v95_v58 = vld [vmem:[%s3807_s1 + $0x138] sm:$0xff] }
 0x11d   :  { %v450_v21 = vld [vmem:[%s3807_s1 + $0xc50] sm:$0xff]  ;;  %1030 = vmatpush.msrb.mxu1 %v394_v20  ;;  %v223_v20 = vld [vmem:[%s3807_s1 + $0x538] sm:$0xff] }
 0x11e   :  { %v518_v24 = vld [vmem:[%s3807_s1 + $0xe70] sm:$0xff]  ;;  %1052 = vmatpush.msrb.mxu2 %v450_v21  ;;  %v167_v21 = vld [vmem:[%s3807_s1 + $0x378] sm:$0xff] }
 0x11f   :  { %v318_v26 = vld [vmem:[%s3807_s1 + $0x830] sm:$0xff]  ;;  %1071 = vmatpush.msrb.mxu3 %v518_v24  ;;  %v1251_v24 = vrot.slane %v1250_v18, 1  ;;  %v199_v56 = vld [vmem:[%s3807_s1 + $0x478] sm:$0xff] }
 0x120   :  { %v390_v27 = vld [vmem:[%s3807_s1 + $0xa70] sm:$0xff]  ;;  %1013 = vmatpush.msrb.mxu0 %v318_v26  ;;  %v219_v26 = vld [vmem:[%s3807_s1 + $0x518] sm:$0xff] }
 0x121   :  { %v446_v8 = vld [vmem:[%s3807_s1 + $0xc30] sm:$0xff]  ;;  %1031 = vmatpush.msrb.mxu1 %v390_v27  ;;  %v3289_v27 = vsel %vm1279_vm1, %v3159_v9, %v1278_v16  ;;  %v215_v9 = vld [vmem:[%s3807_s1 + $0x4f8] sm:$0xff] }
 0x122   :  { %v514_v28 = vld [vmem:[%s3807_s1 + $0xe50] sm:$0xff]  ;;  %1053 = vmatpush.msrb.mxu2 %v446_v8  ;;  %v163_v8 = vld [vmem:[%s3807_s1 + $0x358] sm:$0xff] }
 0x123   :  { %v314_v30 = vld [vmem:[%s3807_s1 + $0x810] sm:$0xff]  ;;  %1072 = vmatpush.msrb.mxu3 %v514_v28  ;;  %v287_v28 = vld [vmem:[%s3807_s1 + $0x738] sm:$0xff] }
 0x124   :  { %v386_v31 = vld [vmem:[%s3807_s1 + $0xa50] sm:$0xff]  ;;  %1014 = vmatpush.msrb.mxu0 %v314_v30  ;;  %v1252_v30 = vadd.f32 %v1251_v24, %v1250_v18  ;;  %v195_v62 = vld [vmem:[%s3807_s1 + $0x458] sm:$0xff] }
 0x125   :  { %v442_v15 = vld [vmem:[%s3807_s1 + $0xc10] sm:$0xff]  ;;  %1032 = vmatpush.msrb.mxu1 %v386_v31  ;;  %1015 = vmatmul.f32.vlgmr.msrb.gmra.mxu0 %v3203_v50  ;;  %v87_v31 = vld [vmem:[%s3807_s1 + $0xf8] sm:$0xff] }
 0x126   :  { %v510_v34 = vld [vmem:[%s3807_s1 + $0xe30] sm:$0xff]  ;;  %1054 = vmatpush.msrb.mxu2 %v442_v15  ;;  %1079 = vmatpush.msra.mxu0 %v119_v36  ;;  %v1281_v15 = vmul.f32 %v3289_v27, %v1252_v30  ;;  %v155_v36 = vld [vmem:[%s3807_s1 + $0x318] sm:$0xff] }
 0x127   :  { %v382_v38 = vld [vmem:[%s3807_s1 + $0xa30] sm:$0xff]  ;;  %1073 = vmatpush.msrb.mxu3 %v510_v34  ;;  %v83_v34 = vld [vmem:[%s3807_s1 + $0xd8] sm:$0xff] }
 0x128   :  { %v506_v43 = vld [vmem:[%s3807_s1 + $0xe10] sm:$0xff]  ;;  %1119 = vmatpush.msra.mxu2 %v247_v37  ;;  %1033 = vmatpush.msrb.mxu1 %v382_v38  ;;  %v279_v37 = vld [vmem:[%s3807_s1 + $0x6f8] sm:$0xff]  ;;  %v3324_v38 = vsub.f32 %v1239_v55, %v1281_v15 }
 0x129   :  { %v3189_v44 = vld.sshfl [vmem:[#allocation1 + $0x30] sm:$0xff pattern:$0x73625140]  ;;  %1074 = vmatpush.msrb.mxu3 %v506_v43  ;;  %1080 = vmatpush.msra.mxu0 %v115_v45  ;;  %v275_v43 = vld [vmem:[%s3807_s1 + $0x6d8] sm:$0xff] }
 0x12a   :  { %1055 = vmatmul.f32.vlgmr.msrb.gmra.mxu2 %v3189_v44  ;;  %v378_v51 = vld [vmem:[%s3807_s1 + $0xa10] sm:$0xff]  ;;  %1075 = vmatmul.f32.vlgmr.msrb.gmra.mxu3 %v3213_v57  ;;  %v1289_v45 = vmul.f32 %v3324_v38, %v3324_v38  ;;  %v71_v55 = vld [vmem:[%s3807_s1 + $0x78] sm:$0xff] }
 0x12b   :  { %1120 = vmatpush.msra.mxu2 %v243_v48  ;;  %1139 = vmatpush.msra.mxu3 %v311_v49  ;;  %v203_v48 = vld [vmem:[%s3807_s1 + $0x498] sm:$0xff] }
 0x12c   :  { %1034 = vmatpush.msrb.mxu1 %v378_v51  ;;  %1081 = vmatpush.msra.mxu0 %v111_v54  ;;  %v147_v49 = vld [vmem:[%s3807_s1 + $0x2d8] sm:$0xff]  ;;  %v1293_v54 = vsel %vm1245_vm0, %v1289_v45, 0.0 }
 0x12d   :  { %1035 = vmatmul.f32.vlgmr.msrb.gmra.mxu1 %v3234_v2  ;;  %1121 = vmatpush.msra.mxu2 %v239_v59  ;;  %v271_v51 = vld [vmem:[%s3807_s1 + $0x6b8] sm:$0xff] }
 0x12e   :  { %1099 = vmatpush.msra.mxu1 %v183_v60  ;;  %1140 = vmatpush.msra.mxu3 %v307_v61  ;;  %v143_v59 = vld [vmem:[%s3807_s1 + $0x2b8] sm:$0xff] }
 0x12f   :  { %1082 = vmatpush.msra.mxu0 %v107_v63  ;;  %1122 = vmatpush.msra.mxu2 %v235_v0  ;;  %v267_v60 = vld [vmem:[%s3807_s1 + $0x698] sm:$0xff]  ;;  %v1294_v63 = vrot.slane %v1293_v54, 4 }
 0x130   :  { %1100 = vmatpush.msra.mxu1 %v179_v4  ;;  %1141 = vmatpush.msra.mxu3 %v303_v5  ;;  %v67_v61 = vld [vmem:[%s3807_s1 + $0x58] sm:$0xff] }
 0x131   :  { %1083 = vmatpush.msra.mxu0 %v103_v7  ;;  %1123 = vmatpush.msra.mxu2 %v231_v10  ;;  %v139_v0 = vld [vmem:[%s3807_s1 + $0x298] sm:$0xff] }
 0x132   :  { %1101 = vmatpush.msra.mxu1 %v175_v12  ;;  %1142 = vmatpush.msra.mxu3 %v299_v47  ;;  %v263_v1 = vld [vmem:[%s3807_s1 + $0x678] sm:$0xff]  ;;  %v1295_v12 = vadd.f32 %v1294_v63, %v1293_v54 }
 0x133   :  { %1084 = vmatpush.msra.mxu0 %v99_v14  ;;  %1124 = vmatpush.msra.mxu2 %v227_v52  ;;  %v63_v4 = vld [vmem:[%s3807_s1 + $0x38] sm:$0xff] }
 0x134   :  { %1102 = vmatpush.msra.mxu1 %v171_v53  ;;  %1143 = vmatpush.msra.mxu3 %v295_v17  ;;  %v191_v5 = vld [vmem:[%s3807_s1 + $0x438] sm:$0xff] }
 0x135   :  { %1085 = vmatpush.msra.mxu0 %v95_v58  ;;  %1125 = vmatpush.msra.mxu2 %v223_v20  ;;  %v135_v6 = vld [vmem:[%s3807_s1 + $0x278] sm:$0xff]  ;;  %v1296_v58 = vrot.slane %v1295_v12, 2 }
 0x136   :  { %1103 = vmatpush.msra.mxu1 %v167_v21  ;;  %1144 = vmatpush.msra.mxu3 %v291_v22  ;;  %v259_v7 = vld [vmem:[%s3807_s1 + $0x658] sm:$0xff] }
 0x137   :  { %1086 = vmatpush.msra.mxu0 %v91_v25  ;;  %1126 = vmatpush.msra.mxu2 %v219_v26  ;;  %v59_v10 = vld [vmem:[%s3807_s1 + $0x18] sm:$0xff]  ;;  %v1297_v30 = vadd.f32 %v1296_v58, %v1295_v12 }
 0x138   :  { %1104 = vmatpush.msra.mxu1 %v163_v8  ;;  %1145 = vmatpush.msra.mxu3 %v287_v28  ;;  %v187_v11 = vld [vmem:[%s3807_s1 + $0x418] sm:$0xff] }
 0x139   :  { %1087 = vmatpush.msra.mxu0 %v87_v31  ;;  %1127 = vmatpush.msra.mxu2 %v215_v9  ;;  %v131_v47 = vld [vmem:[%s3807_s1 + $0x258] sm:$0xff] }
 0x13a   :  { %1105 = vmatpush.msra.mxu1 %v159_v32  ;;  %1146 = vmatpush.msra.mxu3 %v283_v33  ;;  %v255_v13 = vld [vmem:[%s3807_s1 + $0x638] sm:$0xff] }
 0x13b   :  { %1088 = vmatpush.msra.mxu0 %v83_v34  ;;  %1128 = vmatpush.msra.mxu2 %v211_v35  ;;  %v375_v14 = vld [vmem:[%s3807_s1 + $0x9f8] sm:$0xff] }
 0x13c   :  { %1106 = vmatpush.msra.mxu1 %v155_v36  ;;  %1147 = vmatpush.msra.mxu3 %v279_v37  ;;  %v503_v52 = vld [vmem:[%s3807_s1 + $0xdf8] sm:$0xff]  ;;  %v1298_v37 = vrot.slane %v1297_v30, 1 }
 0x13d   :  { %1089 = vmatpush.msra.mxu0 %v79_v39  ;;  %1129 = vmatpush.msra.mxu2 %v207_v40  ;;  %v127_v16 = vld [vmem:[%s3807_s1 + $0x238] sm:$0xff] }
 0x13e   :  { %1107 = vmatpush.msra.mxu1 %v151_v42  ;;  %1148 = vmatpush.msra.mxu3 %v275_v43  ;;  %v251_v53 = vld [vmem:[%s3807_s1 + $0x618] sm:$0xff] }
 0x13f   :  { %1090 = vmatpush.msra.mxu0 %v75_v46  ;;  %1130 = vmatpush.msra.mxu2 %v203_v48  ;;  %v371_v17 = vld [vmem:[%s3807_s1 + $0x9d8] sm:$0xff] }
 0x140   :  { %1108 = vmatpush.msra.mxu1 %v147_v49  ;;  %1149 = vmatpush.msra.mxu3 %v271_v51  ;;  %v499_v18 = vld [vmem:[%s3807_s1 + $0xdd8] sm:$0xff]  ;;  %v1299_v51 = vadd.f32 %v1298_v37, %v1297_v30 }
 0x141   :  { %1091 = vmatpush.msra.mxu0 %v71_v55  ;;  %1131 = vmatpush.msra.mxu2 %v199_v56  ;;  %v567_v20 = vld [vmem:[%s3807_s1 + $0xff8] sm:$0xff]  ;;  %v571_v56 = vperm.slane %v3045_v41, 1 }
 0x142   :  { %1109 = vmatpush.msra.mxu1 %v143_v59  ;;  %1150 = vmatpush.msra.mxu3 %v267_v60  ;;  %v123_v21 = vld [vmem:[%s3807_s1 + $0x218] sm:$0xff] }
 0x143   :  { %1092 = vmatpush.msra.mxu0 %v67_v61  ;;  %1132 = vmatpush.msra.mxu2 %v195_v62  ;;  %v367_v22 = vld [vmem:[%s3807_s1 + $0x9b8] sm:$0xff] }
 0x144   :  { %1110 = vmatpush.msra.mxu1 %v139_v0  ;;  %1151 = vmatpush.msra.mxu3 %v263_v1  ;;  %v439_v24 = vld [vmem:[%s3807_s1 + $0xbf8] sm:$0xff]  ;;  %v776_v0 = vpop.f32.mrf.mxu0  ;;  %v1321_v1 = vmul.f32 %v1299_v51, %v3289_v27  ;;  %v1427_v51 = vld [vmem:[#allocation2 + $0xe0] sm:$0xff] }
 0x145   :  { %1093 = vmatpush.msra.mxu0 %v63_v4  ;;  %1133 = vmatpush.msra.mxu2 %v191_v5  ;;  %v495_v25 = vld [vmem:[%s3807_s1 + $0xdb8] sm:$0xff] }
 0x146   :  { %1111 = vmatpush.msra.mxu1 %v135_v6  ;;  %1152 = vmatpush.msra.mxu3 %v259_v7  ;;  %v563_v26 = vld [vmem:[%s3807_s1 + $0xfd8] sm:$0xff]  ;;  %v777_v6 = vadd.f32 %v776_v0, %v571_v56 }
 0x147   :  { %1094 = vmatpush.msra.mxu0 %v59_v10  ;;  %1134 = vmatpush.msra.mxu2 %v187_v11  ;;  %v363_v8 = vld [vmem:[%s3807_s1 + $0x998] sm:$0xff] }
 0x148   :  { %1112 = vmatpush.msra.mxu1 %v131_v47  ;;  %1153 = vmatpush.msra.mxu3 %v255_v13  ;;  %v435_v28 = vld [vmem:[%s3807_s1 + $0xbd8] sm:$0xff]  ;;  %v796_v47 = vpop.f32.mrf.mxu1 }
 0x149   :  { %1159 = vmatpush.msrb.mxu0 %v375_v14  ;;  %1199 = vmatpush.msrb.mxu2 %v503_v52  ;;  %v491_v31 = vld [vmem:[%s3807_s1 + $0xd98] sm:$0xff]  ;;  %v797_v52 = vadd.f32 %v796_v47, %v777_v6  ;;  %v1451_v47 = vld [vmem:[#allocation2 + $0x1a0] sm:$0xff] }
 0x14a   :  { %1113 = vmatpush.msra.mxu1 %v127_v16  ;;  %1154 = vmatpush.msra.mxu3 %v251_v53  ;;  %v559_v9 = vld [vmem:[%s3807_s1 + $0xfb8] sm:$0xff]  ;;  %v816_v16 = vpop.f32.mrf.mxu2  ;;  %v3541_v53 = vadd.f32 1e-05, %v1321_v1 }
 0x14b   :  { %1160 = vmatpush.msrb.mxu0 %v371_v17  ;;  %1200 = vmatpush.msrb.mxu2 %v499_v18  ;;  %v359_v32 = vld [vmem:[%s3807_s1 + $0x978] sm:$0xff] }
 0x14c   :  { %1219 = vmatpush.msrb.mxu3 %v567_v20  ;;  %1114 = vmatpush.msra.mxu1 %v123_v21  ;;  %v431_v33 = vld [vmem:[%s3807_s1 + $0xbb8] sm:$0xff]  ;;  %v817_v20 = vadd.f32 %v816_v16, %v797_v52  ;;  %1861 = vrsqrt.f32 %v3541_v53  ;;  %vm1335_vm3 = vweird.f32 %v3541_v53 }
 0x14d   :  { %1161 = vmatpush.msrb.mxu0 %v367_v22  ;;  %1201 = vmatpush.msrb.mxu2 %v495_v25  ;;  %v487_v15 = vld [vmem:[%s3807_s1 + $0xd78] sm:$0xff] }
 0x14e   :  { %1179 = vmatpush.msrb.mxu1 %v439_v24  ;;  %1220 = vmatpush.msrb.mxu3 %v563_v26  ;;  %v555_v34 = vld [vmem:[%s3807_s1 + $0xf98] sm:$0xff]  ;;  %v836_v24 = vpop.f32.mrf.mxu3 }
 0x14f   :  { %1162 = vmatpush.msrb.mxu0 %v363_v8  ;;  %1202 = vmatpush.msrb.mxu2 %v491_v31  ;;  %v355_v35 = vld [vmem:[%s3807_s1 + $0x958] sm:$0xff]  ;;  %v837_v26 = vadd.f32 %v836_v24, %v817_v20  ;;  %v856_v31 = vpop.f32.mrf.mxu0  ;;  %v3628_v24 = vld [vmem:[%s3809_s3] sm:$0xf] }
 0x150   :  { %1180 = vmatpush.msrb.mxu1 %v435_v28  ;;  %1221 = vmatpush.msrb.mxu3 %v559_v9  ;;  %v427_v36 = vld [vmem:[%s3807_s1 + $0xb98] sm:$0xff] }
 0x151   :  { %1163 = vmatpush.msrb.mxu0 %v359_v32  ;;  %v483_v39 = vld [vmem:[%s3807_s1 + $0xd58] sm:$0xff]  ;;  %1203 = vmatpush.msrb.mxu2 %v487_v15  ;;  %v857_v9 = vadd.f32 %v856_v31, %v837_v26  ;;  %v1374_v31 = vperm.slane %v3628_v24, 0 }
 0x152   :  { %1181 = vmatpush.msrb.mxu1 %v431_v33  ;;  %v551_v40 = vld [vmem:[%s3807_s1 + $0xf78] sm:$0xff]  ;;  %1222 = vmatpush.msrb.mxu3 %v555_v34  ;;  %v3596_v37 = vpop.eup %1861 }
 0x153   :  { %v351_v42 = vld [vmem:[%s3807_s1 + $0x938] sm:$0xff]  ;;  %1164 = vmatpush.msrb.mxu0 %v355_v35  ;;  %1204 = vmatpush.msrb.mxu2 %v483_v39  ;;  %v876_v35 = vpop.f32.mrf.mxu1  ;;  %vm1336_vm2 = vweird.f32 %v3596_v37 }
 0x154   :  { %v423_v43 = vld [vmem:[%s3807_s1 + $0xb78] sm:$0xff]  ;;  %1182 = vmatpush.msrb.mxu1 %v427_v36  ;;  %1223 = vmatpush.msrb.mxu3 %v551_v40  ;;  %v896_v36 = vpop.f32.mrf.mxu2  ;;  %v877_v40 = vadd.f32 %v876_v35, %v857_v9  ;;  %vm1337_vm4 = vmor %vm1335_vm3, %vm1336_vm2 }
 0x155   :  { %v479_v45 = vld [vmem:[%s3807_s1 + $0xd38] sm:$0xff]  ;;  %1165 = vmatpush.msrb.mxu0 %v351_v42  ;;  %1135 = vmatmul.f32.vlgmr.msra.gmra.mxu2 %v3126_v19 }
 0x156   :  { %v547_v46 = vld [vmem:[%s3807_s1 + $0xf58] sm:$0xff]  ;;  %1183 = vmatpush.msrb.mxu1 %v423_v43  ;;  %1205 = vmatpush.msrb.mxu2 %v479_v45 }
 0x157   :  { %v347_v48 = vld [vmem:[%s3807_s1 + $0x918] sm:$0xff]  ;;  %1224 = vmatpush.msrb.mxu3 %v547_v46  ;;  %1095 = vmatmul.f32.vlgmr.msra.gmra.mxu0 %v3138_v23  ;;  %v897_v46 = vadd.f32 %v896_v36, %v877_v40  ;;  %v1435_v40 = vld [vmem:[#allocation2 + $0x120] sm:$0xff] }
 0x158   :  { %v419_v49 = vld [vmem:[%s3807_s1 + $0xb58] sm:$0xff]  ;;  %1166 = vmatpush.msrb.mxu0 %v347_v48  ;;  %1155 = vmatmul.f32.vlgmr.msra.gmra.mxu3 %v3144_v3  ;;  %v916_v48 = vpop.f32.mrf.mxu3 }
 0x159   :  { %v475_v54 = vld [vmem:[%s3807_s1 + $0xd18] sm:$0xff]  ;;  %1184 = vmatpush.msrb.mxu1 %v419_v49  ;;  %v1330_v49 = vmul.f32 %v3596_v37, %v3541_v53  ;;  %v1443_v53 = vld [vmem:[#allocation2 + $0x160] sm:$0xff] }
 0x15a   :  { %v543_v55 = vld [vmem:[%s3807_s1 + $0xf38] sm:$0xff]  ;;  %1206 = vmatpush.msrb.mxu2 %v475_v54  ;;  %1115 = vmatmul.f32.vlgmr.msra.gmra.mxu1 %v3161_v29 }
 0x15b   :  { %v343_v59 = vld [vmem:[%s3807_s1 + $0x8f8] sm:$0xff]  ;;  %1225 = vmatpush.msrb.mxu3 %v543_v55  ;;  %v917_v55 = vadd.f32 %v916_v48, %v897_v46 }
 0x15c   :  { %v415_v60 = vld [vmem:[%s3807_s1 + $0xb38] sm:$0xff]  ;;  %1167 = vmatpush.msrb.mxu0 %v343_v59 }
 0x15d   :  { %v471_v61 = vld [vmem:[%s3807_s1 + $0xcf8] sm:$0xff]  ;;  %1185 = vmatpush.msrb.mxu1 %v415_v60  ;;  %v1240_v59 = vmax.f32 %v917_v55, 0.0 }
 0x15e   :  { %v539_v41 = vld [vmem:[%s3807_s1 + $0xf18] sm:$0xff]  ;;  %1207 = vmatpush.msrb.mxu2 %v471_v61  ;;  %v1331_v61 = vmul.f32 %v3596_v37, %v1330_v49  ;;  %v1428_v49 = vld [vmem:[#allocation2 + $0xe8] sm:$0xff] }
 0x15f   :  { %v339_v62 = vld [vmem:[%s3807_s1 + $0x8d8] sm:$0xff]  ;;  %1226 = vmatpush.msrb.mxu3 %v539_v41  ;;  %v1253_v41 = vsel %vm1245_vm0, %v1240_v59, 0.0 }
 0x160   :  { %v411_v63 = vld [vmem:[%s3807_s1 + $0xb18] sm:$0xff]  ;;  %1168 = vmatpush.msrb.mxu0 %v339_v62  ;;  %v1459_v62 = vld [vmem:[#allocation2 + $0x1e0] sm:$0xff]  ;;  %v1332_v1 = vmul.f32 0.5, %v1331_v61  ;;  %v1424_v61 = vld [vmem:[#allocation2 + $0xc8] sm:$0xff] }
 0x161   :  { %v467_v4 = vld [vmem:[%s3807_s1 + $0xcd8] sm:$0xff]  ;;  %1186 = vmatpush.msrb.mxu1 %v411_v63  ;;  %v1254_v63 = vrot.slane %v1253_v41, 4 }
 0x162   :  { %v535_v5 = vld [vmem:[%s3807_s1 + $0xef8] sm:$0xff]  ;;  %1208 = vmatpush.msrb.mxu2 %v467_v4  ;;  %v1419_v4 = vld [vmem:[#allocation2 + $0xa0] sm:$0xff] }
 0x163   :  { %v335_v7 = vld [vmem:[%s3807_s1 + $0x8b8] sm:$0xff]  ;;  %1227 = vmatpush.msrb.mxu3 %v535_v5  ;;  %v1455_v5 = vld [vmem:[#allocation2 + $0x1c0] sm:$0xff] }
 0x164   :  { %v407_v10 = vld [vmem:[%s3807_s1 + $0xaf8] sm:$0xff]  ;;  %1169 = vmatpush.msrb.mxu0 %v335_v7 }
 0x165   :  { %v463_v11 = vld [vmem:[%s3807_s1 + $0xcb8] sm:$0xff]  ;;  %1187 = vmatpush.msrb.mxu1 %v407_v10  ;;  %v1333_v10 = vsub.f32 1.5, %v1332_v1  ;;  %v1418_v1 = vld [vmem:[#allocation2 + $0x98] sm:$0xff] }
 0x166   :  { %v531_v12 = vld [vmem:[%s3807_s1 + $0xed8] sm:$0xff]  ;;  %1209 = vmatpush.msrb.mxu2 %v463_v11 }
 0x167   :  { %v331_v13 = vld [vmem:[%s3807_s1 + $0x898] sm:$0xff]  ;;  %1228 = vmatpush.msrb.mxu3 %v531_v12  ;;  %v1415_v12 = vld [vmem:[#allocation2 + $0x80] sm:$0xff]  ;;  %v1334_v16 = vmul.f32 %v3596_v37, %v1333_v10 }
 0x168   :  { %v403_v14 = vld [vmem:[%s3807_s1 + $0xad8] sm:$0xff]  ;;  %1170 = vmatpush.msrb.mxu0 %v331_v13 }
 0x169   :  { %v459_v17 = vld [vmem:[%s3807_s1 + $0xc98] sm:$0xff]  ;;  %1188 = vmatpush.msrb.mxu1 %v403_v14 }
 0x16a   :  { %v527_v18 = vld [vmem:[%s3807_s1 + $0xeb8] sm:$0xff]  ;;  %1210 = vmatpush.msrb.mxu2 %v459_v17 }
 0x16b   :  { %v327_v58 = vld [vmem:[%s3807_s1 + $0x878] sm:$0xff]  ;;  %1229 = vmatpush.msrb.mxu3 %v527_v18  ;;  %v1411_v18 = vld [vmem:[#allocation2 + $0x60] sm:$0xff] }
 0x16c   :  { %v399_v21 = vld [vmem:[%s3807_s1 + $0xab8] sm:$0xff]  ;;  %1171 = vmatpush.msrb.mxu0 %v327_v58  ;;  %v1447_v58 = vld [vmem:[#allocation2 + $0x180] sm:$0xff] }
 0x16d   :  { %v455_v22 = vld [vmem:[%s3807_s1 + $0xc78] sm:$0xff]  ;;  %1189 = vmatpush.msrb.mxu1 %v399_v21 }
 0x16e   :  { %v523_v25 = vld [vmem:[%s3807_s1 + $0xe98] sm:$0xff]  ;;  %1211 = vmatpush.msrb.mxu2 %v455_v22 }
 0x16f   :  { %v323_v8 = vld [vmem:[%s3807_s1 + $0x858] sm:$0xff]  ;;  %1230 = vmatpush.msrb.mxu3 %v523_v25  ;;  %v1338_v25 = vsel %vm1337_vm4, %v3596_v37, %v1334_v16  ;;  %v1410_v16 = vld [vmem:[#allocation2 + $0x58] sm:$0xff]  ;;  %vm1847_vm4 = vcmask 123904  }
 0x170   :  { %v395_v28 = vld [vmem:[%s3807_s1 + $0xa98] sm:$0xff]  ;;  %1172 = vmatpush.msrb.mxu0 %v323_v8  ;;  %v1407_v8 = vld [vmem:[#allocation2 + $0x40] sm:$0xff] }
 0x171   :  { %v451_v30 = vld [vmem:[%s3807_s1 + $0xc58] sm:$0xff]  ;;  %1190 = vmatpush.msrb.mxu1 %v395_v28 }
 0x172   :  { %v519_v19 = vld [vmem:[%s3807_s1 + $0xe78] sm:$0xff]  ;;  %1212 = vmatpush.msrb.mxu2 %v451_v30  ;;  %v1369_v30 = vmul.f32 %v1338_v25, %v3324_v38 }
 0x173   :  { %v319_v32 = vld [vmem:[%s3807_s1 + $0x838] sm:$0xff]  ;;  %1231 = vmatpush.msrb.mxu3 %v519_v19 }
 0x174   :  { %v391_v33 = vld [vmem:[%s3807_s1 + $0xa78] sm:$0xff]  ;;  %1173 = vmatpush.msrb.mxu0 %v319_v32 }
 0x175   :  { %v447_v23 = vld [vmem:[%s3807_s1 + $0xc38] sm:$0xff]  ;;  %1191 = vmatpush.msrb.mxu1 %v391_v33  ;;  %v3641_v33 = vld [vmem:[%s3810_s4] sm:$0xf] }
 0x176   :  { %v515_v15 = vld [vmem:[%s3807_s1 + $0xe58] sm:$0xff]  ;;  %1213 = vmatpush.msrb.mxu2 %v447_v23  ;;  %v1387_v36 = vperm.slane %v3641_v33, 0 }
 0x177   :  { %v315_v3 = vld [vmem:[%s3807_s1 + $0x818] sm:$0xff]  ;;  %1232 = vmatpush.msrb.mxu3 %v515_v15  ;;  %v1403_v15 = vld [vmem:[#allocation2 + $0x20] sm:$0xff] }
 0x178   :  { %v387_v34 = vld [vmem:[%s3807_s1 + $0xa58] sm:$0xff]  ;;  %1174 = vmatpush.msrb.mxu0 %v315_v3  ;;  %v1439_v3 = vld [vmem:[#allocation2 + $0x140] sm:$0xff] }
 0x179   :  { %v443_v39 = vld [vmem:[%s3807_s1 + $0xc18] sm:$0xff]  ;;  %1192 = vmatpush.msrb.mxu1 %v387_v34  ;;  %1175 = vmatmul.f32.vlgmr.msrb.gmra.mxu0 %v3203_v50  ;;  %v1382_v34 = vmul.f32 %v1374_v31, %v1369_v30  ;;  %v1491_v30 = vld [vmem:[#allocation2 + $0x2e0] sm:$0xff]  ;;  %v1406_v31 = vld [vmem:[#allocation2 + $0x38] sm:$0xff] }
 0x17a   :  { %v511_v29 = vld [vmem:[%s3807_s1 + $0xe38] sm:$0xff]  ;;  %1214 = vmatpush.msrb.mxu2 %v443_v39 }
 0x17b   :  { %v1429_v42 = vld [vmem:[#allocation2 + $0xf0] sm:$0xff]  ;;  %1233 = vmatpush.msrb.mxu3 %v511_v29  ;;  %1215 = vmatmul.f32.vlgmr.msrb.gmra.mxu2 %v3189_v44  ;;  %v1423_v44 = vld [vmem:[#allocation2 + $0xc0] sm:$0xff] }
 0x17c   :  { %v383_v43 = vld [vmem:[%s3807_s1 + $0xa38] sm:$0xff]  ;;  %1533 = vmatpush.msra.mxu0 %v1429_v42  ;;  %v1399_v29 = vld [vmem:[#allocation2] sm:$0xff] }
 0x17d   :  { %v507_v45 = vld [vmem:[%s3807_s1 + $0xe18] sm:$0xff]  ;;  %1193 = vmatpush.msrb.mxu1 %v383_v43  ;;  %v3644_v43 = vadd.f32 %v1387_v36, %v1382_v34  ;;  %v996_v34 = vpop.f32.mrf.mxu3  ;;  %v1438_v36 = vld [vmem:[#allocation2 + $0x138] sm:$0xff] }
 0x17e   :  { %v379_v54 = vld [vmem:[%s3807_s1 + $0xa18] sm:$0xff]  ;;  %1234 = vmatpush.msrb.mxu3 %v507_v45  ;;  %1534 = vmatpush.msra.mxu0 %v1427_v51  ;;  %v1430_v45 = vld [vmem:[#allocation2 + $0xf8] sm:$0xff]  ;;  %v1431_v51 = vld [vmem:[#allocation2 + $0x100] sm:$0xff] }
 0x17f   :  { %1235 = vmatmul.f32.vlgmr.msrb.gmra.mxu3 %v3213_v57  ;;  %v1425_v56 = vld [vmem:[#allocation2 + $0xd0] sm:$0xff]  ;;  %1194 = vmatpush.msrb.mxu1 %v379_v54  ;;  %v1255_v57 = vadd.f32 %v1254_v63, %v1253_v41  ;;  %v1462_v54 = vld [vmem:[#allocation2 + $0x1f8] sm:$0xff]  ;;  %v1456_v63 = vld [vmem:[#allocation2 + $0x1c8] sm:$0xff] }
 0x180   :  { %v1461_v60 = vld [vmem:[#allocation2 + $0x1f0] sm:$0xff]  ;;  %1195 = vmatmul.f32.vlgmr.msrb.gmra.mxu1 %v3234_v2  ;;  %1535 = vmatpush.msra.mxu0 %v1425_v56  ;;  %v1426_v56 = vld [vmem:[#allocation2 + $0xd8] sm:$0xff] }
 0x181   :  { %1553 = vmatpush.msra.mxu1 %v1461_v60  ;;  %v1421_v0 = vld [vmem:[#allocation2 + $0xb0] sm:$0xff]  ;;  %v1256_v6 = vrot.slane %v1255_v57, 2 }
 0x182   :  { %v1457_v50 = vld [vmem:[#allocation2 + $0x1d0] sm:$0xff]  ;;  %1536 = vmatpush.msra.mxu0 %v1423_v44  ;;  %v1458_v44 = vld [vmem:[#allocation2 + $0x1d8] sm:$0xff] }
 0x183   :  { %1554 = vmatpush.msra.mxu1 %v1459_v62  ;;  %v1417_v7 = vld [vmem:[#allocation2 + $0x90] sm:$0xff]  ;;  %v1257_v11 = vadd.f32 %v1256_v6, %v1255_v57  ;;  %v1422_v62 = vld [vmem:[#allocation2 + $0xb8] sm:$0xff]  ;;  %v1452_v57 = vld [vmem:[#allocation2 + $0x1a8] sm:$0xff] }
 0x184   :  { %1537 = vmatpush.msra.mxu0 %v1421_v0  ;;  %v1453_v2 = vld [vmem:[#allocation2 + $0x1b0] sm:$0xff]  ;;  %v1420_v0 = vld [vmem:[#allocation2 + $0xa8] sm:$0xff] }
 0x185   :  { %1555 = vmatpush.msra.mxu1 %v1457_v50  ;;  %v1258_v13 = vrot.slane %v1257_v11, 1  ;;  %v1413_v14 = vld [vmem:[#allocation2 + $0x70] sm:$0xff]  ;;  %v1454_v50 = vld [vmem:[#allocation2 + $0x1b8] sm:$0xff] }
 0x186   :  { %1538 = vmatpush.msra.mxu0 %v1419_v4  ;;  %v1449_v52 = vld [vmem:[#allocation2 + $0x190] sm:$0xff]  ;;  %v1416_v4 = vld [vmem:[#allocation2 + $0x88] sm:$0xff] }
 0x187   :  { %1556 = vmatpush.msra.mxu1 %v1455_v5  ;;  %v1259_v17 = vadd.f32 %v1258_v13, %v1257_v11  ;;  %v1409_v21 = vld [vmem:[#allocation2 + $0x50] sm:$0xff]  ;;  %v1450_v5 = vld [vmem:[#allocation2 + $0x198] sm:$0xff] }
 0x188   :  { %1539 = vmatpush.msra.mxu0 %v1417_v7  ;;  %v1445_v22 = vld [vmem:[#allocation2 + $0x170] sm:$0xff]  ;;  %v1414_v7 = vld [vmem:[#allocation2 + $0x78] sm:$0xff] }
 0x189   :  { %1557 = vmatpush.msra.mxu1 %v1453_v2  ;;  %v1282_v20 = vmul.f32 %v3289_v27, %v1259_v17  ;;  %v1405_v19 = vld [vmem:[#allocation2 + $0x30] sm:$0xff]  ;;  %v3651_v2 = vld [vmem:[%s3808_s2] sm:$0xf] }
 0x18a   :  { %1540 = vmatpush.msra.mxu0 %v1415_v12  ;;  %v1441_v9 = vld [vmem:[#allocation2 + $0x150] sm:$0xff]  ;;  %v572_v10 = vperm.slane %v3651_v2, 2  ;;  %v1448_v12 = vld [vmem:[#allocation2 + $0x188] sm:$0xff] }
 0x18b   :  { %1558 = vmatpush.msra.mxu1 %v1451_v47  ;;  %v3631_v26 = vsub.f32 %v1240_v59, %v1282_v20  ;;  %v1401_v35 = vld [vmem:[#allocation2 + $0x10] sm:$0xff]  ;;  %v1460_v59 = vld [vmem:[#allocation2 + $0x1e8] sm:$0xff] }
 0x18c   :  { %1541 = vmatpush.msra.mxu0 %v1413_v14  ;;  %v1437_v37 = vld [vmem:[#allocation2 + $0x130] sm:$0xff]  ;;  %v1412_v47 = vld [vmem:[#allocation2 + $0x68] sm:$0xff]  ;;  %v936_v14 = vpop.f32.mrf.mxu0 }
 0x18d   :  { %1559 = vmatpush.msra.mxu1 %v1449_v52  ;;  %v1290_v28 = vmul.f32 %v3631_v26, %v3631_v26  ;;  %v1433_v46 = vld [vmem:[#allocation2 + $0x110] sm:$0xff]  ;;  %v1446_v52 = vld [vmem:[#allocation2 + $0x178] sm:$0xff]  ;;  %v937_v17 = vadd.f32 %v936_v14, %v572_v10 }
 0x18e   :  { %1542 = vmatpush.msra.mxu0 %v1411_v18  ;;  %v1493_v20 = vld [vmem:[#allocation2 + $0x2f0] sm:$0xff] }
 0x18f   :  { %1560 = vmatpush.msra.mxu1 %v1447_v58  ;;  %v1300_v32 = vsel %vm1245_vm0, %v1290_v28, 0.0  ;;  %v1444_v58 = vld [vmem:[#allocation2 + $0x168] sm:$0xff]  ;;  %1573 = vmatpush.msra.mxu2 %v1493_v20  ;;  %v1442_v28 = vld [vmem:[#allocation2 + $0x158] sm:$0xff]  ;;  %v1469_v10 = vld [vmem:[#allocation2 + $0x230] sm:$0xff] }
 0x190   :  { %1543 = vmatpush.msra.mxu0 %v1409_v21  ;;  %v1301_v23 = vrot.slane %v1300_v32, 4  ;;  %v1408_v21 = vld [vmem:[#allocation2 + $0x48] sm:$0xff]  ;;  %v1490_v20 = vld [vmem:[#allocation2 + $0x2d8] sm:$0xff] }
 0x191   :  { %1561 = vmatpush.msra.mxu1 %v1445_v22  ;;  %v956_v22 = vpop.f32.mrf.mxu1  ;;  %1574 = vmatpush.msra.mxu2 %v1491_v30  ;;  %v1484_v30 = vld [vmem:[#allocation2 + $0x2a8] sm:$0xff] }
 0x192   :  { %1544 = vmatpush.msra.mxu0 %v1407_v8  ;;  %v1302_v38 = vadd.f32 %v1301_v23, %v1300_v32  ;;  %v957_v8 = vadd.f32 %v956_v22, %v937_v17  ;;  %v1440_v32 = vld [vmem:[#allocation2 + $0x148] sm:$0xff]  ;;  %v1489_v23 = vld [vmem:[#allocation2 + $0x2d0] sm:$0xff] }
 0x193   :  { %1562 = vmatpush.msra.mxu1 %v1443_v53  ;;  %1575 = vmatpush.msra.mxu2 %v1489_v23  ;;  %v1488_v22 = vld [vmem:[#allocation2 + $0x2c8] sm:$0xff] }
 0x194   :  { %1545 = vmatpush.msra.mxu0 %v1405_v19  ;;  %v1303_v39 = vrot.slane %v1302_v38, 2 }
 0x195   :  { %1563 = vmatpush.msra.mxu1 %v1441_v9 }
 0x196   :  { %1546 = vmatpush.msra.mxu0 %v1403_v15  ;;  %v1304_v42 = vadd.f32 %v1303_v39, %v1302_v38  ;;  %v1375_v15 = vperm.slane %v3628_v24, 1 }
 0x197   :  { %1564 = vmatpush.msra.mxu1 %v1439_v3  ;;  %v1404_v3 = vld [vmem:[#allocation2 + $0x28] sm:$0xff] }
 0x198   :  { %1547 = vmatpush.msra.mxu0 %v1401_v35  ;;  %v1305_v48 = vrot.slane %v1304_v42, 1 }
 0x199   :  { %1565 = vmatpush.msra.mxu1 %v1437_v37  ;;  %v1487_v37 = vld [vmem:[#allocation2 + $0x2c0] sm:$0xff] }
 0x19a   :  { %1548 = vmatpush.msra.mxu0 %v1399_v29  ;;  %v1306_v55 = vadd.f32 %v1305_v48, %v1304_v42  ;;  %v1402_v29 = vld [vmem:[#allocation2 + $0x18] sm:$0xff]  ;;  %1576 = vmatpush.msra.mxu2 %v1487_v37  ;;  %v1472_v37 = vld [vmem:[#allocation2 + $0x248] sm:$0xff] }
 0x19b   :  { %1566 = vmatpush.msra.mxu1 %v1435_v40  ;;  %1549 = vmatmul.f32.vlgmr.msra.gmra.mxu0 %v3644_v43  ;;  %v1388_v40 = vperm.slane %v3641_v33, 1 }
 0x19c   :  { %1613 = vmatpush.msrb.mxu0 %v1430_v45  ;;  %v1322_v60 = vmul.f32 %v1306_v55, %v3289_v27  ;;  %v1436_v45 = vld [vmem:[#allocation2 + $0x128] sm:$0xff] }
 0x19d   :  { %1567 = vmatpush.msra.mxu1 %v1433_v46  ;;  %v1485_v46 = vld [vmem:[#allocation2 + $0x2b0] sm:$0xff] }
 0x19e   :  { %1614 = vmatpush.msrb.mxu0 %v1428_v49  ;;  %v1326_v41 = vadd.f32 1e-05, %v1322_v60  ;;  %v976_v53 = vpop.f32.mrf.mxu2  ;;  %v1400_v49 = vld [vmem:[#allocation2 + $0x8] sm:$0xff]  ;;  %1577 = vmatpush.msra.mxu2 %v1485_v46  ;;  %v1481_v60 = vld [vmem:[#allocation2 + $0x290] sm:$0xff] }
 0x19f   :  { %1568 = vmatpush.msra.mxu1 %v1431_v51  ;;  %v977_v9 = vadd.f32 %v976_v53, %v957_v8  ;;  %v1486_v8 = vld [vmem:[#allocation2 + $0x2b8] sm:$0xff]  ;;  %v1525_v46 = vld [vmem:[#allocation2 + $0x3f0] sm:$0xff] }
 0x1a0   :  { %1615 = vmatpush.msrb.mxu0 %v1426_v56  ;;  %1863 = vrsqrt.f32 %v1326_v41  ;;  %vm1345_vm6 = vweird.f32 %v1326_v41  ;;  %v1434_v56 = vld [vmem:[#allocation2 + $0x118] sm:$0xff]  ;;  %1593 = vmatpush.msra.mxu3 %v1525_v46 }
 0x1a1   :  { %1633 = vmatpush.msrb.mxu1 %v1462_v54  ;;  %v997_v35 = vadd.f32 %v996_v34, %v977_v9  ;;  %v1483_v54 = vld [vmem:[#allocation2 + $0x2a0] sm:$0xff]  ;;  %v1476_v34 = vld [vmem:[#allocation2 + $0x268] sm:$0xff] }
 0x1a2   :  { %1616 = vmatpush.msrb.mxu0 %v1424_v61  ;;  %v1016_v42 = vpop.f32.mrf.mxu0  ;;  %1578 = vmatpush.msra.mxu2 %v1483_v54  ;;  %v1523_v54 = vld [vmem:[#allocation2 + $0x3e0] sm:$0xff] }
 0x1a3   :  { %1634 = vmatpush.msrb.mxu1 %v1460_v59  ;;  %v1017_v51 = vadd.f32 %v1016_v42, %v997_v35  ;;  %v1474_v35 = vld [vmem:[#allocation2 + $0x258] sm:$0xff]  ;;  %1594 = vmatpush.msra.mxu3 %v1523_v54  ;;  %v1512_v54 = vld [vmem:[#allocation2 + $0x388] sm:$0xff] }
 0x1a4   :  { %1617 = vmatpush.msrb.mxu0 %v1422_v62  ;;  %1579 = vmatpush.msra.mxu2 %v1481_v60  ;;  %v1466_v42 = vld [vmem:[#allocation2 + $0x218] sm:$0xff] }
 0x1a5   :  { %1635 = vmatpush.msrb.mxu1 %v1458_v44  ;;  %v1432_v44 = vld [vmem:[#allocation2 + $0x108] sm:$0xff] }
 0x1a6   :  { %1618 = vmatpush.msrb.mxu0 %v1420_v0  ;;  %v1864_v6 = vpop.eup %1863  ;;  %v1477_v0 = vld [vmem:[#allocation2 + $0x270] sm:$0xff] }
 0x1a7   :  { %1636 = vmatpush.msrb.mxu1 %v1456_v63  ;;  %v1340_v11 = vmul.f32 %v1864_v6, %v1326_v41  ;;  %vm1346_vm5 = vweird.f32 %v1864_v6  ;;  %v1479_v41 = vld [vmem:[#allocation2 + $0x280] sm:$0xff] }
 0x1a8   :  { %1619 = vmatpush.msrb.mxu0 %v1418_v1  ;;  %vm1347_vm7 = vmor %vm1345_vm6, %vm1346_vm5  ;;  %1580 = vmatpush.msra.mxu2 %v1479_v41  ;;  %v1475_v1 = vld [vmem:[#allocation2 + $0x260] sm:$0xff] }
 0x1a9   :  { %1637 = vmatpush.msrb.mxu1 %v1454_v50  ;;  %v1341_v13 = vmul.f32 %v1864_v6, %v1340_v11 }
 0x1aa   :  { %1620 = vmatpush.msrb.mxu0 %v1416_v4  ;;  %1581 = vmatpush.msra.mxu2 %v1477_v0  ;;  %v1473_v4 = vld [vmem:[#allocation2 + $0x250] sm:$0xff] }
 0x1ab   :  { %1638 = vmatpush.msrb.mxu1 %v1452_v57  ;;  %v1342_v18 = vmul.f32 0.5, %v1341_v13  ;;  %v1465_v13 = vld [vmem:[#allocation2 + $0x210] sm:$0xff] }
 0x1ac   :  { %1621 = vmatpush.msrb.mxu0 %v1414_v7  ;;  %1582 = vmatpush.msra.mxu2 %v1475_v1  ;;  %v1517_v0 = vld [vmem:[#allocation2 + $0x3b0] sm:$0xff]  ;;  %v1515_v1 = vld [vmem:[#allocation2 + $0x3a0] sm:$0xff] }
 0x1ad   :  { %1639 = vmatpush.msrb.mxu1 %v1450_v5  ;;  %v1343_v25 = vsub.f32 1.5, %v1342_v18  ;;  %v1056_v59 = vpop.f32.mrf.mxu2  ;;  %v1076_v63 = vpop.f32.mrf.mxu3  ;;  %v1492_v18 = vld [vmem:[#allocation2 + $0x2e8] sm:$0xff] }
 0x1ae   :  { %1622 = vmatpush.msrb.mxu0 %v1412_v47  ;;  %1583 = vmatpush.msra.mxu2 %v1473_v4 }
 0x1af   :  { %1640 = vmatpush.msrb.mxu1 %v1448_v12  ;;  %v1344_v19 = vmul.f32 %v1864_v6, %v1343_v25  ;;  %v1467_v12 = vld [vmem:[#allocation2 + $0x220] sm:$0xff] }
 0x1b0   :  { %1623 = vmatpush.msrb.mxu0 %v1410_v16  ;;  %v1494_v16 = vld [vmem:[#allocation2 + $0x2f8] sm:$0xff] }
 0x1b1   :  { %1641 = vmatpush.msrb.mxu1 %v1446_v52  ;;  %v1348_v38 = vsel %vm1347_vm7, %v1864_v6, %v1344_v19  ;;  %v1471_v6 = vld [vmem:[#allocation2 + $0x240] sm:$0xff]  ;;  %v1482_v19 = vld [vmem:[#allocation2 + $0x298] sm:$0xff] }
 0x1b2   :  { %1624 = vmatpush.msrb.mxu0 %v1408_v21  ;;  %v1370_v39 = vmul.f32 %v1348_v38, %v3631_v26  ;;  %v1036_v26 = vpop.f32.mrf.mxu1  ;;  %1584 = vmatpush.msra.mxu2 %v1471_v6  ;;  %v1463_v52 = vld [vmem:[#allocation2 + $0x200] sm:$0xff]  ;;  %v1513_v6 = vld [vmem:[#allocation2 + $0x390] sm:$0xff] }
 0x1b3   :  { %1642 = vmatpush.msrb.mxu1 %v1444_v58  ;;  %v1037_v61 = vadd.f32 %v1036_v26, %v1017_v51  ;;  %v1521_v26 = vld [vmem:[#allocation2 + $0x3d0] sm:$0xff] }
 0x1b4   :  { %1625 = vmatpush.msrb.mxu0 %v1406_v31  ;;  %v1383_v48 = vmul.f32 %v1375_v15, %v1370_v39  ;;  %1585 = vmatpush.msra.mxu2 %v1469_v10  ;;  %v1478_v15 = vld [vmem:[#allocation2 + $0x278] sm:$0xff]  ;;  %v1389_v10 = vperm.slane %v3641_v33, 2 }
 0x1b5   :  { %1643 = vmatpush.msrb.mxu1 %v1442_v28  ;;  %v1057_v62 = vadd.f32 %v1056_v59, %v1037_v61  ;;  %1595 = vmatpush.msra.mxu3 %v1521_v26  ;;  %v1519_v61 = vld [vmem:[#allocation2 + $0x3c0] sm:$0xff] }
 0x1b6   :  { %1626 = vmatpush.msrb.mxu0 %v1404_v3  ;;  %v1396_v55 = vadd.f32 %v1388_v40, %v1383_v48  ;;  %1586 = vmatpush.msra.mxu2 %v1467_v12  ;;  %v1468_v40 = vld [vmem:[#allocation2 + $0x228] sm:$0xff]  ;;  %v1511_v12 = vld [vmem:[#allocation2 + $0x380] sm:$0xff] }
 0x1b7   :  { %1644 = vmatpush.msrb.mxu1 %v1440_v32  ;;  %v1077_v50 = vadd.f32 %v1076_v63, %v1057_v62  ;;  %v1480_v32 = vld [vmem:[#allocation2 + $0x288] sm:$0xff]  ;;  %1596 = vmatpush.msra.mxu3 %v1519_v61 }
 0x1b8   :  { %1627 = vmatpush.msrb.mxu0 %v1402_v29  ;;  %1569 = vmatmul.f32.vlgmr.msra.gmra.mxu1 %v1396_v55  ;;  %v1470_v29 = vld [vmem:[#allocation2 + $0x238] sm:$0xff] }
 0x1b9   :  { %1645 = vmatpush.msrb.mxu1 %v1438_v36  ;;  %v1241_v57 = vmax.f32 %v1077_v50, 0.0  ;;  %1587 = vmatpush.msra.mxu2 %v1465_v13 }
 0x1ba   :  { %1628 = vmatpush.msrb.mxu0 %v1400_v49  ;;  %v573_v49 = vperm.slane %v3651_v2, 3  ;;  %1597 = vmatpush.msra.mxu3 %v1517_v0  ;;  %v1500_v0 = vld [vmem:[#allocation2 + $0x328] sm:$0xff] }
 0x1bb   :  { %1646 = vmatpush.msrb.mxu1 %v1436_v45  ;;  %1629 = vmatmul.f32.vlgmr.msrb.gmra.mxu0 %v3644_v43  ;;  %v1260_v5 = vsel %vm1245_vm0, %v1241_v57, 0.0  ;;  %v1464_v45 = vld [vmem:[#allocation2 + $0x208] sm:$0xff] }
 0x1bc   :  { %v1261_v43 = vrot.slane %v1260_v5, 4  ;;  %1588 = vmatpush.msra.mxu2 %v1463_v52  ;;  %1598 = vmatpush.msra.mxu3 %v1515_v1  ;;  %v1509_v52 = vld [vmem:[#allocation2 + $0x370] sm:$0xff] }
 0x1bd   :  { %1647 = vmatpush.msrb.mxu1 %v1434_v56 }
 0x1be   :  { %v1262_v7 = vadd.f32 %v1261_v43, %v1260_v5  ;;  %1653 = vmatpush.msrb.mxu2 %v1494_v16  ;;  %1599 = vmatpush.msra.mxu3 %v1513_v6 }
 0x1bf   :  { %1648 = vmatpush.msrb.mxu1 %v1432_v44 }
 0x1c0   :  { %1649 = vmatmul.f32.vlgmr.msrb.gmra.mxu1 %v1396_v55  ;;  %v1263_v11 = vrot.slane %v1262_v7, 2  ;;  %1654 = vmatpush.msrb.mxu2 %v1492_v18 }
 0x1c1   :  { %1600 = vmatpush.msra.mxu3 %v1511_v12 }
 0x1c2   :  { %v1264_v47 = vadd.f32 %v1263_v11, %v1262_v7  ;;  %1655 = vmatpush.msrb.mxu2 %v1490_v20 }
 0x1c3   :  { %1601 = vmatpush.msra.mxu3 %v1509_v52 }
 0x1c4   :  { %v1265_v14 = vrot.slane %v1264_v47, 1  ;;  %1656 = vmatpush.msrb.mxu2 %v1488_v22 }
 0x1c6   :  { %v1266_v17 = vadd.f32 %v1265_v14, %v1264_v47  ;;  %1657 = vmatpush.msrb.mxu2 %v1486_v8  ;;  %v1503_v8 = vld [vmem:[#allocation2 + $0x340] sm:$0xff] }
 0x1c8   :  { %v1283_v58 = vmul.f32 %v3289_v27, %v1266_v17  ;;  %1658 = vmatpush.msrb.mxu2 %v1484_v30 }
 0x1ca   :  { %v3661_v21 = vsub.f32 %v1241_v57, %v1283_v58  ;;  %1659 = vmatpush.msrb.mxu2 %v1482_v19  ;;  %v1376_v57 = vperm.slane %v3628_v24, 2  ;;  %v1507_v58 = vld [vmem:[#allocation2 + $0x360] sm:$0xff] }
 0x1cb   :  { %1602 = vmatpush.msra.mxu3 %v1507_v58  ;;  %v1499_v19 = vld [vmem:[#allocation2 + $0x320] sm:$0xff] }
 0x1cc   :  { %v1291_v25 = vmul.f32 %v3661_v21, %v3661_v21  ;;  %1660 = vmatpush.msrb.mxu2 %v1480_v32  ;;  %v1497_v32 = vld [vmem:[#allocation2 + $0x310] sm:$0xff] }
 0x1ce   :  { %v1307_v53 = vsel %vm1245_vm0, %v1291_v25, 0.0  ;;  %1661 = vmatpush.msrb.mxu2 %v1478_v15  ;;  %v1495_v15 = vld [vmem:[#allocation2 + $0x300] sm:$0xff] }
 0x1cf   :  { %v1308_v28 = vrot.slane %v1307_v53, 4 }
 0x1d0   :  { %1662 = vmatpush.msrb.mxu2 %v1476_v34 }
 0x1d1   :  { %v1309_v31 = vadd.f32 %v1308_v28, %v1307_v53  ;;  %v1501_v28 = vld [vmem:[#allocation2 + $0x330] sm:$0xff] }
 0x1d2   :  { %1663 = vmatpush.msrb.mxu2 %v1474_v35 }
 0x1d3   :  { %v1310_v9 = vrot.slane %v1309_v31, 2 }
 0x1d4   :  { %1664 = vmatpush.msrb.mxu2 %v1472_v37  ;;  %v1096_v56 = vpop.f32.mrf.mxu0 }
 0x1d5   :  { %v1311_v23 = vadd.f32 %v1310_v9, %v1309_v31  ;;  %v1097_v59 = vadd.f32 %v1096_v56, %v573_v49  ;;  %v1510_v56 = vld [vmem:[#allocation2 + $0x378] sm:$0xff] }
 0x1d6   :  { %1665 = vmatpush.msrb.mxu2 %v1470_v29 }
 0x1d7   :  { %v1312_v3 = vrot.slane %v1311_v23, 1  ;;  %v1116_v44 = vpop.f32.mrf.mxu1 }
 0x1d8   :  { %1666 = vmatpush.msrb.mxu2 %v1468_v40  ;;  %v1117_v62 = vadd.f32 %v1116_v44, %v1097_v59  ;;  %v1136_v63 = vpop.f32.mrf.mxu2  ;;  %v1518_v40 = vld [vmem:[#allocation2 + $0x3b8] sm:$0xff]  ;;  %v1508_v59 = vld [vmem:[#allocation2 + $0x368] sm:$0xff] }
 0x1d9   :  { %v1313_v38 = vadd.f32 %v1312_v3, %v1311_v23  ;;  %v1526_v3 = vld [vmem:[#allocation2 + $0x3f8] sm:$0xff]  ;;  %v1504_v44 = vld [vmem:[#allocation2 + $0x348] sm:$0xff] }
 0x1da   :  { %1667 = vmatpush.msrb.mxu2 %v1466_v42  ;;  %v1137_v50 = vadd.f32 %v1136_v63, %v1117_v62  ;;  %v1502_v62 = vld [vmem:[#allocation2 + $0x338] sm:$0xff] }
 0x1db   :  { %v1323_v36 = vmul.f32 %v1313_v38, %v3289_v27  ;;  %v1156_v4 = vpop.f32.mrf.mxu3  ;;  %v1524_v38 = vld [vmem:[#allocation2 + $0x3e8] sm:$0xff] }
 0x1dc   :  { %1668 = vmatpush.msrb.mxu2 %v1464_v45  ;;  %v1157_v43 = vadd.f32 %v1156_v4, %v1137_v50  ;;  %v1516_v45 = vld [vmem:[#allocation2 + $0x3a8] sm:$0xff]  ;;  %v1498_v50 = vld [vmem:[#allocation2 + $0x318] sm:$0xff] }
 0x1dd   :  { %v1327_v39 = vadd.f32 1e-05, %v1323_v36  ;;  %v1522_v36 = vld [vmem:[#allocation2 + $0x3d8] sm:$0xff] }
 0x1df   :  { %1865 = vrsqrt.f32 %v1327_v39  ;;  %vm1355_vm9 = vweird.f32 %v1327_v39 }
 0x1e5   :  { %v1866_v48 = vpop.eup %1865 }
 0x1e6   :  { %v1350_v51 = vmul.f32 %v1866_v48, %v1327_v39  ;;  %vm1356_vm8 = vweird.f32 %v1866_v48  ;;  %v1520_v39 = vld [vmem:[#allocation2 + $0x3c8] sm:$0xff] }
 0x1e7   :  { %vm1357_vm10 = vmor %vm1355_vm9, %vm1356_vm8 }
 0x1e8   :  { %v1351_v55 = vmul.f32 %v1866_v48, %v1350_v51 }
 0x1ea   :  { %v1352_v60 = vmul.f32 0.5, %v1351_v55 }
 0x1ec   :  { %v1353_v41 = vsub.f32 1.5, %v1352_v60  ;;  %v1506_v60 = vld [vmem:[#allocation2 + $0x358] sm:$0xff] }
 0x1ee   :  { %v1354_v2 = vmul.f32 %v1866_v48, %v1353_v41 }
 0x1f0   :  { %v1358_v5 = vsel %vm1357_vm10, %v1866_v48, %v1354_v2  ;;  %v1514_v48 = vld [vmem:[#allocation2 + $0x398] sm:$0xff] }
 0x1f1   :  { %v1371_v7 = vmul.f32 %v1358_v5, %v3661_v21  ;;  %v1505_v21 = vld [vmem:[#allocation2 + $0x350] sm:$0xff] }
 0x1f2   :  { %1603 = vmatpush.msra.mxu3 %v1505_v21 }
 0x1f3   :  { %v1384_v47 = vmul.f32 %v1376_v57, %v1371_v7  ;;  %v1496_v57 = vld [vmem:[#allocation2 + $0x308] sm:$0xff] }
 0x1f4   :  { %1604 = vmatpush.msra.mxu3 %v1503_v8 }
 0x1f5   :  { %v1397_v17 = vadd.f32 %v1389_v10, %v1384_v47 }
 0x1f6   :  { %v1176_v11 = vpop.f32.mrf.mxu0  ;;  %1605 = vmatpush.msra.mxu3 %v1501_v28 }
 0x1f7   :  { %v1177_v13 = vadd.f32 %v1176_v11, %v1157_v43  ;;  %1589 = vmatmul.f32.vlgmr.msra.gmra.mxu2 %v1397_v17  ;;  %v1377_v11 = vperm.slane %v3628_v24, 3 }
 0x1f8   :  { %1606 = vmatpush.msra.mxu3 %v1499_v19  ;;  %v1786_v19 = vld [vmem:[%s3815_s9 + $0x78] sm:$0xff] }
 0x1f9   :  { %1807 = vmatpush.msra.mxu0 %v1786_v19 }
 0x1fa   :  { %1607 = vmatpush.msra.mxu3 %v1497_v32 }
 0x1fc   :  { %1608 = vmatpush.msra.mxu3 %v1495_v15  ;;  %v1785_v15 = vld [vmem:[%s3815_s9 + $0x70] sm:$0xff] }
 0x1fd   :  { %v1196_v14 = vpop.f32.mrf.mxu1  ;;  %1808 = vmatpush.msra.mxu0 %v1785_v15  ;;  %v1789_v15 = vld [vmem:[%s3815_s9 + $0x90] sm:$0xff] }
 0x1fe   :  { %v1197_v16 = vadd.f32 %v1196_v14, %v1177_v13  ;;  %v1216_v18 = vpop.f32.mrf.mxu2  ;;  %1673 = vmatpush.msrb.mxu3 %v1526_v3  ;;  %v1390_v13 = vperm.slane %v3641_v33, 3 }
 0x1ff   :  { %1669 = vmatmul.f32.vlgmr.msrb.gmra.mxu2 %v1397_v17 }
 0x200   :  { %v1217_v20 = vadd.f32 %v1216_v18, %v1197_v16  ;;  %1674 = vmatpush.msrb.mxu3 %v1524_v38  ;;  %v1527_v16 = vld [vmem:[%s3812_s6] sm:$0x3]  ;;  %v1784_v38 = vld [vmem:[%s3815_s9 + $0x68] sm:$0xff] }
 0x201   :  { %v1529_v17 = vperm.slane %v1527_v16, 0  ;;  %1809 = vmatpush.msra.mxu0 %v1784_v38 }
 0x202   :  { %v1236_v22 = vpop.f32.mrf.mxu3  ;;  %1675 = vmatpush.msrb.mxu3 %v1522_v36 }
 0x203   :  { %v1237_v25 = vadd.f32 %v1236_v22, %v1217_v20 }
 0x204   :  { %1676 = vmatpush.msrb.mxu3 %v1520_v39  ;;  %v1783_v39 = vld [vmem:[%s3815_s9 + $0x60] sm:$0xff] }
 0x205   :  { %v1242_v53 = vmax.f32 %v1237_v25, 0.0  ;;  %v1530_v25 = vperm.slane %v1527_v16, 1  ;;  %1810 = vmatpush.msra.mxu0 %v1783_v39  ;;  %v1794_v16 = vld [vmem:[%s3815_s9 + $0xb8] sm:$0xff] }
 0x206   :  { %1677 = vmatpush.msrb.mxu3 %v1518_v40 }
 0x207   :  { %v1267_v30 = vsel %vm1245_vm0, %v1242_v53, 0.0 }
 0x208   :  { %v1268_v31 = vrot.slane %v1267_v30, 4  ;;  %1678 = vmatpush.msrb.mxu3 %v1516_v45  ;;  %v1802_v45 = vld [vmem:[%s3815_s9 + $0xf8] sm:$0xff] }
 0x209   :  { %1827 = vmatpush.msra.mxu1 %v1802_v45 }
 0x20a   :  { %v1269_v9 = vadd.f32 %v1268_v31, %v1267_v30  ;;  %1679 = vmatpush.msrb.mxu3 %v1514_v48 }
 0x20c   :  { %v1270_v23 = vrot.slane %v1269_v9, 2  ;;  %1680 = vmatpush.msrb.mxu3 %v1512_v54 }
 0x20e   :  { %v1271_v34 = vadd.f32 %v1270_v23, %v1269_v9  ;;  %1681 = vmatpush.msrb.mxu3 %v1510_v56  ;;  %v1780_v56 = vld [vmem:[%s3815_s9 + $0x48] sm:$0xff] }
 0x210   :  { %v1272_v35 = vrot.slane %v1271_v34, 1  ;;  %1682 = vmatpush.msrb.mxu3 %v1508_v59 }
 0x212   :  { %v1273_v37 = vadd.f32 %v1272_v35, %v1271_v34  ;;  %1683 = vmatpush.msrb.mxu3 %v1506_v60 }
 0x214   :  { %v1284_v29 = vmul.f32 %v3289_v27, %v1273_v37  ;;  %1684 = vmatpush.msrb.mxu3 %v1504_v44  ;;  %v1799_v44 = vld [vmem:[%s3815_s9 + $0xe0] sm:$0xff] }
 0x216   :  { %v1288_v42 = vsub.f32 %v1242_v53, %v1284_v29  ;;  %1685 = vmatpush.msrb.mxu3 %v1502_v62 }
 0x218   :  { %v1292_v46 = vmul.f32 %v1288_v42, %v1288_v42  ;;  %1686 = vmatpush.msrb.mxu3 %v1500_v0  ;;  %v1550_v18 = vpop.f32.mrf.mxu0  ;;  %v1798_v0 = vld [vmem:[%s3815_s9 + $0xd8] sm:$0xff] }
 0x219   :  { %v1551_v22 = vadd.f32 %v1550_v18, %v1529_v17 }
 0x21a   :  { %v1314_v49 = vsel %vm1245_vm0, %v1292_v46, 0.0  ;;  %1687 = vmatpush.msrb.mxu3 %v1498_v50 }
 0x21b   :  { %v1315_v51 = vrot.slane %v1314_v49, 4 }
 0x21c   :  { %1688 = vmatpush.msrb.mxu3 %v1496_v57  ;;  %v1797_v57 = vld [vmem:[%s3815_s9 + $0xd0] sm:$0xff] }
 0x21d   :  { %v1316_v55 = vadd.f32 %v1315_v51, %v1314_v49  ;;  %v1781_v49 = vld [vmem:[%s3815_s9 + $0x50] sm:$0xff] }
 0x21e   :  { %v1801_v51 = vld [vmem:[%s3815_s9 + $0xf0] sm:$0xff] }
 0x21f   :  { %v1317_v26 = vrot.slane %v1316_v55, 2  ;;  %1828 = vmatpush.msra.mxu1 %v1801_v51 }
 0x221   :  { %v1318_v61 = vadd.f32 %v1317_v26, %v1316_v55  ;;  %v1800_v26 = vld [vmem:[%s3815_s9 + $0xe8] sm:$0xff] }
 0x222   :  { %1829 = vmatpush.msra.mxu1 %v1800_v26 }
 0x223   :  { %v1319_v41 = vrot.slane %v1318_v61, 1 }
 0x224   :  { %1830 = vmatpush.msra.mxu1 %v1799_v44 }
 0x225   :  { %v1320_v63 = vadd.f32 %v1319_v41, %v1318_v61  ;;  %v1779_v61 = vld [vmem:[%s3815_s9 + $0x40] sm:$0xff] }
 0x226   :  { %1831 = vmatpush.msra.mxu1 %v1798_v0 }
 0x227   :  { %v1324_v2 = vmul.f32 %v1320_v63, %v3289_v27  ;;  %v1778_v63 = vld [vmem:[%s3815_s9 + $0x38] sm:$0xff] }
 0x228   :  { %1832 = vmatpush.msra.mxu1 %v1797_v57 }
 0x229   :  { %v1328_v1 = vadd.f32 1e-05, %v1324_v2 }
 0x22b   :  { %1867 = vrsqrt.f32 %v1328_v1  ;;  %vm1365_vm12 = vweird.f32 %v1328_v1 }
 0x231   :  { %v1868_v4 = vpop.eup %1867 }
 0x232   :  { %v1360_v5 = vmul.f32 %v1868_v4, %v1328_v1  ;;  %vm1366_vm11 = vweird.f32 %v1868_v4  ;;  %v1777_v1 = vld [vmem:[%s3815_s9 + $0x30] sm:$0xff] }
 0x233   :  { %vm1367_vm13 = vmor %vm1365_vm12, %vm1366_vm11 }
 0x234   :  { %v1361_v43 = vmul.f32 %v1868_v4, %v1360_v5 }
 0x235   :  { %v1570_v58 = vpop.f32.mrf.mxu1 }
 0x236   :  { %v1362_v6 = vmul.f32 0.5, %v1361_v43  ;;  %v1571_v21 = vadd.f32 %v1570_v58, %v1551_v22  ;;  %v1776_v43 = vld [vmem:[%s3815_s9 + $0x28] sm:$0xff]  ;;  %v1773_v58 = vld [vmem:[%s3815_s9 + $0x10] sm:$0xff] }
 0x238   :  { %v1363_v7 = vsub.f32 1.5, %v1362_v6  ;;  %v1630_v8 = vpop.f32.mrf.mxu0  ;;  %v1796_v6 = vld [vmem:[%s3815_s9 + $0xc8] sm:$0xff] }
 0x239   :  { %v1631_v30 = vadd.f32 %v1630_v8, %v1530_v25  ;;  %1833 = vmatpush.msra.mxu1 %v1796_v6  ;;  %v1772_v25 = vld [vmem:[%s3815_s9 + $0x8] sm:$0xff] }
 0x23a   :  { %v1364_v10 = vmul.f32 %v1868_v4, %v1363_v7 }
 0x23c   :  { %v1368_v12 = vsel %vm1367_vm13, %v1868_v4, %v1364_v10 }
 0x23d   :  { %v1372_v47 = vmul.f32 %v1368_v12, %v1288_v42  ;;  %v1650_v33 = vpop.f32.mrf.mxu1  ;;  %v1782_v42 = vld [vmem:[%s3815_s9 + $0x58] sm:$0xff]  ;;  %v1775_v12 = vld [vmem:[%s3815_s9 + $0x20] sm:$0xff] }
 0x23e   :  { %v1651_v32 = vadd.f32 %v1650_v33, %v1631_v30  ;;  %1811 = vmatpush.msra.mxu0 %v1782_v42  ;;  %v1771_v33 = vld [vmem:[%s3815_s9] sm:$0xff] }
 0x23f   :  { %v1385_v14 = vmul.f32 %v1377_v11, %v1372_v47  ;;  %v1795_v47 = vld [vmem:[%s3815_s9 + $0xc0] sm:$0xff] }
 0x240   :  { %1812 = vmatpush.msra.mxu0 %v1781_v49  ;;  %1834 = vmatpush.msra.mxu1 %v1795_v47  ;;  %v1791_v30 = vld [vmem:[%s3815_s9 + $0xa0] sm:$0xff] }
 0x241   :  { %v1398_v52 = vadd.f32 %v1390_v13, %v1385_v14 }
 0x242   :  { %1813 = vmatpush.msra.mxu0 %v1780_v56  ;;  %1835 = vmatpush.msra.mxu1 %v1794_v16 }
 0x243   :  { %1609 = vmatmul.f32.vlgmr.msra.gmra.mxu3 %v1398_v52 }
 0x244   :  { %1814 = vmatpush.msra.mxu0 %v1779_v61 }
 0x246   :  { %1815 = vmatpush.msra.mxu0 %v1778_v63 }
 0x248   :  { %1816 = vmatpush.msra.mxu0 %v1777_v1 }
 0x24a   :  { %1817 = vmatpush.msra.mxu0 %v1776_v43 }
 0x24b   :  { %1689 = vmatmul.f32.vlgmr.msrb.gmra.mxu3 %v1398_v52  ;;  %v1774_v52 = vld [vmem:[%s3815_s9 + $0x18] sm:$0xff] }
 0x24c   :  { %1818 = vmatpush.msra.mxu0 %v1775_v12 }
 0x24e   :  { %1819 = vmatpush.msra.mxu0 %v1774_v52 }
 0x250   :  { %1820 = vmatpush.msra.mxu0 %v1773_v58 }
 0x252   :  { %1821 = vmatpush.msra.mxu0 %v1772_v25 }
 0x254   :  { %1822 = vmatpush.msra.mxu0 %v1771_v33 }
 0x27a   :  { %v1590_v20 = vpop.f32.mrf.mxu2 }
 0x27b   :  { %v1591_v24 = vadd.f32 %v1590_v20, %v1571_v21  ;;  %v1793_v20 = vld [vmem:[%s3815_s9 + $0xb0] sm:$0xff] }
 0x27c   :  { %1836 = vmatpush.msra.mxu1 %v1793_v20 }
 0x282   :  { %v1670_v9 = vpop.f32.mrf.mxu2 }
 0x283   :  { %v1671_v34 = vadd.f32 %v1670_v9, %v1651_v32  ;;  %v1790_v9 = vld [vmem:[%s3815_s9 + $0x98] sm:$0xff] }
 0x2c6   :  { %v1610_v53 = vpop.f32.mrf.mxu3 }
 0x2c7   :  { %v1611_v28 = vadd.f32 %v1610_v53, %v1591_v24  ;;  %v1792_v24 = vld [vmem:[%s3815_s9 + $0xa8] sm:$0xff] }
 0x2c8   :  { %1837 = vmatpush.msra.mxu1 %v1792_v24 }
 0x2c9   :  { %v1693_v31 = vmax.f32 %v1611_v28, 0.0 }
 0x2ca   :  { %1838 = vmatpush.msra.mxu1 %v1791_v30 }
 0x2cb   :  { %v1697_v23 = vsel %vm1245_vm0, %v1693_v31, 0.0 }
 0x2cc   :  { %v1698_v3 = vrot.slane %v1697_v23, 4  ;;  %1839 = vmatpush.msra.mxu1 %v1790_v9 }
 0x2ce   :  { %v1699_v35 = vadd.f32 %v1698_v3, %v1697_v23  ;;  %v1690_v36 = vpop.f32.mrf.mxu3  ;;  %v1788_v3 = vld [vmem:[%s3815_s9 + $0x88] sm:$0xff]  ;;  %1840 = vmatpush.msra.mxu1 %v1789_v15 }
 0x2cf   :  { %v1691_v37 = vadd.f32 %v1690_v36, %v1671_v34 }
 0x2d0   :  { %v1700_v29 = vrot.slane %v1699_v35, 2  ;;  %1841 = vmatpush.msra.mxu1 %v1788_v3 }
 0x2d1   :  { %v1694_v40 = vmax.f32 %v1691_v37, 0.0 }
 0x2d2   :  { %v1701_v46 = vadd.f32 %v1700_v29, %v1699_v35  ;;  %v1787_v35 = vld [vmem:[%s3815_s9 + $0x80] sm:$0xff] }
 0x2d3   :  { %v1704_v48 = vsel %vm1245_vm0, %v1694_v40, 0.0  ;;  %1842 = vmatpush.msra.mxu1 %v1787_v35 }
 0x2d4   :  { %v1702_v54 = vrot.slane %v1701_v46, 1  ;;  %v1705_v55 = vrot.slane %v1704_v48, 4 }
 0x2d6   :  { %v1703_v59 = vadd.f32 %v1702_v54, %v1701_v46  ;;  %v1706_v60 = vadd.f32 %v1705_v55, %v1704_v48  ;;  %v1695_v48 = vld [vmem:[%s3813_s7] sm:$0x3] }
 0x2d7   :  { %v1758_v56 = vperm.slane %v1695_v48, 0 }
 0x2d8   :  { %v1711_v41 = vmul.f32 %v1703_v59, %v3289_v27  ;;  %v1707_v62 = vrot.slane %v1706_v60, 2 }
 0x2da   :  { %v3725_v2 = vsub.f32 %v1693_v31, %v1711_v41  ;;  %v1708_v50 = vadd.f32 %v1707_v62, %v1706_v60 }
 0x2dc   :  { %v1715_v4 = vmul.f32 %v3725_v2, %v3725_v2  ;;  %v1709_v5 = vrot.slane %v1708_v50, 1 }
 0x2de   :  { %v1717_v7 = vsel %vm1245_vm0, %v1715_v4, 0.0  ;;  %v1710_v10 = vadd.f32 %v1709_v5, %v1708_v50  ;;  %v1759_v50 = vperm.slane %v1695_v48, 1 }
 0x2df   :  { %v1718_v11 = vrot.slane %v1717_v7, 4 }
 0x2e0   :  { %v1712_v13 = vmul.f32 %v1710_v10, %v3289_v27 }
 0x2e1   :  { %v1719_v14 = vadd.f32 %v1718_v11, %v1717_v7 }
 0x2e2   :  { %v3755_v17 = vsub.f32 %v1694_v40, %v1712_v13 }
 0x2e3   :  { %v1720_v18 = vrot.slane %v1719_v14, 2 }
 0x2e4   :  { %v1716_v22 = vmul.f32 %v3755_v17, %v3755_v17 }
 0x2e5   :  { %v1721_v21 = vadd.f32 %v1720_v18, %v1719_v14 }
 0x2e6   :  { %v1724_v8 = vsel %vm1245_vm0, %v1716_v22, 0.0 }
 0x2e7   :  { %v1722_v53 = vrot.slane %v1721_v21, 1  ;;  %v1725_v28 = vrot.slane %v1724_v8, 4 }
 0x2e9   :  { %v1723_v31 = vadd.f32 %v1722_v53, %v1721_v21  ;;  %v1726_v19 = vadd.f32 %v1725_v28, %v1724_v8 }
 0x2eb   :  { %v1731_v32 = vmul.f32 %v1723_v31, %v3289_v27  ;;  %v1727_v23 = vrot.slane %v1726_v19, 2 }
 0x2ed   :  { %v1733_v34 = vadd.f32 1e-05, %v1731_v32  ;;  %v1728_v38 = vadd.f32 %v1727_v23, %v1726_v19 }
 0x2ef   :  { %1869 = vrsqrt.f32 %v1733_v34  ;;  %v1729_v36 = vrot.slane %v1728_v38, 1  ;;  %vm1741_vm15 = vweird.f32 %v1733_v34 }
 0x2f1   :  { %v1730_v37 = vadd.f32 %v1729_v36, %v1728_v38 }
 0x2f3   :  { %v1732_v39 = vmul.f32 %v1730_v37, %v3289_v27  ;;  %v1696_v27 = vld [vmem:[%s3814_s8] sm:$0x3] }
 0x2f4   :  { %v1765_v61 = vperm.slane %v1696_v27, 0  ;;  %v1766_v4 = vperm.slane %v1696_v27, 1 }
 0x2f5   :  { %v1870_v29 = vpop.eup %1869  ;;  %v1734_v40 = vadd.f32 1e-05, %v1732_v39 }
 0x2f6   :  { %v1736_v42 = vmul.f32 %v1870_v29, %v1733_v34  ;;  %vm1742_vm14 = vweird.f32 %v1870_v29 }
 0x2f7   :  { %1871 = vrsqrt.f32 %v1734_v40  ;;  %vm1743_vm0 = vmor %vm1741_vm15, %vm1742_vm14  ;;  %vm1751_vm2 = vweird.f32 %v1734_v40 }
 0x2f8   :  { %v1737_v45 = vmul.f32 %v1870_v29, %v1736_v42 }
 0x2fa   :  { %v1738_v46 = vmul.f32 0.5, %v1737_v45 }
 0x2fc   :  { %v1739_v49 = vsub.f32 1.5, %v1738_v46 }
 0x2fd   :  { %v1872_v51 = vpop.eup %1871 }
 0x2fe   :  { %v1740_v54 = vmul.f32 %v1870_v29, %v1739_v49  ;;  %v1746_v55 = vmul.f32 %v1872_v51, %v1734_v40  ;;  %vm1752_vm1 = vweird.f32 %v1872_v51 }
 0x2ff   :  { %vm1753_vm3 = vmor %vm1751_vm2, %vm1752_vm1 }
 0x300   :  { %v1744_v26 = vsel %vm1743_vm0, %v1870_v29, %v1740_v54  ;;  %v1747_v59 = vmul.f32 %v1872_v51, %v1746_v55 }
 0x301   :  { %v1755_v60 = vmul.f32 %v1744_v26, %v3725_v2  ;;  %v1858_v2 = vld [vmem:[%s3816_s10] ss:$0 sm:$0xff] }
 0x302   :  { %v1748_v44 = vmul.f32 0.5, %v1747_v59 }
 0x303   :  { %v1762_v41 = vmul.f32 %v1758_v56, %v1755_v60 }
 0x304   :  { %v1749_v62 = vsub.f32 1.5, %v1748_v44 }
 0x305   :  { %v1769_v63 = vadd.f32 %v1765_v61, %v1762_v41 }
 0x306   :  { %v1750_v0 = vmul.f32 %v1872_v51, %v1749_v62 }
 0x307   :  { %1823 = vmatmul.f32.vlgmr.msra.gmra.mxu0 %v1769_v63 }
 0x308   :  { %v1754_v1 = vsel %vm1753_vm3, %v1872_v51, %v1750_v0 }
 0x309   :  { %v1756_v57 = vmul.f32 %v1754_v1, %v3755_v17 }
 0x30b   :  { %v1763_v5 = vmul.f32 %v1759_v50, %v1756_v57 }
 0x30d   :  { %v1770_v43 = vadd.f32 %v1766_v4, %v1763_v5 }
 0x30f   :  { %1843 = vmatmul.f32.vlgmr.msra.gmra.mxu1 %v1770_v43 }
 0x384   :  { %v1824_v6 = vpop.f32.mrf.mxu0 }
 0x385   :  { %v1825_v7 = vadd.f32 %v1858_v2, %v1824_v6 }
 0x38c   :  { %v1844_v10 = vpop.f32.mrf.mxu1 }
 0x38d   :  { %v1845_v11 = vadd.f32 %v1844_v10, %v1825_v7 }
 0x38f   :  { %1848 = vst.msk [vmem:[%s3817_s11] sm:$0x3] %vm1847_vm4, %v1845_v11 }
 0x390   :  { %1853 = vsyncpa [#allocation3], 1 }

</bundles_post_ra>
